<compile_context>
chip_gen: v7x
topology: tpu7x:2x2x1
jax: 0.10.0
libtpu: 0.0.40
codegen_flags: <defaults>
</compile_context>

<pallas_src>
import functools

import jax
import jax.numpy as jnp
from jax import lax
from jax.experimental import pallas as pl
from jax.experimental.pallas import tpu as pltpu

EPS = 1e-5


# ----------------------------------------------------------------------------- helpers
def _fill_padded(pad_ref, img_f32, *, H, W):
    """Write one image (H*W, C) into the middle of the padded scratch.

    pad_ref has H*W + 2*(W+1) rows; the W+1 zero rows above/below implement the
    dy = +/-1 'same' zero padding (reads that fall outside the image hit zeros)."""
    hw = H * W
    P = W + 1
    c = pad_ref.shape[-1]
    zero = jnp.zeros((P, c), jnp.float32)
    pad_ref[pl.ds(0, P), :] = zero
    pad_ref[pl.ds(P + hw, P), :] = zero
    pad_ref[pl.ds(P, hw), :] = img_f32


def _conv3x3_from_padded(pad_ref, w_ref, *, H, W):
    """9-tap 'same' 3x3 conv for one image.

    pad_ref: (H*W + 2*(W+1), Cin) f32 padded scratch.
    w_ref  : (9, Cin, Cout) bf16 taps in (dy, dx) order (== HWIO reshape).
    Returns (H*W, Cout) f32 accumulator (MXU, bf16 operands, f32 accumulate)."""
    hw = H * W
    P = W + 1
    # Only the dx wrap-around needs masking (dy handled by the zero pad rows).
    w_idx = lax.broadcasted_iota(jnp.int32, (hw, 1), 0) % W
    masks = {-1: (w_idx > 0).astype(jnp.float32),       # dx = -1 invalid at w == 0
             0: None,
             1: (w_idx < W - 1).astype(jnp.float32)}    # dx = +1 invalid at w == W-1
    acc = None
    t = 0
    for dy in (-1, 0, 1):
        for dx in (-1, 0, 1):
            src = pad_ref[pl.ds(P + dy * W + dx, hw), :]     # static sublane slice
            if masks[dx] is not None:
                src = src * masks[dx]
            part = jnp.dot(src.astype(jnp.bfloat16), w_ref[t],
                           preferred_element_type=jnp.float32)
            acc = part if acc is None else acc + part
            t += 1
    return acc


# ----------------------------------------------------------------------------- kernels
def conv_stats_kernel(x_ref, w_ref, h_ref, s_ref, ss_ref, pad_ref, *, H, W):
    """Pass 1: conv1 on one image + per-image partial BN statistics (f32)."""
    _fill_padded(pad_ref, x_ref[0].astype(jnp.float32), H=H, W=W)
    acc = _conv3x3_from_padded(pad_ref, w_ref, H=H, W=W)
    h_ref[0] = acc.astype(h_ref.dtype)                          # bf16 intermediate
    s_ref[0] = jnp.sum(acc, axis=0, keepdims=True)              # (1, Cout) f32
    ss_ref[0] = jnp.sum(acc * acc, axis=0, keepdims=True)


def bn_relu_conv_stats_kernel(x_ref, scale_ref, shift_ref, w_ref,
                              h_ref, s_ref, ss_ref, pad_ref, *, H, W):
    """Pass 2: BN1 (folded scale/shift FMA) + ReLU + conv2 + partial BN2 stats."""
    a = x_ref[0].astype(jnp.float32) * scale_ref[...] + shift_ref[...]
    a = jnp.maximum(a, 0.0)
    _fill_padded(pad_ref, a, H=H, W=W)
    acc = _conv3x3_from_padded(pad_ref, w_ref, H=H, W=W)
    h_ref[0] = acc.astype(h_ref.dtype)
    s_ref[0] = jnp.sum(acc, axis=0, keepdims=True)
    ss_ref[0] = jnp.sum(acc * acc, axis=0, keepdims=True)


def bn_relu_kernel(x_ref, scale_ref, shift_ref, o_ref):
    """Pass 3: BN2 + ReLU, lane-dense slab (last dim = W*Cout)."""
    a = x_ref[0].astype(jnp.float32) * scale_ref[...] + shift_ref[...]
    o_ref[0] = jnp.maximum(a, 0.0)


# ----------------------------------------------------------------------------- wrapper
def _scale_shift(s_partial, ss_partial, gamma, beta, count):
    """Reduce per-image partial sums to global batch stats; fold gamma/beta."""
    mean = jnp.sum(s_partial, axis=0) / count                       # (1, C)
    var = jnp.maximum(jnp.sum(ss_partial, axis=0) / count - mean * mean, 0.0)
    scale = gamma.astype(jnp.float32) * lax.rsqrt(var + EPS)
    shift = beta.astype(jnp.float32) - mean * scale
    return scale, shift


@jax.jit
def conv_block(x_nchw, w1, b1, g1, be1, w2, b2, g2, be2):
    """ConvBlock forward.  x: NCHW; w: HWIO (3,3,Cin,Cout); g/be: (1,Cout). Returns NCHW.

    Conv biases cancel exactly under batch-stat BN (training mode), so they are not
    sent to the kernels (kept in the signature for module parity).
    TODO(synk): with eval-mode running stats the biases no longer cancel."""
    del b1, b2
    n, cin, h, w = x_nchw.shape
    cout = w1.shape[-1]
    hw = h * w
    pad_rows = hw + 2 * (w + 1)
    par = pltpu.CompilerParams(dimension_semantics=("parallel",))

    # Layout plumbing: NCHW -> (N, H*W, Cin) bf16 rows-by-channels.
    # TODO(synk): keep the surrounding model NHWC end-to-end to drop these transposes.
    x = jnp.transpose(x_nchw, (0, 2, 3, 1)).reshape(n, hw, cin).astype(jnp.bfloat16)
    w1t = w1.reshape(9, cin, cout).astype(jnp.bfloat16)     # (dy, dx)-ordered taps
    w2t = w2.reshape(9, cout, cout).astype(jnp.bfloat16)

    # ---- pass 1: conv1 + per-image partial stats ------------------------------------
    h1, s1, ss1 = pl.pallas_call(
        functools.partial(conv_stats_kernel, H=h, W=w),
        grid=(n,),
        in_specs=[pl.BlockSpec((1, hw, cin), lambda i: (i, 0, 0)),
                  pl.BlockSpec((9, cin, cout), lambda i: (0, 0, 0))],     # resident
        out_specs=(pl.BlockSpec((1, hw, cout), lambda i: (i, 0, 0)),
                   pl.BlockSpec((1, 1, cout), lambda i: (i, 0, 0)),
                   pl.BlockSpec((1, 1, cout), lambda i: (i, 0, 0))),
        out_shape=(jax.ShapeDtypeStruct((n, hw, cout), jnp.bfloat16),
                   jax.ShapeDtypeStruct((n, 1, cout), jnp.float32),
                   jax.ShapeDtypeStruct((n, 1, cout), jnp.float32)),
        scratch_shapes=[pltpu.VMEM((pad_rows, cin), jnp.float32)],
        compiler_params=par,
    )(x, w1t)
    scale1, shift1 = _scale_shift(s1, ss1, g1, be1, n * hw)

    # ---- pass 2: BN1 + ReLU + conv2 + per-image partial stats ------------------------
    h2, s2, ss2 = pl.pallas_call(
        functools.partial(bn_relu_conv_stats_kernel, H=h, W=w),
        grid=(n,),
        in_specs=[pl.BlockSpec((1, hw, cout), lambda i: (i, 0, 0)),
                  pl.BlockSpec((1, cout), lambda i: (0, 0)),              # resident
                  pl.BlockSpec((1, cout), lambda i: (0, 0)),              # resident
                  pl.BlockSpec((9, cout, cout), lambda i: (0, 0, 0))],    # resident
        out_specs=(pl.BlockSpec((1, hw, cout), lambda i: (i, 0, 0)),
                   pl.BlockSpec((1, 1, cout), lambda i: (i, 0, 0)),
                   pl.BlockSpec((1, 1, cout), lambda i: (i, 0, 0))),
        out_shape=(jax.ShapeDtypeStruct((n, hw, cout), jnp.bfloat16),
                   jax.ShapeDtypeStruct((n, 1, cout), jnp.float32),
                   jax.ShapeDtypeStruct((n, 1, cout), jnp.float32)),
        scratch_shapes=[pltpu.VMEM((pad_rows, cout), jnp.float32)],
        compiler_params=par,
    )(h1, scale1, shift1, w2t)
    scale2, shift2 = _scale_shift(s2, ss2, g2, be2, n * hw)

    # ---- pass 3: BN2 + ReLU (lane-dense writeback, W*Cout lanes) ---------------------
    h2_ld = h2.reshape(n, h, w * cout)          # contiguous reshape (no data movement)
    out = pl.pallas_call(
        bn_relu_kernel,
        grid=(n,),
        in_specs=[pl.BlockSpec((1, h, w * cout), lambda i: (i, 0, 0)),
                  pl.BlockSpec((1, w * cout), lambda i: (0, 0)),
                  pl.BlockSpec((1, w * cout), lambda i: (0, 0))],
        out_specs=pl.BlockSpec((1, h, w * cout), lambda i: (i, 0, 0)),
        out_shape=jax.ShapeDtypeStruct((n, h, w * cout), jnp.float32),
        compiler_params=par,
    )(h2_ld, jnp.tile(scale2, (1, w)), jnp.tile(shift2, (1, w)))

    return jnp.transpose(out.reshape(n, h, w, cout), (0, 3, 1, 2))   # back to NCHW


# ----------------------------------------------------------------------------- reference
def conv_block_ref(x_nchw, w1, b1, g1, be1, w2, b2, g2, be2):
    # Pure-JAX f32 reference (PyTorch module semantics in training mode).
    x = jnp.transpose(x_nchw, (0, 2, 3, 1)).astype(jnp.float32)

    def conv(hh, wgt, b):
        y = jax.lax.conv_general_dilated(
            hh, wgt, window_strides=(1, 1), padding="SAME",
            dimension_numbers=("NHWC", "HWIO", "NHWC"))
        return y + b.reshape(1, 1, 1, -1)

    def bn_relu(hh, g, be):
        m = jnp.mean(hh, axis=(0, 1, 2), keepdims=True)
        v = jnp.mean((hh - m) ** 2, axis=(0, 1, 2), keepdims=True)
        hh = (hh - m) * jax.lax.rsqrt(v + EPS) * g.reshape(1, 1, 1, -1) + be.reshape(1, 1, 1, -1)
        return jnp.maximum(hh, 0.0)

    hh = bn_relu(conv(x, w1, b1), g1, be1)
    hh = bn_relu(conv(hh, w2, b2), g2, be2)
    return jnp.transpose(hh, (0, 3, 1, 2))


if __name__ == "__main__":
    N, in_c, out_c, S = 2, 4, 8, 16

    key = jax.random.PRNGKey(0)
    ks = jax.random.split(key, 9)
    w1 = 0.1 * jax.random.normal(ks[0], (3, 3, in_c, out_c), jnp.float32)   # HWIO
    b1 = 0.1 * jax.random.normal(ks[1], (1, out_c), jnp.float32)
    g1 = 1.0 + 0.1 * jax.random.normal(ks[2], (1, out_c), jnp.float32)
    be1 = 0.1 * jax.random.normal(ks[3], (1, out_c), jnp.float32)
    w2 = 0.1 * jax.random.normal(ks[4], (3, 3, out_c, out_c), jnp.float32)  # HWIO
    b2 = 0.1 * jax.random.normal(ks[5], (1, out_c), jnp.float32)
    g2 = 1.0 + 0.1 * jax.random.normal(ks[6], (1, out_c), jnp.float32)
    be2 = 0.1 * jax.random.normal(ks[7], (1, out_c), jnp.float32)

    x = jax.random.normal(ks[8], (N, in_c, S, S), jnp.float32)  # NCHW, like PyTorch

    out = jax.block_until_ready(conv_block(x, w1, b1, g1, be1, w2, b2, g2, be2))
    ref = jax.block_until_ready(conv_block_ref(x, w1, b1, g1, be1, w2, b2, g2, be2))

    assert out.shape == (N, out_c, S, S), out.shape
    max_err = float(jnp.max(jnp.abs(out - ref)))
    mean_err = float(jnp.mean(jnp.abs(out - ref)))
    # bf16 MXU operands (f32 accumulate) vs f32 reference -> relaxed tolerance.
    assert max_err < 5e-2 and mean_err < 5e-3, (max_err, mean_err)

    print("KERNEL_OK")
</pallas_src>

<mosaic_0001>
module attributes {stable_mosaic.version = 11 : i64} {
  func.func @conv_stats_kernel(%arg0: i32, %arg1: memref<1x256x4xbf16, #tpu.memory_space<vmem>>, %arg2: memref<9x4x8xbf16, #tpu.memory_space<vmem>>, %arg3: memref<1x256x8xbf16, #tpu.memory_space<vmem>>, %arg4: memref<1x1x8xf32, #tpu.memory_space<vmem>>, %arg5: memref<1x1x8xf32, #tpu.memory_space<vmem>>, %arg6: memref<290x4xf32, #tpu.memory_space<vmem>>) attributes {dimension_semantics = [#tpu.dimension_semantics<parallel>], iteration_bounds = array<i64: 2>, scalar_prefetch = 0 : i64, scratch_operands = 1 : i64, tpu.core_type = #tpu.core_type<tc>, window_params = [{transform_indices = @transform_0, window_bounds = array<i64: 1, 256, 4>}, {pipeline_mode = #tpu.pipeline_mode<synchronous>, transform_indices = @transform_1, window_bounds = array<i64: 9, 4, 8>}, {transform_indices = @transform_2, window_bounds = array<i64: 1, 256, 8>}, {transform_indices = @transform_3, window_bounds = array<i64: 1, 1, 8>}, {transform_indices = @transform_4, window_bounds = array<i64: 1, 1, 8>}]} {
    %c0 = arith.constant 0 : index
    %c0_0 = arith.constant 0 : index
    %c0_1 = arith.constant 0 : index
    %0 = vector.load %arg1[%c0, %c0_0, %c0_1] : memref<1x256x4xbf16, #tpu.memory_space<vmem>>, vector<1x256x4xbf16>
    %1 = vector.shape_cast %0 : vector<1x256x4xbf16> to vector<256x4xbf16>
    %2 = arith.extf %1 : vector<256x4xbf16> to vector<256x4xf32>
    %cst = arith.constant 0.000000e+00 : f32
    %3 = vector.broadcast %cst : f32 to vector<17x4xf32>
    %c0_2 = arith.constant 0 : index
    %c0_3 = arith.constant 0 : index
    %4 = vector.load %arg6[%c0_2, %c0_3] : memref<290x4xf32, #tpu.memory_space<vmem>>, vector<17x4xf32>
    tpu.vector_store %arg6[%c0_2, %c0_3], %3 {strides = array<i32>} : memref<290x4xf32, #tpu.memory_space<vmem>>, vector<17x4xf32>,
    %c273 = arith.constant 273 : index
    %c0_4 = arith.constant 0 : index
    %5 = vector.load %arg6[%c273, %c0_4] : memref<290x4xf32, #tpu.memory_space<vmem>>, vector<17x4xf32>
    tpu.vector_store %arg6[%c273, %c0_4], %3 {strides = array<i32>} : memref<290x4xf32, #tpu.memory_space<vmem>>, vector<17x4xf32>,
    %c17 = arith.constant 17 : index
    %c0_5 = arith.constant 0 : index
    %6 = vector.load %arg6[%c17, %c0_5] : memref<290x4xf32, #tpu.memory_space<vmem>>, vector<256x4xf32>
    tpu.vector_store %arg6[%c17, %c0_5], %2 {strides = array<i32>} : memref<290x4xf32, #tpu.memory_space<vmem>>, vector<256x4xf32>,
    %7 = tpu.iota {dimensions = array<i32: 0>} : vector<256x1xi32>
    %c16_i32 = arith.constant 16 : i32
    %c0_i32 = arith.constant 0 : i32
    %8 = arith.cmpi eq, %c16_i32, %c0_i32 : i32
    %c1_i32 = arith.constant 1 : i32
    %9 = arith.select %8, %c1_i32, %c16_i32 : i32
    %10 = vector.broadcast %9 : i32 to vector<256x1xi32>
    %11 = arith.remsi %7, %10 : vector<256x1xi32>
    %c0_i32_6 = arith.constant 0 : i32
    %12 = vector.broadcast %c0_i32_6 : i32 to vector<256x1xi32>
    %13 = arith.cmpi ne, %11, %12 : vector<256x1xi32>
    %c0_i32_7 = arith.constant 0 : i32
    %14 = vector.broadcast %c0_i32_7 : i32 to vector<256x1xi32>
    %15 = arith.cmpi slt, %11, %14 : vector<256x1xi32>
    %c0_i32_8 = arith.constant 0 : i32
    %16 = arith.cmpi slt, %9, %c0_i32_8 : i32
    %17 = vector.broadcast %16 : i1 to vector<256x1xi1>
    %18 = vector.broadcast %17 : vector<256x1xi1> to vector<256x1xi1>
    %19 = arith.xori %15, %18 : vector<256x1xi1>
    %20 = arith.andi %19, %13 : vector<256x1xi1>
    %21 = vector.broadcast %9 : i32 to vector<256x1xi32>
    %22 = arith.addi %11, %21 : vector<256x1xi32>
    %23 = arith.select %20, %22, %11 : vector<256x1xi1>, vector<256x1xi32>
    %c0_i32_9 = arith.constant 0 : i32
    %24 = vector.broadcast %c0_i32_9 : i32 to vector<256x1xi32>
    %25 = arith.cmpi sgt, %23, %24 : vector<256x1xi32>
    %26 = arith.extui %25 : vector<256x1xi1> to vector<256x1xi32>
    %27 = arith.sitofp %26 : vector<256x1xi32> to vector<256x1xf32>
    %c15_i32 = arith.constant 15 : i32
    %28 = vector.broadcast %c15_i32 : i32 to vector<256x1xi32>
    %29 = arith.cmpi slt, %23, %28 : vector<256x1xi32>
    %30 = arith.extui %29 : vector<256x1xi1> to vector<256x1xi32>
    %31 = arith.sitofp %30 : vector<256x1xi32> to vector<256x1xf32>
    %c0_10 = arith.constant 0 : index
    %c0_11 = arith.constant 0 : index
    %32 = vector.load %arg6[%c0_10, %c0_11] : memref<290x4xf32, #tpu.memory_space<vmem>>, vector<256x4xf32>
    %33 = vector.broadcast %27 : vector<256x1xf32> to vector<256x4xf32>
    %34 = arith.mulf %32, %33 : vector<256x4xf32>
    %35 = arith.truncf %34 : vector<256x4xf32> to vector<256x4xbf16>
    %c0_12 = arith.constant 0 : index
    %c0_13 = arith.constant 0 : index
    %c0_14 = arith.constant 0 : index
    %36 = vector.load %arg2[%c0_12, %c0_13, %c0_14] : memref<9x4x8xbf16, #tpu.memory_space<vmem>>, vector<1x4x8xbf16>
    %37 = vector.shape_cast %36 : vector<1x4x8xbf16> to vector<4x8xbf16>
    %cst_15 = arith.constant dense<0.000000e+00> : vector<256x8xf32>
    %38 = tpu.matmul %35, %37, %cst_15 {dimension_numbers = #tpu.dot_dimension_numbers<[1], [0], [0], [1], [0, 0, 1, 1], [], []>} : vector<256x4xbf16>, vector<4x8xbf16>, vector<256x8xf32> -> vector<256x8xf32>
    %c1 = arith.constant 1 : index
    %c0_16 = arith.constant 0 : index
    %39 = vector.load %arg6[%c1, %c0_16] : memref<290x4xf32, #tpu.memory_space<vmem>>, vector<256x4xf32>
    %40 = arith.truncf %39 : vector<256x4xf32> to vector<256x4xbf16>
    %c1_17 = arith.constant 1 : index
    %c0_18 = arith.constant 0 : index
    %c0_19 = arith.constant 0 : index
    %41 = vector.load %arg2[%c1_17, %c0_18, %c0_19] : memref<9x4x8xbf16, #tpu.memory_space<vmem>>, vector<1x4x8xbf16>
    %42 = vector.shape_cast %41 : vector<1x4x8xbf16> to vector<4x8xbf16>
    %cst_20 = arith.constant dense<0.000000e+00> : vector<256x8xf32>
    %43 = tpu.matmul %40, %42, %cst_20 {dimension_numbers = #tpu.dot_dimension_numbers<[1], [0], [0], [1], [0, 0, 1, 1], [], []>} : vector<256x4xbf16>, vector<4x8xbf16>, vector<256x8xf32> -> vector<256x8xf32>
    %44 = arith.addf %38, %43 : vector<256x8xf32>
    %c2 = arith.constant 2 : index
    %c0_21 = arith.constant 0 : index
    %45 = vector.load %arg6[%c2, %c0_21] : memref<290x4xf32, #tpu.memory_space<vmem>>, vector<256x4xf32>
    %46 = vector.broadcast %31 : vector<256x1xf32> to vector<256x4xf32>
    %47 = arith.mulf %45, %46 : vector<256x4xf32>
    %48 = arith.truncf %47 : vector<256x4xf32> to vector<256x4xbf16>
    %c2_22 = arith.constant 2 : index
    %c0_23 = arith.constant 0 : index
    %c0_24 = arith.constant 0 : index
    %49 = vector.load %arg2[%c2_22, %c0_23, %c0_24] : memref<9x4x8xbf16, #tpu.memory_space<vmem>>, vector<1x4x8xbf16>
    %50 = vector.shape_cast %49 : vector<1x4x8xbf16> to vector<4x8xbf16>
    %cst_25 = arith.constant dense<0.000000e+00> : vector<256x8xf32>
    %51 = tpu.matmul %48, %50, %cst_25 {dimension_numbers = #tpu.dot_dimension_numbers<[1], [0], [0], [1], [0, 0, 1, 1], [], []>} : vector<256x4xbf16>, vector<4x8xbf16>, vector<256x8xf32> -> vector<256x8xf32>
    %52 = arith.addf %44, %51 : vector<256x8xf32>
    %c16 = arith.constant 16 : index
    %c0_26 = arith.constant 0 : index
    %53 = vector.load %arg6[%c16, %c0_26] : memref<290x4xf32, #tpu.memory_space<vmem>>, vector<256x4xf32>
    %54 = vector.broadcast %27 : vector<256x1xf32> to vector<256x4xf32>
    %55 = arith.mulf %53, %54 : vector<256x4xf32>
    %56 = arith.truncf %55 : vector<256x4xf32> to vector<256x4xbf16>
    %c3 = arith.constant 3 : index
    %c0_27 = arith.constant 0 : index
    %c0_28 = arith.constant 0 : index
    %57 = vector.load %arg2[%c3, %c0_27, %c0_28] : memref<9x4x8xbf16, #tpu.memory_space<vmem>>, vector<1x4x8xbf16>
    %58 = vector.shape_cast %57 : vector<1x4x8xbf16> to vector<4x8xbf16>
    %cst_29 = arith.constant dense<0.000000e+00> : vector<256x8xf32>
    %59 = tpu.matmul %56, %58, %cst_29 {dimension_numbers = #tpu.dot_dimension_numbers<[1], [0], [0], [1], [0, 0, 1, 1], [], []>} : vector<256x4xbf16>, vector<4x8xbf16>, vector<256x8xf32> -> vector<256x8xf32>
    %60 = arith.addf %52, %59 : vector<256x8xf32>
    %c17_30 = arith.constant 17 : index
    %c0_31 = arith.constant 0 : index
    %61 = vector.load %arg6[%c17_30, %c0_31] : memref<290x4xf32, #tpu.memory_space<vmem>>, vector<256x4xf32>
    %62 = arith.truncf %61 : vector<256x4xf32> to vector<256x4xbf16>
    %c4 = arith.constant 4 : index
    %c0_32 = arith.constant 0 : index
    %c0_33 = arith.constant 0 : index
    %63 = vector.load %arg2[%c4, %c0_32, %c0_33] : memref<9x4x8xbf16, #tpu.memory_space<vmem>>, vector<1x4x8xbf16>
    %64 = vector.shape_cast %63 : vector<1x4x8xbf16> to vector<4x8xbf16>
    %cst_34 = arith.constant dense<0.000000e+00> : vector<256x8xf32>
    %65 = tpu.matmul %62, %64, %cst_34 {dimension_numbers = #tpu.dot_dimension_numbers<[1], [0], [0], [1], [0, 0, 1, 1], [], []>} : vector<256x4xbf16>, vector<4x8xbf16>, vector<256x8xf32> -> vector<256x8xf32>
    %66 = arith.addf %60, %65 : vector<256x8xf32>
    %c18 = arith.constant 18 : index
    %c0_35 = arith.constant 0 : index
    %67 = vector.load %arg6[%c18, %c0_35] : memref<290x4xf32, #tpu.memory_space<vmem>>, vector<256x4xf32>
    %68 = vector.broadcast %31 : vector<256x1xf32> to vector<256x4xf32>
    %69 = arith.mulf %67, %68 : vector<256x4xf32>
    %70 = arith.truncf %69 : vector<256x4xf32> to vector<256x4xbf16>
    %c5 = arith.constant 5 : index
    %c0_36 = arith.constant 0 : index
    %c0_37 = arith.constant 0 : index
    %71 = vector.load %arg2[%c5, %c0_36, %c0_37] : memref<9x4x8xbf16, #tpu.memory_space<vmem>>, vector<1x4x8xbf16>
    %72 = vector.shape_cast %71 : vector<1x4x8xbf16> to vector<4x8xbf16>
    %cst_38 = arith.constant dense<0.000000e+00> : vector<256x8xf32>
    %73 = tpu.matmul %70, %72, %cst_38 {dimension_numbers = #tpu.dot_dimension_numbers<[1], [0], [0], [1], [0, 0, 1, 1], [], []>} : vector<256x4xbf16>, vector<4x8xbf16>, vector<256x8xf32> -> vector<256x8xf32>
    %74 = arith.addf %66, %73 : vector<256x8xf32>
    %c32 = arith.constant 32 : index
    %c0_39 = arith.constant 0 : index
    %75 = vector.load %arg6[%c32, %c0_39] : memref<290x4xf32, #tpu.memory_space<vmem>>, vector<256x4xf32>
    %76 = vector.broadcast %27 : vector<256x1xf32> to vector<256x4xf32>
    %77 = arith.mulf %75, %76 : vector<256x4xf32>
    %78 = arith.truncf %77 : vector<256x4xf32> to vector<256x4xbf16>
    %c6 = arith.constant 6 : index
    %c0_40 = arith.constant 0 : index
    %c0_41 = arith.constant 0 : index
    %79 = vector.load %arg2[%c6, %c0_40, %c0_41] : memref<9x4x8xbf16, #tpu.memory_space<vmem>>, vector<1x4x8xbf16>
    %80 = vector.shape_cast %79 : vector<1x4x8xbf16> to vector<4x8xbf16>
    %cst_42 = arith.constant dense<0.000000e+00> : vector<256x8xf32>
    %81 = tpu.matmul %78, %80, %cst_42 {dimension_numbers = #tpu.dot_dimension_numbers<[1], [0], [0], [1], [0, 0, 1, 1], [], []>} : vector<256x4xbf16>, vector<4x8xbf16>, vector<256x8xf32> -> vector<256x8xf32>
    %82 = arith.addf %74, %81 : vector<256x8xf32>
    %c33 = arith.constant 33 : index
    %c0_43 = arith.constant 0 : index
    %83 = vector.load %arg6[%c33, %c0_43] : memref<290x4xf32, #tpu.memory_space<vmem>>, vector<256x4xf32>
    %84 = arith.truncf %83 : vector<256x4xf32> to vector<256x4xbf16>
    %c7 = arith.constant 7 : index
    %c0_44 = arith.constant 0 : index
    %c0_45 = arith.constant 0 : index
    %85 = vector.load %arg2[%c7, %c0_44, %c0_45] : memref<9x4x8xbf16, #tpu.memory_space<vmem>>, vector<1x4x8xbf16>
    %86 = vector.shape_cast %85 : vector<1x4x8xbf16> to vector<4x8xbf16>
    %cst_46 = arith.constant dense<0.000000e+00> : vector<256x8xf32>
    %87 = tpu.matmul %84, %86, %cst_46 {dimension_numbers = #tpu.dot_dimension_numbers<[1], [0], [0], [1], [0, 0, 1, 1], [], []>} : vector<256x4xbf16>, vector<4x8xbf16>, vector<256x8xf32> -> vector<256x8xf32>
    %88 = arith.addf %82, %87 : vector<256x8xf32>
    %c34 = arith.constant 34 : index
    %c0_47 = arith.constant 0 : index
    %89 = vector.load %arg6[%c34, %c0_47] : memref<290x4xf32, #tpu.memory_space<vmem>>, vector<256x4xf32>
    %90 = vector.broadcast %31 : vector<256x1xf32> to vector<256x4xf32>
    %91 = arith.mulf %89, %90 : vector<256x4xf32>
    %92 = arith.truncf %91 : vector<256x4xf32> to vector<256x4xbf16>
    %c8 = arith.constant 8 : index
    %c0_48 = arith.constant 0 : index
    %c0_49 = arith.constant 0 : index
    %93 = vector.load %arg2[%c8, %c0_48, %c0_49] : memref<9x4x8xbf16, #tpu.memory_space<vmem>>, vector<1x4x8xbf16>
    %94 = vector.shape_cast %93 : vector<1x4x8xbf16> to vector<4x8xbf16>
    %cst_50 = arith.constant dense<0.000000e+00> : vector<256x8xf32>
    %95 = tpu.matmul %92, %94, %cst_50 {dimension_numbers = #tpu.dot_dimension_numbers<[1], [0], [0], [1], [0, 0, 1, 1], [], []>} : vector<256x4xbf16>, vector<4x8xbf16>, vector<256x8xf32> -> vector<256x8xf32>
    %96 = arith.addf %88, %95 : vector<256x8xf32>
    %97 = arith.truncf %96 : vector<256x8xf32> to vector<256x8xbf16>
    %c0_51 = arith.constant 0 : index
    %c0_52 = arith.constant 0 : index
    %c0_53 = arith.constant 0 : index
    %98 = vector.load %arg3[%c0_51, %c0_52, %c0_53] : memref<1x256x8xbf16, #tpu.memory_space<vmem>>, vector<1x256x8xbf16>
    %99 = vector.shape_cast %98 : vector<1x256x8xbf16> to vector<256x8xbf16>
    %100 = vector.shape_cast %97 : vector<256x8xbf16> to vector<1x256x8xbf16>
    tpu.vector_store %arg3[%c0_51, %c0_52, %c0_53], %100 {strides = array<i32>} : memref<1x256x8xbf16, #tpu.memory_space<vmem>>, vector<1x256x8xbf16>,
    %cst_54 = arith.constant dense<0.000000e+00> : vector<8xf32>
    %101 = vector.multi_reduction <add>, %96, %cst_54 [0] : vector<256x8xf32> to vector<8xf32>
    %102 = vector.shape_cast %101 : vector<8xf32> to vector<1x8xf32>
    %c0_55 = arith.constant 0 : index
    %c0_56 = arith.constant 0 : index
    %c0_57 = arith.constant 0 : index
    %103 = vector.load %arg4[%c0_55, %c0_56, %c0_57] : memref<1x1x8xf32, #tpu.memory_space<vmem>>, vector<1x1x8xf32>
    %104 = vector.shape_cast %103 : vector<1x1x8xf32> to vector<1x8xf32>
    %105 = vector.shape_cast %102 : vector<1x8xf32> to vector<1x1x8xf32>
    tpu.vector_store %arg4[%c0_55, %c0_56, %c0_57], %105 {strides = array<i32>} : memref<1x1x8xf32, #tpu.memory_space<vmem>>, vector<1x1x8xf32>,
    %106 = arith.mulf %96, %96 : vector<256x8xf32>
    %cst_58 = arith.constant dense<0.000000e+00> : vector<8xf32>
    %107 = vector.multi_reduction <add>, %106, %cst_58 [0] : vector<256x8xf32> to vector<8xf32>
    %108 = vector.shape_cast %107 : vector<8xf32> to vector<1x8xf32>
    %c0_59 = arith.constant 0 : index
    %c0_60 = arith.constant 0 : index
    %c0_61 = arith.constant 0 : index
    %109 = vector.load %arg5[%c0_59, %c0_60, %c0_61] : memref<1x1x8xf32, #tpu.memory_space<vmem>>, vector<1x1x8xf32>
    %110 = vector.shape_cast %109 : vector<1x1x8xf32> to vector<1x8xf32>
    %111 = vector.shape_cast %108 : vector<1x8xf32> to vector<1x1x8xf32>
    tpu.vector_store %arg5[%c0_59, %c0_60, %c0_61], %111 {strides = array<i32>} : memref<1x1x8xf32, #tpu.memory_space<vmem>>, vector<1x1x8xf32>,
    return
  }
  func.func @transform_0(%arg0: i32) -> (i32, i32, i32) {
    %c0_i32 = arith.constant 0 : i32
    %c0_i32_0 = arith.constant 0 : i32
    %c0_i32_1 = arith.constant 0 : i32
    return %arg0, %c0_i32, %c0_i32_0 : i32, i32, i32
  }
  func.func @transform_1(%arg0: i32) -> (i32, i32, i32) {
    %c0_i32 = arith.constant 0 : i32
    %c0_i32_0 = arith.constant 0 : i32
    %c0_i32_1 = arith.constant 0 : i32
    %c0_i32_2 = arith.constant 0 : i32
    return %c0_i32, %c0_i32_0, %c0_i32_1 : i32, i32, i32
  }
  func.func @transform_2(%arg0: i32) -> (i32, i32, i32) {
    %c0_i32 = arith.constant 0 : i32
    %c0_i32_0 = arith.constant 0 : i32
    %c0_i32_1 = arith.constant 0 : i32
    return %arg0, %c0_i32, %c0_i32_0 : i32, i32, i32
  }
  func.func @transform_3(%arg0: i32) -> (i32, i32, i32) {
    %c0_i32 = arith.constant 0 : i32
    %c0_i32_0 = arith.constant 0 : i32
    %c0_i32_1 = arith.constant 0 : i32
    return %arg0, %c0_i32, %c0_i32_0 : i32, i32, i32
  }
  func.func @transform_4(%arg0: i32) -> (i32, i32, i32) {
    %c0_i32 = arith.constant 0 : i32
    %c0_i32_0 = arith.constant 0 : i32
    %c0_i32_1 = arith.constant 0 : i32
    return %arg0, %c0_i32, %c0_i32_0 : i32, i32, i32
  }
}

module attributes {stable_mosaic.version = 11 : i64} {
  func.func @bn_relu_conv_stats_kernel(%arg0: i32, %arg1: memref<1x256x8xbf16, #tpu.memory_space<vmem>>, %arg2: memref<1x8xf32, #tpu.memory_space<vmem>>, %arg3: memref<1x8xf32, #tpu.memory_space<vmem>>, %arg4: memref<9x8x8xbf16, #tpu.memory_space<vmem>>, %arg5: memref<1x256x8xbf16, #tpu.memory_space<vmem>>, %arg6: memref<1x1x8xf32, #tpu.memory_space<vmem>>, %arg7: memref<1x1x8xf32, #tpu.memory_space<vmem>>, %arg8: memref<290x8xf32, #tpu.memory_space<vmem>>) attributes {dimension_semantics = [#tpu.dimension_semantics<parallel>], iteration_bounds = array<i64: 2>, scalar_prefetch = 0 : i64, scratch_operands = 1 : i64, tpu.core_type = #tpu.core_type<tc>, window_params = [{transform_indices = @transform_0, window_bounds = array<i64: 1, 256, 8>}, {pipeline_mode = #tpu.pipeline_mode<synchronous>, transform_indices = @transform_1, window_bounds = array<i64: 1, 8>}, {pipeline_mode = #tpu.pipeline_mode<synchronous>, transform_indices = @transform_2, window_bounds = array<i64: 1, 8>}, {pipeline_mode = #tpu.pipeline_mode<synchronous>, transform_indices = @transform_3, window_bounds = array<i64: 9, 8, 8>}, {transform_indices = @transform_4, window_bounds = array<i64: 1, 256, 8>}, {transform_indices = @transform_5, window_bounds = array<i64: 1, 1, 8>}, {transform_indices = @transform_6, window_bounds = array<i64: 1, 1, 8>}]} {
    %c0 = arith.constant 0 : index
    %c0_0 = arith.constant 0 : index
    %c0_1 = arith.constant 0 : index
    %0 = vector.load %arg1[%c0, %c0_0, %c0_1] : memref<1x256x8xbf16, #tpu.memory_space<vmem>>, vector<1x256x8xbf16>
    %1 = vector.shape_cast %0 : vector<1x256x8xbf16> to vector<256x8xbf16>
    %2 = arith.extf %1 : vector<256x8xbf16> to vector<256x8xf32>
    %c0_2 = arith.constant 0 : index
    %c0_3 = arith.constant 0 : index
    %3 = vector.load %arg2[%c0_2, %c0_3] : memref<1x8xf32, #tpu.memory_space<vmem>>, vector<1x8xf32>
    %4 = vector.broadcast %3 : vector<1x8xf32> to vector<256x8xf32>
    %5 = arith.mulf %2, %4 : vector<256x8xf32>
    %c0_4 = arith.constant 0 : index
    %c0_5 = arith.constant 0 : index
    %6 = vector.load %arg3[%c0_4, %c0_5] : memref<1x8xf32, #tpu.memory_space<vmem>>, vector<1x8xf32>
    %7 = vector.broadcast %6 : vector<1x8xf32> to vector<256x8xf32>
    %8 = arith.addf %5, %7 : vector<256x8xf32>
    %cst = arith.constant 0.000000e+00 : f32
    %9 = vector.broadcast %cst : f32 to vector<256x8xf32>
    %10 = arith.maximumf %8, %9 : vector<256x8xf32>
    %cst_6 = arith.constant 0.000000e+00 : f32
    %11 = vector.broadcast %cst_6 : f32 to vector<17x8xf32>
    %c0_7 = arith.constant 0 : index
    %c0_8 = arith.constant 0 : index
    %12 = vector.load %arg8[%c0_7, %c0_8] : memref<290x8xf32, #tpu.memory_space<vmem>>, vector<17x8xf32>
    tpu.vector_store %arg8[%c0_7, %c0_8], %11 {strides = array<i32>} : memref<290x8xf32, #tpu.memory_space<vmem>>, vector<17x8xf32>,
    %c273 = arith.constant 273 : index
    %c0_9 = arith.constant 0 : index
    %13 = vector.load %arg8[%c273, %c0_9] : memref<290x8xf32, #tpu.memory_space<vmem>>, vector<17x8xf32>
    tpu.vector_store %arg8[%c273, %c0_9], %11 {strides = array<i32>} : memref<290x8xf32, #tpu.memory_space<vmem>>, vector<17x8xf32>,
    %c17 = arith.constant 17 : index
    %c0_10 = arith.constant 0 : index
    %14 = vector.load %arg8[%c17, %c0_10] : memref<290x8xf32, #tpu.memory_space<vmem>>, vector<256x8xf32>
    tpu.vector_store %arg8[%c17, %c0_10], %10 {strides = array<i32>} : memref<290x8xf32, #tpu.memory_space<vmem>>, vector<256x8xf32>,
    %15 = tpu.iota {dimensions = array<i32: 0>} : vector<256x1xi32>
    %c16_i32 = arith.constant 16 : i32
    %c0_i32 = arith.constant 0 : i32
    %16 = arith.cmpi eq, %c16_i32, %c0_i32 : i32
    %c1_i32 = arith.constant 1 : i32
    %17 = arith.select %16, %c1_i32, %c16_i32 : i32
    %18 = vector.broadcast %17 : i32 to vector<256x1xi32>
    %19 = arith.remsi %15, %18 : vector<256x1xi32>
    %c0_i32_11 = arith.constant 0 : i32
    %20 = vector.broadcast %c0_i32_11 : i32 to vector<256x1xi32>
    %21 = arith.cmpi ne, %19, %20 : vector<256x1xi32>
    %c0_i32_12 = arith.constant 0 : i32
    %22 = vector.broadcast %c0_i32_12 : i32 to vector<256x1xi32>
    %23 = arith.cmpi slt, %19, %22 : vector<256x1xi32>
    %c0_i32_13 = arith.constant 0 : i32
    %24 = arith.cmpi slt, %17, %c0_i32_13 : i32
    %25 = vector.broadcast %24 : i1 to vector<256x1xi1>
    %26 = vector.broadcast %25 : vector<256x1xi1> to vector<256x1xi1>
    %27 = arith.xori %23, %26 : vector<256x1xi1>
    %28 = arith.andi %27, %21 : vector<256x1xi1>
    %29 = vector.broadcast %17 : i32 to vector<256x1xi32>
    %30 = arith.addi %19, %29 : vector<256x1xi32>
    %31 = arith.select %28, %30, %19 : vector<256x1xi1>, vector<256x1xi32>
    %c0_i32_14 = arith.constant 0 : i32
    %32 = vector.broadcast %c0_i32_14 : i32 to vector<256x1xi32>
    %33 = arith.cmpi sgt, %31, %32 : vector<256x1xi32>
    %34 = arith.extui %33 : vector<256x1xi1> to vector<256x1xi32>
    %35 = arith.sitofp %34 : vector<256x1xi32> to vector<256x1xf32>
    %c15_i32 = arith.constant 15 : i32
    %36 = vector.broadcast %c15_i32 : i32 to vector<256x1xi32>
    %37 = arith.cmpi slt, %31, %36 : vector<256x1xi32>
    %38 = arith.extui %37 : vector<256x1xi1> to vector<256x1xi32>
    %39 = arith.sitofp %38 : vector<256x1xi32> to vector<256x1xf32>
    %c0_15 = arith.constant 0 : index
    %c0_16 = arith.constant 0 : index
    %40 = vector.load %arg8[%c0_15, %c0_16] : memref<290x8xf32, #tpu.memory_space<vmem>>, vector<256x8xf32>
    %41 = vector.broadcast %35 : vector<256x1xf32> to vector<256x8xf32>
    %42 = arith.mulf %40, %41 : vector<256x8xf32>
    %43 = arith.truncf %42 : vector<256x8xf32> to vector<256x8xbf16>
    %c0_17 = arith.constant 0 : index
    %c0_18 = arith.constant 0 : index
    %c0_19 = arith.constant 0 : index
    %44 = vector.load %arg4[%c0_17, %c0_18, %c0_19] : memref<9x8x8xbf16, #tpu.memory_space<vmem>>, vector<1x8x8xbf16>
    %45 = vector.shape_cast %44 : vector<1x8x8xbf16> to vector<8x8xbf16>
    %cst_20 = arith.constant dense<0.000000e+00> : vector<256x8xf32>
    %46 = tpu.matmul %43, %45, %cst_20 {dimension_numbers = #tpu.dot_dimension_numbers<[1], [0], [0], [1], [0, 0, 1, 1], [], []>} : vector<256x8xbf16>, vector<8x8xbf16>, vector<256x8xf32> -> vector<256x8xf32>
    %c1 = arith.constant 1 : index
    %c0_21 = arith.constant 0 : index
    %47 = vector.load %arg8[%c1, %c0_21] : memref<290x8xf32, #tpu.memory_space<vmem>>, vector<256x8xf32>
    %48 = arith.truncf %47 : vector<256x8xf32> to vector<256x8xbf16>
    %c1_22 = arith.constant 1 : index
    %c0_23 = arith.constant 0 : index
    %c0_24 = arith.constant 0 : index
    %49 = vector.load %arg4[%c1_22, %c0_23, %c0_24] : memref<9x8x8xbf16, #tpu.memory_space<vmem>>, vector<1x8x8xbf16>
    %50 = vector.shape_cast %49 : vector<1x8x8xbf16> to vector<8x8xbf16>
    %cst_25 = arith.constant dense<0.000000e+00> : vector<256x8xf32>
    %51 = tpu.matmul %48, %50, %cst_25 {dimension_numbers = #tpu.dot_dimension_numbers<[1], [0], [0], [1], [0, 0, 1, 1], [], []>} : vector<256x8xbf16>, vector<8x8xbf16>, vector<256x8xf32> -> vector<256x8xf32>
    %52 = arith.addf %46, %51 : vector<256x8xf32>
    %c2 = arith.constant 2 : index
    %c0_26 = arith.constant 0 : index
    %53 = vector.load %arg8[%c2, %c0_26] : memref<290x8xf32, #tpu.memory_space<vmem>>, vector<256x8xf32>
    %54 = vector.broadcast %39 : vector<256x1xf32> to vector<256x8xf32>
    %55 = arith.mulf %53, %54 : vector<256x8xf32>
    %56 = arith.truncf %55 : vector<256x8xf32> to vector<256x8xbf16>
    %c2_27 = arith.constant 2 : index
    %c0_28 = arith.constant 0 : index
    %c0_29 = arith.constant 0 : index
    %57 = vector.load %arg4[%c2_27, %c0_28, %c0_29] : memref<9x8x8xbf16, #tpu.memory_space<vmem>>, vector<1x8x8xbf16>
    %58 = vector.shape_cast %57 : vector<1x8x8xbf16> to vector<8x8xbf16>
    %cst_30 = arith.constant dense<0.000000e+00> : vector<256x8xf32>
    %59 = tpu.matmul %56, %58, %cst_30 {dimension_numbers = #tpu.dot_dimension_numbers<[1], [0], [0], [1], [0, 0, 1, 1], [], []>} : vector<256x8xbf16>, vector<8x8xbf16>, vector<256x8xf32> -> vector<256x8xf32>
    %60 = arith.addf %52, %59 : vector<256x8xf32>
    %c16 = arith.constant 16 : index
    %c0_31 = arith.constant 0 : index
    %61 = vector.load %arg8[%c16, %c0_31] : memref<290x8xf32, #tpu.memory_space<vmem>>, vector<256x8xf32>
    %62 = vector.broadcast %35 : vector<256x1xf32> to vector<256x8xf32>
    %63 = arith.mulf %61, %62 : vector<256x8xf32>
    %64 = arith.truncf %63 : vector<256x8xf32> to vector<256x8xbf16>
    %c3 = arith.constant 3 : index
    %c0_32 = arith.constant 0 : index
    %c0_33 = arith.constant 0 : index
    %65 = vector.load %arg4[%c3, %c0_32, %c0_33] : memref<9x8x8xbf16, #tpu.memory_space<vmem>>, vector<1x8x8xbf16>
    %66 = vector.shape_cast %65 : vector<1x8x8xbf16> to vector<8x8xbf16>
    %cst_34 = arith.constant dense<0.000000e+00> : vector<256x8xf32>
    %67 = tpu.matmul %64, %66, %cst_34 {dimension_numbers = #tpu.dot_dimension_numbers<[1], [0], [0], [1], [0, 0, 1, 1], [], []>} : vector<256x8xbf16>, vector<8x8xbf16>, vector<256x8xf32> -> vector<256x8xf32>
    %68 = arith.addf %60, %67 : vector<256x8xf32>
    %c17_35 = arith.constant 17 : index
    %c0_36 = arith.constant 0 : index
    %69 = vector.load %arg8[%c17_35, %c0_36] : memref<290x8xf32, #tpu.memory_space<vmem>>, vector<256x8xf32>
    %70 = arith.truncf %69 : vector<256x8xf32> to vector<256x8xbf16>
    %c4 = arith.constant 4 : index
    %c0_37 = arith.constant 0 : index
    %c0_38 = arith.constant 0 : index
    %71 = vector.load %arg4[%c4, %c0_37, %c0_38] : memref<9x8x8xbf16, #tpu.memory_space<vmem>>, vector<1x8x8xbf16>
    %72 = vector.shape_cast %71 : vector<1x8x8xbf16> to vector<8x8xbf16>
    %cst_39 = arith.constant dense<0.000000e+00> : vector<256x8xf32>
    %73 = tpu.matmul %70, %72, %cst_39 {dimension_numbers = #tpu.dot_dimension_numbers<[1], [0], [0], [1], [0, 0, 1, 1], [], []>} : vector<256x8xbf16>, vector<8x8xbf16>, vector<256x8xf32> -> vector<256x8xf32>
    %74 = arith.addf %68, %73 : vector<256x8xf32>
    %c18 = arith.constant 18 : index
    %c0_40 = arith.constant 0 : index
    %75 = vector.load %arg8[%c18, %c0_40] : memref<290x8xf32, #tpu.memory_space<vmem>>, vector<256x8xf32>
    %76 = vector.broadcast %39 : vector<256x1xf32> to vector<256x8xf32>
    %77 = arith.mulf %75, %76 : vector<256x8xf32>
    %78 = arith.truncf %77 : vector<256x8xf32> to vector<256x8xbf16>
    %c5 = arith.constant 5 : index
    %c0_41 = arith.constant 0 : index
    %c0_42 = arith.constant 0 : index
    %79 = vector.load %arg4[%c5, %c0_41, %c0_42] : memref<9x8x8xbf16, #tpu.memory_space<vmem>>, vector<1x8x8xbf16>
    %80 = vector.shape_cast %79 : vector<1x8x8xbf16> to vector<8x8xbf16>
    %cst_43 = arith.constant dense<0.000000e+00> : vector<256x8xf32>
    %81 = tpu.matmul %78, %80, %cst_43 {dimension_numbers = #tpu.dot_dimension_numbers<[1], [0], [0], [1], [0, 0, 1, 1], [], []>} : vector<256x8xbf16>, vector<8x8xbf16>, vector<256x8xf32> -> vector<256x8xf32>
    %82 = arith.addf %74, %81 : vector<256x8xf32>
    %c32 = arith.constant 32 : index
    %c0_44 = arith.constant 0 : index
    %83 = vector.load %arg8[%c32, %c0_44] : memref<290x8xf32, #tpu.memory_space<vmem>>, vector<256x8xf32>
    %84 = vector.broadcast %35 : vector<256x1xf32> to vector<256x8xf32>
    %85 = arith.mulf %83, %84 : vector<256x8xf32>
    %86 = arith.truncf %85 : vector<256x8xf32> to vector<256x8xbf16>
    %c6 = arith.constant 6 : index
    %c0_45 = arith.constant 0 : index
    %c0_46 = arith.constant 0 : index
    %87 = vector.load %arg4[%c6, %c0_45, %c0_46] : memref<9x8x8xbf16, #tpu.memory_space<vmem>>, vector<1x8x8xbf16>
    %88 = vector.shape_cast %87 : vector<1x8x8xbf16> to vector<8x8xbf16>
    %cst_47 = arith.constant dense<0.000000e+00> : vector<256x8xf32>
    %89 = tpu.matmul %86, %88, %cst_47 {dimension_numbers = #tpu.dot_dimension_numbers<[1], [0], [0], [1], [0, 0, 1, 1], [], []>} : vector<256x8xbf16>, vector<8x8xbf16>, vector<256x8xf32> -> vector<256x8xf32>
    %90 = arith.addf %82, %89 : vector<256x8xf32>
    %c33 = arith.constant 33 : index
    %c0_48 = arith.constant 0 : index
    %91 = vector.load %arg8[%c33, %c0_48] : memref<290x8xf32, #tpu.memory_space<vmem>>, vector<256x8xf32>
    %92 = arith.truncf %91 : vector<256x8xf32> to vector<256x8xbf16>
    %c7 = arith.constant 7 : index
    %c0_49 = arith.constant 0 : index
    %c0_50 = arith.constant 0 : index
    %93 = vector.load %arg4[%c7, %c0_49, %c0_50] : memref<9x8x8xbf16, #tpu.memory_space<vmem>>, vector<1x8x8xbf16>
    %94 = vector.shape_cast %93 : vector<1x8x8xbf16> to vector<8x8xbf16>
    %cst_51 = arith.constant dense<0.000000e+00> : vector<256x8xf32>
    %95 = tpu.matmul %92, %94, %cst_51 {dimension_numbers = #tpu.dot_dimension_numbers<[1], [0], [0], [1], [0, 0, 1, 1], [], []>} : vector<256x8xbf16>, vector<8x8xbf16>, vector<256x8xf32> -> vector<256x8xf32>
    %96 = arith.addf %90, %95 : vector<256x8xf32>
    %c34 = arith.constant 34 : index
    %c0_52 = arith.constant 0 : index
    %97 = vector.load %arg8[%c34, %c0_52] : memref<290x8xf32, #tpu.memory_space<vmem>>, vector<256x8xf32>
    %98 = vector.broadcast %39 : vector<256x1xf32> to vector<256x8xf32>
    %99 = arith.mulf %97, %98 : vector<256x8xf32>
    %100 = arith.truncf %99 : vector<256x8xf32> to vector<256x8xbf16>
    %c8 = arith.constant 8 : index
    %c0_53 = arith.constant 0 : index
    %c0_54 = arith.constant 0 : index
    %101 = vector.load %arg4[%c8, %c0_53, %c0_54] : memref<9x8x8xbf16, #tpu.memory_space<vmem>>, vector<1x8x8xbf16>
    %102 = vector.shape_cast %101 : vector<1x8x8xbf16> to vector<8x8xbf16>
    %cst_55 = arith.constant dense<0.000000e+00> : vector<256x8xf32>
    %103 = tpu.matmul %100, %102, %cst_55 {dimension_numbers = #tpu.dot_dimension_numbers<[1], [0], [0], [1], [0, 0, 1, 1], [], []>} : vector<256x8xbf16>, vector<8x8xbf16>, vector<256x8xf32> -> vector<256x8xf32>
    %104 = arith.addf %96, %103 : vector<256x8xf32>
    %105 = arith.truncf %104 : vector<256x8xf32> to vector<256x8xbf16>
    %c0_56 = arith.constant 0 : index
    %c0_57 = arith.constant 0 : index
    %c0_58 = arith.constant 0 : index
    %106 = vector.load %arg5[%c0_56, %c0_57, %c0_58] : memref<1x256x8xbf16, #tpu.memory_space<vmem>>, vector<1x256x8xbf16>
    %107 = vector.shape_cast %106 : vector<1x256x8xbf16> to vector<256x8xbf16>
    %108 = vector.shape_cast %105 : vector<256x8xbf16> to vector<1x256x8xbf16>
    tpu.vector_store %arg5[%c0_56, %c0_57, %c0_58], %108 {strides = array<i32>} : memref<1x256x8xbf16, #tpu.memory_space<vmem>>, vector<1x256x8xbf16>,
    %cst_59 = arith.constant dense<0.000000e+00> : vector<8xf32>
    %109 = vector.multi_reduction <add>, %104, %cst_59 [0] : vector<256x8xf32> to vector<8xf32>
    %110 = vector.shape_cast %109 : vector<8xf32> to vector<1x8xf32>
    %c0_60 = arith.constant 0 : index
    %c0_61 = arith.constant 0 : index
    %c0_62 = arith.constant 0 : index
    %111 = vector.load %arg6[%c0_60, %c0_61, %c0_62] : memref<1x1x8xf32, #tpu.memory_space<vmem>>, vector<1x1x8xf32>
    %112 = vector.shape_cast %111 : vector<1x1x8xf32> to vector<1x8xf32>
    %113 = vector.shape_cast %110 : vector<1x8xf32> to vector<1x1x8xf32>
    tpu.vector_store %arg6[%c0_60, %c0_61, %c0_62], %113 {strides = array<i32>} : memref<1x1x8xf32, #tpu.memory_space<vmem>>, vector<1x1x8xf32>,
    %114 = arith.mulf %104, %104 : vector<256x8xf32>
    %cst_63 = arith.constant dense<0.000000e+00> : vector<8xf32>
    %115 = vector.multi_reduction <add>, %114, %cst_63 [0] : vector<256x8xf32> to vector<8xf32>
    %116 = vector.shape_cast %115 : vector<8xf32> to vector<1x8xf32>
    %c0_64 = arith.constant 0 : index
    %c0_65 = arith.constant 0 : index
    %c0_66 = arith.constant 0 : index
    %117 = vector.load %arg7[%c0_64, %c0_65, %c0_66] : memref<1x1x8xf32, #tpu.memory_space<vmem>>, vector<1x1x8xf32>
    %118 = vector.shape_cast %117 : vector<1x1x8xf32> to vector<1x8xf32>
    %119 = vector.shape_cast %116 : vector<1x8xf32> to vector<1x1x8xf32>
    tpu.vector_store %arg7[%c0_64, %c0_65, %c0_66], %119 {strides = array<i32>} : memref<1x1x8xf32, #tpu.memory_space<vmem>>, vector<1x1x8xf32>,
    return
  }
  func.func @transform_0(%arg0: i32) -> (i32, i32, i32) {
    %c0_i32 = arith.constant 0 : i32
    %c0_i32_0 = arith.constant 0 : i32
    %c0_i32_1 = arith.constant 0 : i32
    return %arg0, %c0_i32, %c0_i32_0 : i32, i32, i32
  }
  func.func @transform_1(%arg0: i32) -> (i32, i32) {
    %c0_i32 = arith.constant 0 : i32
    %c0_i32_0 = arith.constant 0 : i32
    %c0_i32_1 = arith.constant 0 : i32
    return %c0_i32, %c0_i32_0 : i32, i32
  }
  func.func @transform_2(%arg0: i32) -> (i32, i32) {
    %c0_i32 = arith.constant 0 : i32
    %c0_i32_0 = arith.constant 0 : i32
    %c0_i32_1 = arith.constant 0 : i32
    return %c0_i32, %c0_i32_0 : i32, i32
  }
  func.func @transform_3(%arg0: i32) -> (i32, i32, i32) {
    %c0_i32 = arith.constant 0 : i32
    %c0_i32_0 = arith.constant 0 : i32
    %c0_i32_1 = arith.constant 0 : i32
    %c0_i32_2 = arith.constant 0 : i32
    return %c0_i32, %c0_i32_0, %c0_i32_1 : i32, i32, i32
  }
  func.func @transform_4(%arg0: i32) -> (i32, i32, i32) {
    %c0_i32 = arith.constant 0 : i32
    %c0_i32_0 = arith.constant 0 : i32
    %c0_i32_1 = arith.constant 0 : i32
    return %arg0, %c0_i32, %c0_i32_0 : i32, i32, i32
  }
  func.func @transform_5(%arg0: i32) -> (i32, i32, i32) {
    %c0_i32 = arith.constant 0 : i32
    %c0_i32_0 = arith.constant 0 : i32
    %c0_i32_1 = arith.constant 0 : i32
    return %arg0, %c0_i32, %c0_i32_0 : i32, i32, i32
  }
  func.func @transform_6(%arg0: i32) -> (i32, i32, i32) {
    %c0_i32 = arith.constant 0 : i32
    %c0_i32_0 = arith.constant 0 : i32
    %c0_i32_1 = arith.constant 0 : i32
    return %arg0, %c0_i32, %c0_i32_0 : i32, i32, i32
  }
}

module attributes {stable_mosaic.version = 11 : i64} {
  func.func @bn_relu_kernel(%arg0: i32, %arg1: memref<1x16x128xbf16, #tpu.memory_space<vmem>>, %arg2: memref<1x128xf32, #tpu.memory_space<vmem>>, %arg3: memref<1x128xf32, #tpu.memory_space<vmem>>, %arg4: memref<1x16x128xf32, #tpu.memory_space<vmem>>) attributes {dimension_semantics = [#tpu.dimension_semantics<parallel>], iteration_bounds = array<i64: 2>, scalar_prefetch = 0 : i64, scratch_operands = 0 : i64, tpu.core_type = #tpu.core_type<tc>, window_params = [{transform_indices = @transform_0, window_bounds = array<i64: 1, 16, 128>}, {pipeline_mode = #tpu.pipeline_mode<synchronous>, transform_indices = @transform_1, window_bounds = array<i64: 1, 128>}, {pipeline_mode = #tpu.pipeline_mode<synchronous>, transform_indices = @transform_2, window_bounds = array<i64: 1, 128>}, {transform_indices = @transform_3, window_bounds = array<i64: 1, 16, 128>}]} {
    %c0 = arith.constant 0 : index
    %c0_0 = arith.constant 0 : index
    %c0_1 = arith.constant 0 : index
    %0 = vector.load %arg1[%c0, %c0_0, %c0_1] : memref<1x16x128xbf16, #tpu.memory_space<vmem>>, vector<1x16x128xbf16>
    %1 = vector.shape_cast %0 : vector<1x16x128xbf16> to vector<16x128xbf16>
    %2 = arith.extf %1 : vector<16x128xbf16> to vector<16x128xf32>
    %c0_2 = arith.constant 0 : index
    %c0_3 = arith.constant 0 : index
    %3 = vector.load %arg2[%c0_2, %c0_3] : memref<1x128xf32, #tpu.memory_space<vmem>>, vector<1x128xf32>
    %4 = vector.broadcast %3 : vector<1x128xf32> to vector<16x128xf32>
    %5 = arith.mulf %2, %4 : vector<16x128xf32>
    %c0_4 = arith.constant 0 : index
    %c0_5 = arith.constant 0 : index
    %6 = vector.load %arg3[%c0_4, %c0_5] : memref<1x128xf32, #tpu.memory_space<vmem>>, vector<1x128xf32>
    %7 = vector.broadcast %6 : vector<1x128xf32> to vector<16x128xf32>
    %8 = arith.addf %5, %7 : vector<16x128xf32>
    %cst = arith.constant 0.000000e+00 : f32
    %9 = vector.broadcast %cst : f32 to vector<16x128xf32>
    %10 = arith.maximumf %8, %9 : vector<16x128xf32>
    %c0_6 = arith.constant 0 : index
    %c0_7 = arith.constant 0 : index
    %c0_8 = arith.constant 0 : index
    %11 = vector.load %arg4[%c0_6, %c0_7, %c0_8] : memref<1x16x128xf32, #tpu.memory_space<vmem>>, vector<1x16x128xf32>
    %12 = vector.shape_cast %11 : vector<1x16x128xf32> to vector<16x128xf32>
    %13 = vector.shape_cast %10 : vector<16x128xf32> to vector<1x16x128xf32>
    tpu.vector_store %arg4[%c0_6, %c0_7, %c0_8], %13 {strides = array<i32>} : memref<1x16x128xf32, #tpu.memory_space<vmem>>, vector<1x16x128xf32>,
    return
  }
  func.func @transform_0(%arg0: i32) -> (i32, i32, i32) {
    %c0_i32 = arith.constant 0 : i32
    %c0_i32_0 = arith.constant 0 : i32
    %c0_i32_1 = arith.constant 0 : i32
    return %arg0, %c0_i32, %c0_i32_0 : i32, i32, i32
  }
  func.func @transform_1(%arg0: i32) -> (i32, i32) {
    %c0_i32 = arith.constant 0 : i32
    %c0_i32_0 = arith.constant 0 : i32
    %c0_i32_1 = arith.constant 0 : i32
    return %c0_i32, %c0_i32_0 : i32, i32
  }
  func.func @transform_2(%arg0: i32) -> (i32, i32) {
    %c0_i32 = arith.constant 0 : i32
    %c0_i32_0 = arith.constant 0 : i32
    %c0_i32_1 = arith.constant 0 : i32
    return %c0_i32, %c0_i32_0 : i32, i32
  }
  func.func @transform_3(%arg0: i32) -> (i32, i32, i32) {
    %c0_i32 = arith.constant 0 : i32
    %c0_i32_0 = arith.constant 0 : i32
    %c0_i32_1 = arith.constant 0 : i32
    return %arg0, %c0_i32, %c0_i32_0 : i32, i32, i32
  }
}

</mosaic_0001>

<bundles_post_ra>
// kernel: conv_block.5
= control target key start
LH: loop header
LB: loop body
LE: loop exit
PB: predicated region body
PF: predicated region fallthrough
CT: control target
= control target key end

     0   :  { %s307_s12 = smov 0   ;;  %s324_s0 = inlined_call_operand.vmem [shape: bf16[2,16,128], index: 0, kind: input, shape index: {}]   ;;  %s325_s1 = inlined_call_operand.vmem [shape: f32[1,128], index: 1, kind: input, shape index: {}]   ;;  %s326_s2 = inlined_call_operand.vmem [shape: f32[1,128], index: 2, kind: input, shape index: {}]   ;;  %s327_s3 = inlined_call_operand.vmem [shape: f32[2,16,128], index: 3, kind: output, shape index: {}]  }
   0x1 LB: > { %s252_s13 = sadd.s32 4294967295, %s285_s12   ;;  %p256_p0 = scmp.ge.s32.totalorder %s285_s12, 1  ;;  %s285_s12 = sphi %s307_s12, %s13_s12  }
   0x2   : > { %p137_p1 = scmp.lt.s32.totalorder %s285_s12, 3 }
   0x4   : > { %p138_p2 = pnand %p256_p0, %p137_p1 }
   0x5   : > { %p161_p3 = scmp.lt.s32.totalorder (!%p138_p2), %s252_s13, 1  ;;  %v261_v1 = vld [vmem:[%s325_s1] ss:$0 sm:$0xff] (!%p138_p2) }
   0x6   : > { %141 = sbr.rel (%p138_p2) target bundleno = 26 (0x1a), region = 32  ;;  %v262_v4 = vld [vmem:[%s326_s2] ss:$0 sm:$0xff] (!%p138_p2) }
   0xd   : > { %s329_s13 = smov (!%p161_p3, %s252_s13), 1 }
   0xe   : > { %s265_s14 = sshll.u32 %s329_s13, 3  ;;  %s266_s22 = sshll.u32 %s329_s13, 4 }
   0xf   : > { %s165_s17 = scalar_lea.vmem %s324_s0, %s265_s14  ;;  %s170_s25 = scalar_lea.vmem %s327_s3, %s266_s22 }
  0x10   : > { %v268_v0 = vld [vmem:[%s165_s17] sm:$0xff]  }
  0x11   : > { %v269_v2 = vunpack.c.l.bf16 %v268_v0  ;;  %v270_v3 = vunpack.c.h.bf16 %v268_v0 }
  0x13   : > { %v182_v5 = vmul.f32 %v269_v2, %v261_v1  ;;  %v183_v6 = vmul.f32 %v270_v3, %v261_v1 }
  0x15   : > { %v191_v7 = vadd.f32 %v262_v4, %v182_v5  ;;  %v192_v8 = vadd.f32 %v262_v4, %v183_v6 }
  0x17   : > { %v193_v9 = vmax.f32 %v191_v7, 0.0  ;;  %v194_v10 = vmax.f32 %v192_v8, 0.0 }
  0x19   : > { %195 = vst [vmem:[%s170_s25] sm:$0xff] %v193_v9  ;;  %196 = vst [vmem:[%s170_s25 + $0x8] sm:$0xff] %v194_v10 }
  0x1a PF: > { %s13_s12 = sadd.s32 1, %s285_s12  }
  0x1b   : > { %p10_p4 = scmp.ge.s32.totalorder %s13_s12, 4  }
  0x1d   :  { %12 = sbr.rel (!%p10_p4) target bundleno = 1 (0x1), region = 62 }

// kernel: conv_block.3
= control target key start
LH: loop header
LB: loop body
LE: loop exit
PB: predicated region body
PF: predicated region fallthrough
CT: control target
= control target key end

     0   :  { %s5254_s15 = smov 0   ;;  %s6502_s0 = inlined_call_operand.vmem [shape: bf16[2,256,4], index: 0, kind: input, shape index: {}]   ;;  %s6503_s1 = inlined_call_operand.vmem [shape: bf16[9,4,8], index: 1, kind: input, shape index: {}]   ;;  %s6504_s2 = inlined_call_operand.vmem [shape: bf16[2,256,8], index: 2, kind: output, shape index: {0}]   ;;  %s6505_s3 = inlined_call_operand.vmem [shape: f32[2,1,8], index: 3, kind: output, shape index: {1}]   ;;  %s6506_s4 = inlined_call_operand.vmem [shape: f32[2,1,8], index: 4, kind: output, shape index: {2}]  }
   0x1 LB: > { %s4143_s16 = sadd.s32 4294967295, %s5226_s15   ;;  %p4147_p0 = scmp.ge.s32.totalorder %s5226_s15, 1  ;;  %s5226_s15 = sphi %s5254_s15, %s15_s15  }
   0x2   : > { %p167_p1 = scmp.lt.s32.totalorder %s5226_s15, 3 }
   0x4   : > { %p168_p2 = pnand %p4147_p0, %p167_p1 }
   0x6   : > { %171 = sbr.rel (%p168_p2) target bundleno = 552 (0x228), region = 28 }
   0xd   : > { %v4184_v0 = vld [vmem:[%s6503_s1 + $0x2] sm:$0x3]  ;;  %vm1108_vm0 = vcmask 1041408   ;;  %v4251_v1 = vld [vmem:[%s6503_s1 + $0x8] sm:$0x3]  ;;  %vm280_vm1 = vcmask 31744   ;;  %v320_v49 = vlaneseq }
   0xe   : > { %5200 = vmatprep.subr.msk.bf16.mxu1 %vm1108_vm0, %v4184_v0  ;;  %5204 = vmatprep.subr.msk.bf16.mxu0 %vm1108_vm0, %v4251_v1  ;;  %v1110_v2 = vsel %vm1108_vm0, %v4184_v0, 0  ;;  %v5272_v3 = vsel %vm1108_vm0, %v4251_v1, 0  ;;  %vm283_vm2 = vcmask 24576   ;;  %p199_p3 = scmp.lt.s32.totalorder %s4143_s16, 1  ;;  %v6507_v4 = vmov 0.0  }
   0xf   : > { %6560 = vst [vmem:[#allocation3_spill] sm:$0xff] %v5272_v3  ;;  %4637 = vmatpush3.bf16.msra.mxu1 %v1110_v2  ;;  %4773 = vmatpush3.bf16.msra.mxu0 %v5272_v3  ;;  %281 = vst.msk [vmem:[#allocation2] sm:$0xff] %vm280_vm1, %v6507_v4  ;;  %v5288_v5 = vld [vmem:[%s6503_s1] sm:$0x3]  ;;  %v5293_v6 = vld [vmem:[%s6503_s1 + $0xa] sm:$0x3] }
  0x10   : > { %282 = vst.msk [vmem:[#allocation2 + $0x8] sm:$0xff] %vm280_vm1, %v6507_v4  ;;  %285 = vst.msk [vmem:[#allocation2 + $0x111] sm:$0xff] %vm280_vm1, %v6507_v4  ;;  %s6709_s16 = smov (!%p199_p3, %s4143_s16), 1  ;;  %5201 = vmatprep.subr.msk.bf16.mxu1 %vm1108_vm0, %v5288_v5  ;;  %5206 = vmatprep.subr.msk.bf16.mxu0 %vm1108_vm0, %v5293_v6  ;;  %v1322_v58 = vsel %vm1108_vm0, %v5288_v5, 0  ;;  %v2562_v1 = vsel %vm1108_vm0, %v5293_v6, 0  ;;  %v5359_v5 = vshrl.u32 %v320_v49, 7 }
  0x11   : > { %284 = vst.msk [vmem:[#allocation2 + $0x10] sm:$0x1] %vm283_vm2, %v6507_v4  ;;  %287 = vst.msk [vmem:[#allocation2 + $0x121] sm:$0x1] %vm283_vm2, %v6507_v4  ;;  %s4370_s25 = sshll.u32 %s6709_s16, 7  ;;  %s211_s22 = scalar_lea.vmem %s6505_s3, %s6709_s16 }
  0x12   : > { %286 = vst.msk [vmem:[#allocation2 + $0x119] sm:$0xff] %vm280_vm1, %v6507_v4  ;;  %s5307_s28 = scalar_lea.vmem %s6502_s0, %s4370_s25  ;;  %v5372_v6 = vld [vmem:[%s6503_s1 + $0x4] sm:$0x3]  ;;  %s6353_s19 = scalar_lea.vmem %s6504_s2, %s4370_s25 }
  0x13   : > { %v4405_v7 = vld [vmem:[%s5307_s28] sm:$0xff]   ;;  %v4468_v8 = vld [vmem:[%s5307_s28 + $0x8] sm:$0xff]   ;;  %v4469_v9 = vld [vmem:[%s5307_s28 + $0x10] sm:$0xff]   ;;  %s214_s25 = scalar_lea.vmem %s6506_s4, %s6709_s16 }
  0x14   : > { %v4406_v10 = vunpack.c.l.bf16 %v4405_v7  ;;  %v4407_v11 = vunpack.c.h.bf16 %v4405_v7  ;;  %v4410_v12 = vunpack.c.l.bf16 %v4468_v8  ;;  %v4411_v13 = vunpack.c.h.bf16 %v4468_v8  ;;  %v4470_v14 = vld [vmem:[%s5307_s28 + $0x18] sm:$0xff]   ;;  %v4471_v15 = vld [vmem:[%s5307_s28 + $0x20] sm:$0xff]   ;;  %v4472_v16 = vld [vmem:[%s5307_s28 + $0x28] sm:$0xff]  }
  0x15   : > { %v4414_v19 = vunpack.c.l.bf16 %v4469_v9  ;;  %v4415_v20 = vunpack.c.h.bf16 %v4469_v9  ;;  %v4418_v21 = vunpack.c.l.bf16 %v4470_v14  ;;  %v4419_v22 = vunpack.c.h.bf16 %v4470_v14  ;;  %v4473_v23 = vld [vmem:[%s5307_s28 + $0x30] sm:$0xff]   ;;  %v4474_v28 = vld [vmem:[%s5307_s28 + $0x38] sm:$0xff]   ;;  %v4475_v29 = vld [vmem:[%s5307_s28 + $0x40] sm:$0xff]  }
  0x16   : > { %288 = vst.msk [vmem:[#allocation2 + $0x11] sm:$0xff] %vm280_vm1, %v4406_v10  ;;  %289 = vst.msk [vmem:[#allocation2 + $0x19] sm:$0xff] %vm280_vm1, %v4407_v11  ;;  %v4422_v25 = vunpack.c.l.bf16 %v4471_v15  ;;  %v4423_v26 = vunpack.c.h.bf16 %v4471_v15  ;;  %v4426_v27 = vunpack.c.l.bf16 %v4472_v16  ;;  %v4476_v30 = vld [vmem:[%s5307_s28 + $0x48] sm:$0xff]   ;;  %v4427_v31 = vunpack.c.h.bf16 %v4472_v16  ;;  %v4477_v35 = vld [vmem:[%s5307_s28 + $0x50] sm:$0xff]  }
  0x17   : > { %v1010_v17 = vld [vmem:[#allocation2 + $0x1] sm:$0xff]  ;;  %290 = vst.msk [vmem:[#allocation2 + $0x21] sm:$0xff] %vm280_vm1, %v4410_v12  ;;  %291 = vst.msk [vmem:[#allocation2 + $0x29] sm:$0xff] %vm280_vm1, %v4411_v13  ;;  %v4430_v32 = vunpack.c.l.bf16 %v4473_v23  ;;  %v4431_v33 = vunpack.c.h.bf16 %v4473_v23  ;;  %v4434_v34 = vunpack.c.l.bf16 %v4474_v28  ;;  %v4435_v36 = vunpack.c.h.bf16 %v4474_v28  ;;  %v4478_v39 = vld [vmem:[%s5307_s28 + $0x58] sm:$0xff]  }
  0x18   : > { %v1011_v18 = vld [vmem:[#allocation2 + $0x9] sm:$0xff]  ;;  %292 = vst.msk [vmem:[#allocation2 + $0x31] sm:$0xff] %vm280_vm1, %v4414_v19  ;;  %293 = vst.msk [vmem:[#allocation2 + $0x39] sm:$0xff] %vm280_vm1, %v4415_v20  ;;  %v4438_v37 = vunpack.c.l.bf16 %v4475_v29  ;;  %v4439_v38 = vunpack.c.h.bf16 %v4475_v29  ;;  %v4442_v40 = vunpack.c.l.bf16 %v4476_v30  ;;  %v4443_v41 = vunpack.c.h.bf16 %v4476_v30  ;;  %v4479_v42 = vld [vmem:[%s5307_s28 + $0x60] sm:$0xff]  }
  0x19   : > { %v1042_v24 = vpack.c.bf16 %v1011_v18, %v1010_v17  ;;  %294 = vst.msk [vmem:[#allocation2 + $0x41] sm:$0xff] %vm280_vm1, %v4418_v21  ;;  %295 = vst.msk [vmem:[#allocation2 + $0x49] sm:$0xff] %vm280_vm1, %v4419_v22  ;;  %v4446_v43 = vunpack.c.l.bf16 %v4477_v35  ;;  %v4447_v44 = vunpack.c.h.bf16 %v4477_v35  ;;  %v4480_v45 = vld [vmem:[%s5307_s28 + $0x68] sm:$0xff]   ;;  %v4450_v46 = vunpack.c.l.bf16 %v4478_v39  ;;  %v4481_v48 = vld [vmem:[%s5307_s28 + $0x70] sm:$0xff]  }
  0x1a   : > { %296 = vst.msk [vmem:[#allocation2 + $0x51] sm:$0xff] %vm280_vm1, %v4422_v25  ;;  %297 = vst.msk [vmem:[#allocation2 + $0x59] sm:$0xff] %vm280_vm1, %v4423_v26  ;;  %v4451_v47 = vunpack.c.h.bf16 %v4478_v39  ;;  %v4454_v50 = vunpack.c.l.bf16 %v4479_v42  ;;  %v4455_v51 = vunpack.c.h.bf16 %v4479_v42  ;;  %v4458_v55 = vunpack.c.l.bf16 %v4480_v45  ;;  %v5364_v7 = vld [vmem:[%s6503_s1 + $0xc] sm:$0x3] }
  0x1b   : > { %4638 = vmatprep.mubr.msk.bf16.mxu1 %vm280_vm1, %v1042_v24  ;;  %298 = vst.msk [vmem:[#allocation2 + $0x61] sm:$0xff] %vm280_vm1, %v4426_v27  ;;  %299 = vst.msk [vmem:[#allocation2 + $0x69] sm:$0xff] %vm280_vm1, %v4427_v31  ;;  %v4459_v56 = vunpack.c.h.bf16 %v4480_v45  ;;  %v4462_v62 = vunpack.c.l.bf16 %v4481_v48  ;;  %v4463_v63 = vunpack.c.h.bf16 %v4481_v48  ;;  %v322_v12 = vadd.s32 8, %v5359_v5 }
  0x1c   : > { %300 = vst.msk [vmem:[#allocation2 + $0x71] sm:$0xff] %vm280_vm1, %v4430_v32  ;;  %301 = vst.msk [vmem:[#allocation2 + $0x79] sm:$0xff] %vm280_vm1, %v4431_v33  ;;  %v324_v20 = vadd.s32 24, %v5359_v5  ;;  %v326_v21 = vadd.s32 40, %v5359_v5  ;;  %v328_v32 = vadd.s32 56, %v5359_v5  ;;  %v330_v33 = vadd.s32 72, %v5359_v5 }
  0x1d   : > { %302 = vst.msk [vmem:[#allocation2 + $0x81] sm:$0xff] %vm280_vm1, %v4434_v34  ;;  %303 = vst.msk [vmem:[#allocation2 + $0x89] sm:$0xff] %vm280_vm1, %v4435_v36  ;;  %v1012_v52 = vld [vmem:[#allocation2 + $0x11] sm:$0xff]  ;;  %v1013_v53 = vld [vmem:[#allocation2 + $0x19] sm:$0xff]  ;;  %v364_v15 = vand.u32 15, %v322_v12 }
  0x1e   : > { %304 = vst.msk [vmem:[#allocation2 + $0x91] sm:$0xff] %vm280_vm1, %v4438_v37  ;;  %305 = vst.msk [vmem:[#allocation2 + $0x99] sm:$0xff] %vm280_vm1, %v4439_v38  ;;  %v2139_v54 = vld [vmem:[#allocation2 + $0x21] sm:$0xff]  ;;  %v1043_v57 = vpack.c.bf16 %v1013_v53, %v1012_v52  ;;  %v2140_v59 = vld [vmem:[#allocation2 + $0x29] sm:$0xff]  ;;  %v378_v26 = vand.u32 15, %v324_v20  ;;  %v392_v27 = vand.u32 15, %v326_v21 }
  0x1f   : > { %306 = vst.msk [vmem:[#allocation2 + $0xa1] sm:$0xff] %vm280_vm1, %v4442_v40  ;;  %307 = vst.msk [vmem:[#allocation2 + $0xa9] sm:$0xff] %vm280_vm1, %v4443_v41  ;;  %v1016_v60 = vld [vmem:[#allocation2 + $0x31] sm:$0xff]  ;;  %v1017_v61 = vld [vmem:[#allocation2 + $0x39] sm:$0xff]  ;;  %v2170_v0 = vpack.c.bf16 %v2140_v59, %v2139_v54  ;;  %vm834_vm3 = vcmp.lt.s32.totalorder %v364_v15, 15  ;;  %v406_v40 = vand.u32 15, %v328_v32 }
  0x20   : > { %308 = vst.msk [vmem:[#allocation2 + $0xb1] sm:$0xff] %vm280_vm1, %v4446_v43  ;;  %309 = vst.msk [vmem:[#allocation2 + $0xb9] sm:$0xff] %vm280_vm1, %v4447_v44  ;;  %v1045_v2 = vpack.c.bf16 %v1017_v61, %v1016_v60  ;;  %4639 = vmatmul.mubr.msk.bf16.vlgmr.msra.gmra.mrb[0].mxu1 %vm280_vm1, %v1043_v57  ;;  %4774 = vmatprep.mubr.msk.bf16.mxu0 %vm280_vm1, %v1043_v57  ;;  %v2143_v8 = vld [vmem:[#allocation2 + $0x41] sm:$0xff]  ;;  %v2144_v9 = vld [vmem:[#allocation2 + $0x49] sm:$0xff]  ;;  %v5388_v24 = vsel %vm834_vm3, 1.0, %v6507_v4  ;;  %vm836_vm4 = vcmp.lt.s32.totalorder %v378_v26, 15 }
  0x21   : > { %310 = vst.msk [vmem:[#allocation2 + $0xc1] sm:$0xff] %vm280_vm1, %v4450_v46  ;;  %311 = vst.msk [vmem:[#allocation2 + $0xc9] sm:$0xff] %vm280_vm1, %v4451_v47  ;;  %4671 = vmatpush3.bf16.msra.mxu1 %v1322_v58  ;;  %4775 = vmatmul.mubr.msk.bf16.vlgmr.msra.gmra.mrb[0].mxu0 %vm280_vm1, %v2170_v0  ;;  %v1020_v10 = vld [vmem:[#allocation2 + $0x51] sm:$0xff]  ;;  %v1021_v11 = vld [vmem:[#allocation2 + $0x59] sm:$0xff]  ;;  %v2172_v13 = vpack.c.bf16 %v2144_v9, %v2143_v8  ;;  %vm838_vm5 = vcmp.lt.s32.totalorder %v392_v27, 15  ;;  %v5404_v36 = vsel %vm836_vm4, 1.0, %v6507_v4 }
  0x22   : > { %312 = vst.msk [vmem:[#allocation2 + $0xd1] sm:$0xff] %vm280_vm1, %v4454_v50  ;;  %313 = vst.msk [vmem:[#allocation2 + $0xd9] sm:$0xff] %vm280_vm1, %v4455_v51  ;;  %4807 = vmatpush3.bf16.msra.mxu0 %v2562_v1  ;;  %4642 = vmatprep.mubr.msk.bf16.mxu1 %vm280_vm1, %v2170_v0  ;;  %v1047_v14 = vpack.c.bf16 %v1021_v11, %v1020_v10  ;;  %v2147_v16 = vld [vmem:[#allocation2 + $0x61] sm:$0xff]  ;;  %v2148_v17 = vld [vmem:[#allocation2 + $0x69] sm:$0xff]  ;;  %v5409_v38 = vsel %vm838_vm5, 1.0, %v6507_v4  ;;  %v420_v42 = vand.u32 15, %v330_v33 }
  0x23   : > { %314 = vst.msk [vmem:[#allocation2 + $0xe1] sm:$0xff] %vm280_vm1, %v4458_v55  ;;  %315 = vst.msk [vmem:[#allocation2 + $0xe9] sm:$0xff] %vm280_vm1, %v4459_v56  ;;  %4778 = vmatprep.mubr.msk.bf16.mxu0 %vm280_vm1, %v1045_v2  ;;  %5207 = vmatprep.subr.msk.bf16.mxu0 %vm1108_vm0, %v5364_v7  ;;  %v1024_v18 = vld [vmem:[#allocation2 + $0x71] sm:$0xff]  ;;  %v1025_v19 = vld [vmem:[#allocation2 + $0x79] sm:$0xff]  ;;  %v2174_v22 = vpack.c.bf16 %v2148_v17, %v2147_v16  ;;  %vm840_vm6 = vcmp.lt.s32.totalorder %v406_v40, 15  ;;  %v332_v52 = vadd.s32 88, %v5359_v5 }
  0x24   : > { %316 = vst.msk [vmem:[#allocation2 + $0xf1] sm:$0xff] %vm280_vm1, %v4462_v62  ;;  %317 = vst.msk [vmem:[#allocation2 + $0xf9] sm:$0xff] %vm280_vm1, %v4463_v63  ;;  %5202 = vmatprep.subr.msk.bf16.mxu1 %vm1108_vm0, %v5372_v6  ;;  %v1049_v23 = vpack.c.bf16 %v1025_v19, %v1024_v18  ;;  %v5390_v25 = vld [vmem:[#allocation2 + $0x1a] sm:$0xff]  ;;  %v2152_v29 = vld [vmem:[#allocation2 + $0x89] sm:$0xff]  ;;  %vm842_vm7 = vcmp.lt.s32.totalorder %v420_v42, 15  ;;  %v334_v55 = vadd.s32 104, %v5359_v5 }
  0x25   : > { %v2151_v28 = vld [vmem:[#allocation2 + $0x81] sm:$0xff]  ;;  %v2464_v30 = vmul.f32 %v5388_v24, %v5390_v25  ;;  %v5398_v31 = vld [vmem:[#allocation2 + $0x12] sm:$0xff]  ;;  %6561 = vst [vmem:[#allocation4_spill] sm:$0xff] %v5404_v36  ;;  %v5406_v37 = vld [vmem:[#allocation2 + $0x2a] sm:$0xff]  ;;  %v336_v58 = vadd.s32 120, %v5359_v5  ;;  %v5434_v60 = vsel %vm840_vm6, 1.0, %v6507_v4 }
  0x26   : > { %v2176_v34 = vpack.c.bf16 %v2152_v29, %v2151_v28  ;;  %6562 = vst [vmem:[#allocation5_spill] sm:$0xff] %v5409_v38  ;;  %v5411_v39 = vld [vmem:[#allocation2 + $0x3a] sm:$0xff]  ;;  %v1028_v43 = vld [vmem:[#allocation2 + $0x91] sm:$0xff]  ;;  %v2466_v45 = vmul.f32 %v5404_v36, %v5406_v37  ;;  %v5420_v46 = vld [vmem:[#allocation2 + $0x22] sm:$0xff]  ;;  %v357_v62 = vand.u32 15, %v5359_v5  ;;  %v323_v63 = vadd.s32 16, %v5359_v5 }
  0x27   : > { %v2495_v35 = vpack.c.bf16 %v2464_v30, %v5398_v31  ;;  %v4482_v41 = vld [vmem:[%s5307_s28 + $0x78] sm:$0xff]   ;;  %v1030_v47 = vld [vmem:[#allocation2 + $0xa1] sm:$0xff]  ;;  %v1031_v48 = vld [vmem:[#allocation2 + $0xa9] sm:$0xff]  ;;  %v2468_v49 = vmul.f32 %v5409_v38, %v5411_v39  ;;  %6563 = vst [vmem:[#allocation6_spill] sm:$0xff] %v5434_v60  ;;  %v2888_v0 = vsel %vm1108_vm0, %v5364_v7, 0  ;;  %v5443_v1 = vsel %vm842_vm7, 1.0, %v6507_v4 }
  0x28   : > { %4643 = vmatmul.mubr.msk.bf16.gmra.mrb[4].mxu1 %vm280_vm1, %v1045_v2  ;;  %v1029_v44 = vld [vmem:[#allocation2 + $0x99] sm:$0xff]  ;;  %v4466_v50 = vunpack.c.l.bf16 %v4482_v41  ;;  %v4467_v53 = vunpack.c.h.bf16 %v4482_v41  ;;  %v2496_v56 = vpack.c.bf16 %v2466_v45, %v5420_v46  ;;  %v1052_v57 = vpack.c.bf16 %v1031_v48, %v1030_v47  ;;  %v5436_v61 = vld [vmem:[#allocation2 + $0x4a] sm:$0xff]  ;;  %6564 = vst [vmem:[#allocation7_spill] sm:$0xff] %v5443_v1  ;;  %v1034_v15 = vld [vmem:[#allocation2 + $0xc1] sm:$0xff] }
  0x29   : > { %4779 = vmatmul.mubr.msk.bf16.gmra.mrb[4].mxu0 %vm280_vm1, %v2172_v13  ;;  %4646 = vmatprep.mubr.msk.bf16.mxu1 %vm280_vm1, %v2172_v13  ;;  %v5424_v51 = vld [vmem:[#allocation2 + $0x32] sm:$0xff]  ;;  %v1051_v54 = vpack.c.bf16 %v1029_v44, %v1028_v43  ;;  %v5445_v2 = vld [vmem:[#allocation2 + $0x5a] sm:$0xff]  ;;  %v434_v8 = vand.u32 15, %v332_v52  ;;  %v448_v9 = vand.u32 15, %v334_v55  ;;  %v338_v10 = vadd.s32 136, %v5359_v5  ;;  %v1035_v16 = vld [vmem:[#allocation2 + $0xc9] sm:$0xff] }
  0x2a   : > { %4782 = vmatprep.mubr.msk.bf16.mxu0 %vm280_vm1, %v1047_v14  ;;  %318 = vst.msk [vmem:[#allocation2 + $0x101] sm:$0xff] %vm280_vm1, %v4466_v50  ;;  %319 = vst.msk [vmem:[#allocation2 + $0x109] sm:$0xff] %vm280_vm1, %v4467_v53  ;;  %v2497_v59 = vpack.c.bf16 %v2468_v49, %v5424_v51  ;;  %v5452_v11 = vld [vmem:[%s6503_s1 + $0xe] sm:$0x3]  ;;  %v1032_v7 = vld [vmem:[#allocation2 + $0xb1] sm:$0xff]  ;;  %v2470_v13 = vmul.f32 %v5434_v60, %v5436_v61  ;;  %v2472_v17 = vmul.f32 %v5443_v1, %v5445_v2 }
  0x2b   : > { %v1033_v12 = vld [vmem:[#allocation2 + $0xb9] sm:$0xff]  ;;  %v462_v18 = vand.u32 15, %v336_v58  ;;  %vm737_vm8 = vcmp.gt.s32.totalorder %v357_v62, 0  ;;  %v371_v19 = vand.u32 15, %v323_v63  ;;  %vm844_vm9 = vcmp.lt.s32.totalorder %v434_v8, 15  ;;  %v5493_v44 = vld [vmem:[#allocation2 + $0x8] sm:$0xff] }
  0x2c   : > { %v5463_v20 = vld [vmem:[#allocation2 + $0x52] sm:$0xff]  ;;  %v340_v21 = vadd.s32 152, %v5359_v5  ;;  %vm846_vm10 = vcmp.lt.s32.totalorder %v448_v9, 15  ;;  %v476_v26 = vand.u32 15, %v338_v10  ;;  %v1054_v28 = vpack.c.bf16 %v1035_v16, %v1034_v15  ;;  %v929_v30 = vld [vmem:[#allocation2] sm:$0xff]  ;;  %v1039_v63 = vld [vmem:[#allocation2 + $0xe9] sm:$0xff] }
  0x2d   : > { %v5471_v29 = vsel %vm737_vm8, 1.0, %v6507_v4  ;;  %v327_v32 = vadd.s32 48, %v5359_v5  ;;  %v2499_v33 = vpack.c.bf16 %v2472_v17, %v5463_v20  ;;  %vm5480_vm11 = vcmp.lt.s32.totalorder %v462_v18, 15  ;;  %v5491_v43 = vld [vmem:[#allocation2 + $0x7a] sm:$0xff]  ;;  %v1036_v48 = vld [vmem:[#allocation2 + $0xd1] sm:$0xff]  ;;  %v5496_v50 = vld [vmem:[#allocation2 + $0x62] sm:$0xff] }
  0x2e   : > { %vm5484_vm12 = vcmp.gt.s32.totalorder %v371_v19, 0  ;;  %v5489_v42 = vsel %vm846_vm10, 1.0, %v6507_v4  ;;  %v490_v45 = vand.u32 15, %v340_v21  ;;  %v1037_v49 = vld [vmem:[#allocation2 + $0xd9] sm:$0xff]  ;;  %v5499_v52 = vmul.f32 %v5471_v29, %v929_v30  ;;  %v1038_v55 = vld [vmem:[#allocation2 + $0xe1] sm:$0xff] }
  0x2f   : > { %6570 = vst [vmem:[#allocation9_spill] sm:$0xff] %v5489_v42  ;;  %vm5501_vm13 = vcmp.lt.s32.totalorder %v476_v26, 15  ;;  %v5519_v58 = vsel %vm5484_vm12, 1.0, %v6507_v4  ;;  %v399_v62 = vand.u32 15, %v327_v32  ;;  %v1041_v8 = vld [vmem:[#allocation2 + $0xf9] sm:$0xff]  ;;  %v2476_v9 = vmul.f32 %v5489_v42, %v5491_v43  ;;  %v5559_v26 = vld [vmem:[#allocation2 + $0x82] sm:$0xff] }
  0x30   : > { %4647 = vmatmul.mubr.msk.bf16.gmra.mrb[8].mxu1 %vm280_vm1, %v1047_v14  ;;  %v5459_v14 = vld [vmem:[#allocation2 + $0x42] sm:$0xff]  ;;  %v5528_v10 = vsel %vm1108_vm0, %v5372_v6, 0  ;;  %vm852_vm14 = vcmp.lt.s32.totalorder %v490_v45, 15  ;;  %v342_v16 = vadd.s32 168, %v5359_v5  ;;  %v1055_v17 = vpack.c.bf16 %v1037_v49, %v1036_v48  ;;  %v5578_v45 = vld [vmem:[#allocation2 + $0x92] sm:$0xff] }
  0x31   : > { %4783 = vmatmul.mubr.msk.bf16.gmra.mrb[8].mxu0 %vm280_vm1, %v2174_v22  ;;  %4650 = vmatprep.mubr.msk.bf16.mxu1 %vm280_vm1, %v2174_v22  ;;  %v325_v22 = vadd.s32 32, %v5359_v5  ;;  %v2498_v27 = vpack.c.bf16 %v2470_v13, %v5459_v14  ;;  %v5537_v13 = vld [vmem:[#allocation2 + $0x9a] sm:$0xff]  ;;  %vm743_vm2 = vcmp.gt.s32.totalorder %v399_v62, 0  ;;  %v5567_v32 = vsel %vm852_vm14, 1.0, %v6507_v4 }
  0x32   : > { %4786 = vmatprep.mubr.msk.bf16.mxu0 %vm280_vm1, %v1049_v23  ;;  %6580 = vst [vmem:[#allocation15_spill] sm:$0xff] %v5567_v32  ;;  %v5576_v41 = vld [vmem:[#allocation2 + $0x20] sm:$0xff]  ;;  %v344_v48 = vadd.s32 184, %v5359_v5  ;;  %v346_v49 = vadd.s32 200, %v5359_v5  ;;  %v5584_v53 = vmul.f32 %v5404_v36, %v5390_v25  ;;  %v5592_v62 = vsel %vm743_vm2, 1.0, %v6507_v4 }
  0x33   : > { %v385_v47 = vand.u32 15, %v325_v22  ;;  %v5555_v22 = vpack.c.bf16 %v1039_v63, %v1038_v55  ;;  %v348_v63 = vadd.s32 216, %v5359_v5  ;;  %v5761_v36 = vld [vmem:[#allocation2 + $0x40] sm:$0xff] }
  0x34   : > { %v518_v55 = vand.u32 15, %v344_v48  ;;  %v532_v18 = vand.u32 15, %v346_v49  ;;  %v6581_v49 = vmov 0.0  }
  0x35   : > { %vm5539_vm15 = vcmp.gt.s32.totalorder %v385_v47, 0  ;;  %6577 = vst [vmem:[#allocation12_spill] sm:$0xff] %v5555_v22  ;;  %v504_v47 = vand.u32 15, %v342_v16  ;;  %v5611_v16 = vld [vmem:[#allocation2 + $0xa2] sm:$0xff] }
  0x36   : > { %v5574_v40 = vsel %vm5539_vm15, 1.0, %v6507_v4  ;;  %vm5654_vm4 = vcmp.lt.s32.totalorder %v518_v55, 15  ;;  %vm5658_vm5 = vcmp.lt.s32.totalorder %v532_v18, 15  ;;  %v5678_v55 = vmul.f32 %v5567_v32, %v5537_v13 }
  0x37   : > { %vm854_vm3 = vcmp.lt.s32.totalorder %v504_v47, 15  ;;  %v5637_v47 = vadd.s32 80, %v5359_v5 }
  0x38   : > { %4651 = vmatmul.mubr.msk.bf16.gmra.mrb[12].mxu1 %vm280_vm1, %v1049_v23  ;;  %v1053_v23 = vpack.c.bf16 %v1033_v12, %v1032_v7  ;;  %v5530_v7 = vld [vmem:[#allocation2 + $0x72] sm:$0xff]  ;;  %v5535_v12 = vsel %vm5501_vm13, 1.0, %v6507_v4 }
  0x39   : > { %4787 = vmatmul.mubr.msk.bf16.gmra.mrb[12].mxu0 %vm280_vm1, %v2176_v34  ;;  %4654 = vmatprep.mubr.msk.bf16.mxu1 %vm280_vm1, %v2176_v34  ;;  %v5476_v34 = vsel %vm844_vm9, 1.0, %v6507_v4  ;;  %6574 = vst [vmem:[#allocation11_spill] sm:$0xff] %v5535_v12  ;;  %v2480_v30 = vmul.f32 %v5535_v12, %v5537_v13  ;;  %v5712_v13 = vld [vmem:[#allocation2 + $0xb2] sm:$0xff] }
  0x3a   : > { %4808 = vmatprep.mubr.msk.bf16.mxu0 %vm280_vm1, %v2495_v35  ;;  %6565 = vst [vmem:[#allocation8_spill] sm:$0xff] %v5476_v34  ;;  %v5478_v35 = vld [vmem:[#allocation2 + $0x6a] sm:$0xff]  ;;  %6595 = vst [vmem:[#allocation20_spill] sm:$0xff] %v5712_v13 }
  0x3b   : > { %v2503_v15 = vpack.c.bf16 %v2480_v30, %v5578_v45  ;;  %v546_v30 = vand.u32 15, %v348_v63  ;;  %v5642_v63 = vsel %vm854_vm3, 1.0, %v6581_v49 }
  0x3c   : > { %6582 = vst [vmem:[#allocation16_spill] sm:$0xff] %v5642_v63 }
  0x3d   : > { %vm5668_vm6 = vcmp.lt.s32.totalorder %v546_v30, 15 }
  0x40   : > { %4655 = vmatmul.mubr.msk.bf16.gmra.mrb[16].mxu1 %vm280_vm1, %v1051_v54  ;;  %v2474_v54 = vmul.f32 %v5476_v34, %v5478_v35 }
  0x41   : > { %4809 = vmatmul.mubr.msk.bf16.vlgmr.msra.gmra.mrb[0].mxu0 %vm280_vm1, %v2496_v56  ;;  %4658 = vmatprep.mubr.msk.bf16.mxu1 %vm280_vm1, %v1052_v57  ;;  %v5512_v56 = vsel %vm5480_vm11, 1.0, %v6507_v4  ;;  %v5514_v57 = vld [vmem:[#allocation2 + $0x8a] sm:$0xff] }
  0x42   : > { %4841 = vmatpush3.bf16.msra.mxu0 %v2888_v0  ;;  %4812 = vmatprep.mubr.msk.bf16.mxu0 %vm280_vm1, %v2497_v59  ;;  %6573 = vst [vmem:[#allocation10_spill] sm:$0xff] %v5512_v56  ;;  %v5521_v59 = vld [vmem:[#allocation2 + $0x10] sm:$0xff]  ;;  %v5546_v6 = vmul.f32 %v5512_v56, %v5514_v57  ;;  %v2500_v21 = vpack.c.bf16 %v2474_v54, %v5496_v50 }
  0x43   : > { %5208 = vmatprep.subr.msk.bf16.mxu0 %vm1108_vm0, %v5452_v11  ;;  %v1040_v0 = vld [vmem:[#allocation2 + $0xf1] sm:$0xff]  ;;  %v5552_v19 = vmul.f32 %v5519_v58, %v5521_v59  ;;  %v5664_v4 = vmul.f32 %v5535_v12, %v5514_v57  ;;  %v6589_v57 = vpack.c.bf16 %v5493_v44, %v5499_v52  ;;  %v5699_v44 = vsel %vm5654_vm4, 1.0, %v6581_v49 }
  0x44   : > { %v2502_v54 = vpack.c.bf16 %v5546_v6, %v5559_v26  ;;  %v5616_v6 = vmul.f32 %v5409_v38, %v5406_v37  ;;  %v5632_v37 = vmul.f32 %v5476_v34, %v5445_v2  ;;  %v5648_v2 = vmul.f32 %v5489_v42, %v5478_v35  ;;  %6593 = vst [vmem:[#allocation18_spill] sm:$0xff] %v5699_v44  ;;  %v2454_v52 = vld [vmem:[#allocation2 + $0xca] sm:$0xff] }
  0x45   : > { %v5721_v34 = vsel %vm5668_vm6, 1.0, %v6581_v49  ;;  %v427_v42 = vand.u32 15, %v5637_v47  ;;  %v5763_v47 = vld [vmem:[#allocation2 + $0xe2] sm:$0xff]  ;;  %v5769_v12 = vmul.f32 %v5471_v29, %v5521_v59  ;;  %v2486_v3 = vmul.f32 %v5699_v44, %v2454_v52 }
  0x46   : > { %6598 = vst [vmem:[#allocation21_spill] sm:$0xff] %v5721_v34  ;;  %6606 = vst [vmem:[#allocation29_spill] sm:$0xff] %v5763_v47  ;;  %v5787_v59 = vld [vmem:[%s6503_s1 + $0x6] sm:$0x3] }
  0x47   : > { %6607 = vst [vmem:[#allocation30_spill] sm:$0xff] %v5769_v12  ;;  %vm5800_vm9 = vcmp.gt.s32.totalorder %v427_v42, 0  ;;  %v335_v42 = vadd.s32 112, %v5359_v5  ;;  %v5819_v12 = vmul.f32 %v5592_v62, %v5761_v36 }
  0x48   : > { %4659 = vmatmul.mubr.msk.bf16.gmra.mrb[20].mxu1 %vm280_vm1, %v1053_v23  ;;  %v5557_v23 = vpack.c.bf16 %v1041_v8, %v1040_v0  ;;  %v5604_v0 = vmul.f32 %v5574_v40, %v5576_v41  ;;  %v350_v8 = vadd.s32 232, %v5359_v5 }
  0x49   : > { %4813 = vmatmul.mubr.msk.bf16.gmra.mrb[4].mxu0 %vm280_vm1, %v2498_v27  ;;  %4662 = vmatprep.mubr.msk.bf16.mxu1 %vm280_vm1, %v1054_v28  ;;  %v5561_v27 = vld [vmem:[#allocation2 + $0x18] sm:$0xff]  ;;  %v2501_v28 = vpack.c.bf16 %v2476_v9, %v5530_v7  ;;  %6615 = vst [vmem:[#allocation34_spill] sm:$0xff] %v5819_v12 }
  0x4a   : > { %4816 = vmatprep.mubr.msk.bf16.mxu0 %vm280_vm1, %v2499_v33  ;;  %6578 = vst [vmem:[#allocation13_spill] sm:$0xff] %v5557_v23  ;;  %6579 = vst [vmem:[#allocation14_spill] sm:$0xff] %v5561_v27  ;;  %v5569_v33 = vld [vmem:[#allocation2 + $0xaa] sm:$0xff]  ;;  %v560_v48 = vand.u32 15, %v350_v8  ;;  %v2452_v9 = vld [vmem:[#allocation2 + $0xba] sm:$0xff] }
  0x4b   : > { %v5600_v25 = vmul.f32 %v5567_v32, %v5569_v33  ;;  %v2484_v30 = vmul.f32 %v5642_v63, %v2452_v9  ;;  %v2456_v8 = vld [vmem:[#allocation2 + $0xda] sm:$0xff]  ;;  %v5724_v18 = vmul.f32 %v5699_v44, %v2452_v9  ;;  %v352_v44 = vadd.s32 248, %v5359_v5 }
  0x4c   : > { %vm5689_vm7 = vcmp.lt.s32.totalorder %v560_v48, 15  ;;  %v5741_v9 = vmul.f32 %v5721_v34, %v2456_v8  ;;  %v5844_v12 = vld [vmem:[#allocation2 + $0xfa] sm:$0xff] }
  0x4d   : > { %6599 = vst [vmem:[#allocation22_spill] sm:$0xff] %v5724_v18  ;;  %v5736_v32 = vsel %vm5689_vm7, 1.0, %v6581_v49  ;;  %v2505_v35 = vpack.c.bf16 %v2484_v30, %v5712_v13  ;;  %6616 = vst [vmem:[#allocation35_spill] sm:$0xff] %v5844_v12  ;;  %vm3934_vm7 = vcmask 57344  }
  0x4e   : > { %6602 = vst [vmem:[#allocation25_spill] sm:$0xff] %v5736_v32  ;;  %6603 = vst [vmem:[#allocation26_spill] sm:$0xff] %v5741_v9 }
  0x50   : > { %4663 = vmatmul.mubr.msk.bf16.gmra.mrb[24].mxu1 %vm280_vm1, %v1055_v17  ;;  %v329_v17 = vadd.s32 64, %v5359_v5 }
  0x51   : > { %4817 = vmatmul.mubr.msk.bf16.gmra.mrb[8].mxu0 %vm280_vm1, %v2500_v21  ;;  %4666 = vmatprep.mubr.msk.bf16.mxu1 %vm280_vm1, %v5555_v22  ;;  %v5620_v21 = vmul.f32 %v5434_v60, %v5411_v39  ;;  %v5652_v39 = vmul.f32 %v5512_v56, %v5491_v43  ;;  %v333_v43 = vadd.s32 96, %v5359_v5  ;;  %v5743_v56 = vld [vmem:[#allocation2 + $0x30] sm:$0xff]  ;;  %v6609_v22 = vpack.c.bf16 %v5561_v27, %v5552_v19 }
  0x52   : > { %4820 = vmatprep.mubr.msk.bf16.mxu0 %vm280_vm1, %v2501_v28  ;;  %v5624_v28 = vmul.f32 %v5443_v1, %v5436_v61  ;;  %v413_v61 = vand.u32 15, %v329_v17  ;;  %v5685_v17 = vld [vmem:[#allocation2 + $0x28] sm:$0xff]  ;;  %v5746_v1 = vld [vmem:[#allocation2 + $0xd2] sm:$0xff]  ;;  %v6610_v19 = vpack.c.bf16 %v5600_v25, %v5611_v16 }
  0x53   : > { %6590 = vst [vmem:[#allocation17_spill] sm:$0xff] %v5685_v17  ;;  %6604 = vst [vmem:[#allocation27_spill] sm:$0xff] %v5746_v1  ;;  %v5812_v25 = vld [vmem:[#allocation2 + $0x48] sm:$0xff]  ;;  %v5836_v27 = vld [vmem:[#allocation2 + $0x50] sm:$0xff] }
  0x54   : > { %vm5714_vm8 = vcmp.gt.s32.totalorder %v413_v61, 0  ;;  %v2458_v61 = vld [vmem:[#allocation2 + $0xea] sm:$0xff]  ;;  %6614 = vst [vmem:[#allocation33_spill] sm:$0xff] %v5812_v25 }
  0x55   : > { %v5753_v60 = vmul.f32 %v5736_v32, %v2458_v61  ;;  %v5759_v38 = vsel %vm5714_vm8, 1.0, %v6581_v49 }
  0x57   : > { %6605 = vst [vmem:[#allocation28_spill] sm:$0xff] %v5753_v60 }
  0x58   : > { %4667 = vmatmul.mubr.msk.bf16.gmra.mrb[28].mxu1 %vm280_vm1, %v5557_v23  ;;  %v441_v23 = vand.u32 15, %v333_v43  ;;  %v337_v43 = vadd.s32 128, %v5359_v5 }
  0x59   : > { %4821 = vmatmul.mubr.msk.bf16.gmra.mrb[12].mxu0 %vm280_vm1, %v2502_v54  ;;  %4672 = vmatprep.mubr.msk.bf16.mxu1 %vm280_vm1, %v6589_v57  ;;  %v5704_v54 = vsel %vm5658_vm5, 1.0, %v6581_v49  ;;  %v5710_v57 = vmul.f32 %v5642_v63, %v5569_v33  ;;  %v995_v33 = vpack.c.bf16 %v5685_v17, %v5604_v0  ;;  %v5731_v63 = vld [vmem:[#allocation2 + $0xc2] sm:$0xff]  ;;  %v967_v0 = vmul.f32 %v5592_v62, %v5743_v56 }
  0x5a   : > { %4824 = vmatprep.mubr.msk.bf16.mxu0 %vm280_vm1, %v2503_v15  ;;  %6594 = vst [vmem:[#allocation19_spill] sm:$0xff] %v5704_v54  ;;  %v5727_v48 = vmul.f32 %v5704_v54, %v2454_v52  ;;  %6601 = vst [vmem:[#allocation24_spill] sm:$0xff] %v5731_v63  ;;  %v5775_v15 = vmul.f32 %v5519_v58, %v5576_v41  ;;  %v969_v52 = vmul.f32 %v5759_v38, %v5761_v36 }
  0x5b   : > { %vm749_vm10 = vcmp.gt.s32.totalorder %v441_v23, 0  ;;  %v5834_v23 = vsel %vm5800_vm9, 1.0, %v6581_v49 }
  0x5c   : > { %6600 = vst [vmem:[#allocation23_spill] sm:$0xff] %v5727_v48  ;;  %6608 = vst [vmem:[#allocation31_spill] sm:$0xff] %v5775_v15  ;;  %v997_v15 = vpack.c.bf16 %v5812_v25, %v969_v52  ;;  %v971_v30 = vmul.f32 %v5834_v23, %v5836_v27  ;;  %v2490_v52 = vmul.f32 %v5721_v34, %v2458_v61  ;;  %v5865_v61 = vld [vmem:[#allocation2 + $0x68] sm:$0xff]  ;;  %v341_v34 = vadd.s32 160, %v5359_v5 }
  0x5d   : > { %6620 = vst [vmem:[#allocation39_spill] sm:$0xff] %v5865_v61 }
  0x60   : > { %4673 = vmatmul.mubr.msk.bf16.vlgmr.msra.gmra.mrb[0].mxu1 %vm280_vm1, %v6609_v22  ;;  %v5796_v22 = vld [vmem:[#allocation2 + $0x38] sm:$0xff] }
  0x61   : > { %4705 = vmatpush3.bf16.msra.mxu1 %v5528_v10  ;;  %4825 = vmatmul.mubr.msk.bf16.gmra.mrb[16].mxu0 %vm280_vm1, %v6610_v19  ;;  %v5808_v10 = vmul.f32 %v5574_v40, %v5743_v56  ;;  %v2488_v19 = vmul.f32 %v5704_v54, %v2456_v8  ;;  %v2506_v54 = vpack.c.bf16 %v2486_v3, %v5731_v63  ;;  %v469_v8 = vand.u32 15, %v337_v43  ;;  %v5888_v63 = vld [vmem:[#allocation2 + $0x80] sm:$0xff] }
  0x62   : > { %4676 = vmatprep.mubr.msk.bf16.mxu1 %vm280_vm1, %v995_v33  ;;  %4828 = vmatprep.mubr.msk.bf16.mxu0 %vm280_vm1, %v2505_v35  ;;  %v996_v35 = vpack.c.bf16 %v5796_v22, %v967_v0  ;;  %v5840_v33 = vsel %vm749_vm10, 1.0, %v6581_v49  ;;  %v5842_v0 = vld [vmem:[#allocation2 + $0x60] sm:$0xff]  ;;  %v574_v3 = vand.u32 15, %v352_v44  ;;  %v5858_v43 = vmul.f32 %v5759_v38, %v5836_v27 }
  0x63   : > { %6613 = vst [vmem:[#allocation32_spill] sm:$0xff] %v5808_v10  ;;  %5203 = vmatprep.subr.msk.bf16.mxu1 %vm1108_vm0, %v5787_v59  ;;  %v2507_v60 = vpack.c.bf16 %v2488_v19, %v5746_v1  ;;  %v455_v10 = vand.u32 15, %v335_v42  ;;  %v5852_v19 = vld [vmem:[#allocation2 + $0x58] sm:$0xff]  ;;  %v973_v42 = vmul.f32 %v5840_v33, %v5842_v0  ;;  %v5862_v44 = vmul.f32 %v5834_v23, %v5842_v0 }
  0x64   : > { %6617 = vst [vmem:[#allocation36_spill] sm:$0xff] %v5852_v19  ;;  %6618 = vst [vmem:[#allocation37_spill] sm:$0xff] %v5858_v43  ;;  %vm753_vm12 = vcmp.gt.s32.totalorder %v469_v8, 0  ;;  %vm864_vm13 = vcmp.lt.s32.totalorder %v574_v3, 15  ;;  %v998_v9 = vpack.c.bf16 %v5852_v19, %v971_v30  ;;  %v5894_v30 = vld [vmem:[#allocation2 + $0x10a] sm:$0xff] }
  0x65   : > { %6619 = vst [vmem:[#allocation38_spill] sm:$0xff] %v5862_v44  ;;  %vm751_vm11 = vcmp.gt.s32.totalorder %v455_v10, 0  ;;  %v2508_v10 = vpack.c.bf16 %v2490_v52, %v5763_v47  ;;  %v5886_v3 = vsel %vm753_vm12, 1.0, %v6581_v49  ;;  %6623 = vst [vmem:[#allocation42_spill] sm:$0xff] %v5894_v30  ;;  %v497_v44 = vand.u32 15, %v341_v34 }
  0x66   : > { %v5881_v8 = vsel %vm751_vm11, 1.0, %v6581_v49  ;;  %v977_v43 = vmul.f32 %v5886_v3, %v5888_v63  ;;  %v345_v47 = vadd.s32 192, %v5359_v5 }
  0x67   : > { %vm757_vm15 = vcmp.gt.s32.totalorder %v497_v44, 0 }
  0x68   : > { %4677 = vmatmul.mubr.msk.bf16.gmra.mrb[4].mxu1 %vm280_vm1, %v996_v35  ;;  %v5870_v35 = vld [vmem:[#allocation2 + $0xf2] sm:$0xff]  ;;  %v5938_v44 = vsel %vm757_vm15, 1.0, %v6581_v49  ;;  %v525_v48 = vand.u32 15, %v345_v47 }
  0x69   : > { %4829 = vmatmul.mubr.msk.bf16.gmra.mrb[20].mxu0 %vm280_vm1, %v2506_v54  ;;  %4680 = vmatprep.mubr.msk.bf16.mxu1 %vm280_vm1, %v997_v15  ;;  %v2492_v54 = vmul.f32 %v5736_v32, %v5844_v12  ;;  %v339_v15 = vadd.s32 144, %v5359_v5  ;;  %6621 = vst [vmem:[#allocation40_spill] sm:$0xff] %v5870_v35  ;;  %v999_v32 = vpack.c.bf16 %v5865_v61, %v973_v42  ;;  %v5883_v12 = vld [vmem:[#allocation2 + $0x70] sm:$0xff] }
  0x6a   : > { %4832 = vmatprep.mubr.msk.bf16.mxu0 %vm280_vm1, %v2507_v60  ;;  %v5892_v60 = vsel %vm864_vm13, 1.0, %v6581_v49  ;;  %v975_v42 = vmul.f32 %v5881_v8, %v5883_v12  ;;  %v5909_v34 = vmul.f32 %v5840_v33, %v5883_v12  ;;  %vm761_vm3 = vcmp.gt.s32.totalorder %v525_v48, 0 }
  0x6b   : > { %v2509_v1 = vpack.c.bf16 %v2492_v54, %v5870_v35  ;;  %6622 = vst [vmem:[#allocation41_spill] sm:$0xff] %v5892_v60  ;;  %v483_v52 = vand.u32 15, %v339_v15  ;;  %v5903_v54 = vld [vmem:[#allocation2 + $0x78] sm:$0xff]  ;;  %v2494_v35 = vmul.f32 %v5892_v60, %v5894_v30  ;;  %v5916_v15 = vld [vmem:[#allocation2 + $0x102] sm:$0xff]  ;;  %v343_v30 = vadd.s32 176, %v5359_v5 }
  0x6c   : > { %6624 = vst [vmem:[#allocation43_spill] sm:$0xff] %v5909_v34  ;;  %6626 = vst [vmem:[#allocation45_spill] sm:$0xff] %v5916_v15  ;;  %v5940_v60 = vld [vmem:[#allocation2 + $0xa0] sm:$0xff]  ;;  %v5982_v48 = vsel %vm761_vm3, 1.0, %v6581_v49 }
  0x6d   : > { %vm755_vm14 = vcmp.gt.s32.totalorder %v483_v52, 0  ;;  %v2510_v13 = vpack.c.bf16 %v2494_v35, %v5916_v15  ;;  %v511_v34 = vand.u32 15, %v343_v30 }
  0x6e   : > { %v5932_v18 = vsel %vm755_vm14, 1.0, %v6581_v49 }
  0x6f   : > { %v5959_v30 = vmul.f32 %v5932_v18, %v5940_v60  ;;  %vm759_vm2 = vcmp.gt.s32.totalorder %v511_v34, 0 }
  0x70   : > { %4681 = vmatmul.mubr.msk.bf16.gmra.mrb[8].mxu1 %vm280_vm1, %v998_v9  ;;  %v5913_v9 = vmul.f32 %v5881_v8, %v5888_v63 }
  0x71   : > { %4833 = vmatmul.mubr.msk.bf16.gmra.mrb[24].mxu0 %vm280_vm1, %v2508_v10  ;;  %4684 = vmatprep.mubr.msk.bf16.mxu1 %vm280_vm1, %v999_v32  ;;  %v5918_v10 = vld [vmem:[#allocation2 + $0x88] sm:$0xff]  ;;  %v2789_v32 = vmul.f32 %v5471_v29, %v5576_v41  ;;  %v5934_v29 = vld [vmem:[#allocation2 + $0x90] sm:$0xff]  ;;  %6628 = vst [vmem:[#allocation47_spill] sm:$0xff] %v5959_v30 }
  0x72   : > { %6625 = vst [vmem:[#allocation44_spill] sm:$0xff] %v5913_v9  ;;  %4836 = vmatprep.mubr.msk.bf16.mxu0 %vm280_vm1, %v2509_v1  ;;  %v1000_v1 = vpack.c.bf16 %v5903_v54, %v975_v42  ;;  %v1001_v52 = vpack.c.bf16 %v5918_v10, %v977_v43  ;;  %v979_v35 = vmul.f32 %v5932_v18, %v5934_v29  ;;  %v5949_v42 = vld [vmem:[#allocation2 + $0x98] sm:$0xff] }
  0x73   : > { %v2821_v41 = vpack.c.bf16 %v5685_v17, %v2789_v32  ;;  %v2791_v43 = vmul.f32 %v5519_v58, %v5743_v56  ;;  %v981_v32 = vmul.f32 %v5938_v44, %v5940_v60  ;;  %v5955_v47 = vmul.f32 %v5886_v3, %v5934_v29  ;;  %v5962_v56 = vld [vmem:[#allocation2 + $0xa8] sm:$0xff] }
  0x74   : > { %v2793_v58 = vmul.f32 %v5574_v40, %v5761_v36  ;;  %v1002_v9 = vpack.c.bf16 %v5949_v42, %v979_v35  ;;  %v5976_v17 = vsel %vm759_vm2, 1.0, %v6581_v49  ;;  %v5978_v36 = vld [vmem:[#allocation2 + $0xb0] sm:$0xff]  ;;  %v3182_v35 = vsel %vm1108_vm0, %v5452_v11, 0 }
  0x75   : > { %6627 = vst [vmem:[#allocation46_spill] sm:$0xff] %v5955_v47  ;;  %v1003_v34 = vpack.c.bf16 %v5962_v56, %v981_v32  ;;  %v2795_v32 = vmul.f32 %v5592_v62, %v5836_v27  ;;  %v6013_v62 = vld [vmem:[#allocation2 + $0xc8] sm:$0xff] }
  0x76   : > { %v2823_v40 = vpack.c.bf16 %v5812_v25, %v2793_v58  ;;  %v5996_v58 = vld [vmem:[%s6503_s1 + $0x10] sm:$0x3]  ;;  %v957_v25 = vld [vmem:[#allocation2 + $0xe0] sm:$0xff] }
  0x77   : > { %v2824_v30 = vpack.c.bf16 %v5852_v19, %v2795_v32  ;;  %v6040_v32 = vld [vmem:[#allocation2 + $0xd8] sm:$0xff]  ;;  %v1486_v19 = vld [vmem:[#allocation2 + $0xa] sm:$0xff] }
  0x78   : > { %4685 = vmatmul.mubr.msk.bf16.gmra.mrb[12].mxu1 %vm280_vm1, %v1000_v1  ;;  %v349_v1 = vadd.s32 224, %v5359_v5 }
  0x79   : > { %4837 = vmatmul.mubr.msk.bf16.gmra.mrb[28].mxu0 %vm280_vm1, %v2510_v13  ;;  %4688 = vmatprep.mubr.msk.bf16.mxu1 %vm280_vm1, %v1001_v52  ;;  %v347_v13 = vadd.s32 208, %v5359_v5  ;;  %v5984_v52 = vld [vmem:[#allocation2 + $0xc0] sm:$0xff] }
  0x7a   : > { %4842 = vmatprep.mubr.msk.bf16.mxu0 %vm280_vm1, %v2821_v41  ;;  %v2822_v41 = vpack.c.bf16 %v5796_v22, %v2791_v43  ;;  %v553_v15 = vand.u32 15, %v349_v1  ;;  %v983_v43 = vmul.f32 %v5976_v17, %v5978_v36  ;;  %v985_v11 = vmul.f32 %v5982_v48, %v5984_v52 }
  0x7b   : > { %v539_v47 = vand.u32 15, %v347_v13  ;;  %v6000_v13 = vld [vmem:[#allocation2 + $0xb8] sm:$0xff]  ;;  %v6010_v27 = vmul.f32 %v5976_v17, %v5984_v52  ;;  %v2797_v1 = vmul.f32 %v5759_v38, %v5842_v0 }
  0x7c   : > { %vm765_vm5 = vcmp.gt.s32.totalorder %v553_v15, 0 }
  0x7d   : > { %6630 = vst [vmem:[#allocation49_spill] sm:$0xff] %v6010_v27  ;;  %vm763_vm4 = vcmp.gt.s32.totalorder %v539_v47, 0  ;;  %v1005_v47 = vpack.c.bf16 %v6013_v62, %v985_v11  ;;  %v2825_v0 = vpack.c.bf16 %v5865_v61, %v2797_v1  ;;  %v6032_v15 = vsel %vm765_vm5, 1.0, %v6581_v49  ;;  %v959_v61 = vld [vmem:[#allocation2 + $0xf0] sm:$0xff] }
  0x7e   : > { %v6028_v38 = vsel %vm763_vm4, 1.0, %v6581_v49  ;;  %v989_v11 = vmul.f32 %v6032_v15, %v957_v25 }
  0x80   : > { %4689 = vmatmul.mubr.msk.bf16.gmra.mrb[16].mxu1 %vm280_vm1, %v1002_v9  ;;  %v6006_v9 = vmul.f32 %v5938_v44, %v5978_v36 }
  0x81   : > { %4843 = vmatmul.mubr.msk.bf16.vlgmr.msra.gmra.mrb[0].mxu0 %vm280_vm1, %v2822_v41  ;;  %4692 = vmatprep.mubr.msk.bf16.mxu1 %vm280_vm1, %v1003_v34  ;;  %v351_v41 = vadd.s32 240, %v5359_v5  ;;  %v955_v5 = vld [vmem:[#allocation2 + $0xd0] sm:$0xff] }
  0x82   : > { %6629 = vst [vmem:[#allocation48_spill] sm:$0xff] %v6006_v9  ;;  %4875 = vmatpush3.bf16.msra.mxu0 %v3182_v35  ;;  %4846 = vmatprep.mubr.msk.bf16.mxu0 %vm280_vm1, %v2823_v40  ;;  %v1004_v40 = vpack.c.bf16 %v6000_v13, %v983_v43  ;;  %v987_v35 = vmul.f32 %v6028_v38, %v955_v5 }
  0x83   : > { %5209 = vmatprep.subr.msk.bf16.mxu0 %vm1108_vm0, %v5996_v58  ;;  %v567_v34 = vand.u32 15, %v351_v41  ;;  %v2799_v43 = vmul.f32 %v5834_v23, %v5883_v12  ;;  %v6044_v1 = vmul.f32 %v5982_v48, %v955_v5  ;;  %v6047_v41 = vmul.f32 %v6028_v38, %v957_v25  ;;  %v2785_v23 = vld [vmem:[#allocation2 + $0x100] sm:$0xff] }
  0x84   : > { %v2801_v12 = vmul.f32 %v5840_v33, %v5888_v63  ;;  %v2803_v33 = vmul.f32 %v5881_v8, %v5934_v29  ;;  %v2805_v8 = vmul.f32 %v5886_v3, %v5940_v60  ;;  %v6079_v29 = vld [vmem:[#allocation2 + $0x108] sm:$0xff]  ;;  %v2807_v60 = vmul.f32 %v5932_v18, %v5978_v36 }
  0x85   : > { %6631 = vst [vmem:[#allocation50_spill] sm:$0xff] %v6047_v41  ;;  %vm767_vm6 = vcmp.gt.s32.totalorder %v567_v34, 0  ;;  %v2826_v27 = vpack.c.bf16 %v5903_v54, %v2799_v43  ;;  %v1518_v43 = vmul.f32 %v5388_v24, %v1486_v19  ;;  %v2809_v3 = vmul.f32 %v5938_v44, %v5984_v52 }
  0x86   : > { %v2827_v34 = vpack.c.bf16 %v5918_v10, %v2801_v12  ;;  %v1485_v12 = vld [vmem:[#allocation2 + $0x2] sm:$0xff]  ;;  %v2829_v41 = vpack.c.bf16 %v5962_v56, %v2805_v8  ;;  %v2811_v18 = vmul.f32 %v5976_v17, %v955_v5  ;;  %v6633_v44 = vpack.c.bf16 %v5616_v6, %v5420_v46  ;;  %v3090_v8 = vld [vmem:[#allocation2 + $0x59] sm:$0xff] }
  0x87   : > { %v6634_v17 = vpack.c.bf16 %v5620_v21, %v5424_v51  ;;  %v6635_v46 = vpack.c.bf16 %v5624_v28, %v5459_v14  ;;  %v2815_v6 = vmul.f32 %v6028_v38, %v959_v61  ;;  %v2787_v51 = vld [vmem:[#allocation2 + $0x110] sm:$0xff]  ;;  %v6636_v21 = vpack.c.bf16 %v5632_v37, %v5463_v20  ;;  %v3083_v38 = vld [vmem:[#allocation2 + $0x21] sm:$0xff] }
  0x88   : > { %4693 = vmatmul.mubr.msk.bf16.gmra.mrb[20].mxu1 %vm280_vm1, %v1004_v40  ;;  %v6050_v40 = vld [vmem:[#allocation2 + $0xe8] sm:$0xff]  ;;  %v6637_v14 = vpack.c.bf16 %v5648_v2, %v5496_v50  ;;  %v6638_v20 = vpack.c.bf16 %v5652_v39, %v5530_v7  ;;  %v6639_v50 = vpack.c.bf16 %v5664_v4, %v5559_v26  ;;  %v3085_v37 = vld [vmem:[#allocation2 + $0x31] sm:$0xff]  ;;  %v3086_v2 = vld [vmem:[#allocation2 + $0x39] sm:$0xff]  ;;  %v3508_v7 = vsel %vm1108_vm0, %v5996_v58, 0 }
  0x89   : > { %4847 = vmatmul.mubr.msk.bf16.gmra.mrb[4].mxu0 %vm280_vm1, %v2824_v30  ;;  %4696 = vmatprep.mubr.msk.bf16.mxu1 %vm280_vm1, %v1005_v47  ;;  %v1006_v47 = vpack.c.bf16 %v6040_v32, %v987_v35  ;;  %v1007_v9 = vpack.c.bf16 %v6050_v40, %v989_v11  ;;  %v6068_v35 = vld [vmem:[#allocation2 + $0xf8] sm:$0xff]  ;;  %v1549_v30 = vpack.c.bf16 %v1518_v43, %v1485_v12  ;;  %v3084_v5 = vld [vmem:[#allocation2 + $0x29] sm:$0xff] }
  0x8a   : > { %4850 = vmatprep.mubr.msk.bf16.mxu0 %vm280_vm1, %v2825_v0  ;;  %v4167_v0 = vsel %vm767_vm6, 1.0, %v6581_v49  ;;  %v6072_v49 = vmul.f32 %v6032_v15, %v959_v61  ;;  %v6632_v43 = vpack.c.bf16 %v5584_v53, %v5398_v31  ;;  %v5219_v31 = vld [vmem:[%s6503_s1 + $0x8] sm:$0x3]  ;;  %v2832_v53 = vpack.c.bf16 %v6040_v32, %v2811_v18  ;;  %v3089_v26 = vld [vmem:[#allocation2 + $0x51] sm:$0xff] }
  0x8b   : > { %v991_v63 = vmul.f32 %v4167_v0, %v959_v61  ;;  %v6074_v11 = vmul.f32 %v4167_v0, %v2785_v23  ;;  %v2834_v36 = vpack.c.bf16 %v6068_v35, %v2815_v6  ;;  %v2819_v28 = vmul.f32 %v4167_v0, %v2787_v51  ;;  %v2788_v61 = vld [vmem:[#allocation2 + $0x118] sm:$0xff]  ;;  %v3096_v18 = vld [vmem:[#allocation2 + $0x89] sm:$0xff] }
  0x8c   : > { %v3116_v0 = vpack.c.bf16 %v3086_v2, %v3085_v37  ;;  %v6640_v39 = vpack.c.bf16 %v5678_v55, %v5578_v45  ;;  %v6641_v4 = vpack.c.bf16 %v5710_v57, %v5611_v16  ;;  %v3118_v58 = vpack.c.bf16 %v3090_v8, %v3089_v26  ;;  %v6643_v45 = vld [vmem:[#allocation20_spill] sm:$0xff]  ;;  %v3102_v2 = vld [vmem:[#allocation2 + $0xb9] sm:$0xff]  ;;  %v6663_v26 = vld [vmem:[#allocation3_spill] sm:$0xff] }
  0x8d   : > { %v1008_v19 = vpack.c.bf16 %v6068_v35, %v991_v63  ;;  %v1942_v63 = vsel %vm1108_vm0, %v5787_v59, 0  ;;  %v2813_v59 = vmul.f32 %v5982_v48, %v957_v25  ;;  %v2817_v25 = vmul.f32 %v6032_v15, %v2785_v23  ;;  %v3087_v23 = vld [vmem:[#allocation2 + $0x41] sm:$0xff]  ;;  %v6646_v16 = vld [vmem:[#allocation24_spill] sm:$0xff] }
  0x8e   : > { %v2836_v15 = vpack.c.bf16 %v2788_v61, %v2819_v28  ;;  %v3097_v51 = vld [vmem:[#allocation2 + $0x91] sm:$0xff]  ;;  %v3100_v28 = vld [vmem:[#allocation2 + $0xa9] sm:$0xff] }
  0x8f   : > { %v2833_v52 = vpack.c.bf16 %v6050_v40, %v2813_v59  ;;  %v2835_v48 = vpack.c.bf16 %v6079_v29, %v2817_v25  ;;  %v6653_v25 = vld [vmem:[#allocation28_spill] sm:$0xff] }
  0x90   : > { %4697 = vmatmul.mubr.msk.bf16.gmra.mrb[24].mxu1 %vm280_vm1, %v1006_v47  ;;  %v2828_v47 = vpack.c.bf16 %v5949_v42, %v2803_v33  ;;  %v2831_v33 = vpack.c.bf16 %v6013_v62, %v2809_v3  ;;  %v6642_v3 = vld [vmem:[#allocation22_spill] sm:$0xff]  ;;  %v6656_v61 = vld [vmem:[#allocation40_spill] sm:$0xff] }
  0x91   : > { %4851 = vmatmul.mubr.msk.bf16.gmra.mrb[8].mxu0 %vm280_vm1, %v2826_v27  ;;  %4700 = vmatprep.mubr.msk.bf16.mxu1 %vm280_vm1, %v1007_v9  ;;  %v1889_v9 = vpack.c.bf16 %v6068_v35, %v6072_v49  ;;  %v1890_v27 = vpack.c.bf16 %v6079_v29, %v6074_v11  ;;  %v6644_v55 = vpack.c.bf16 %v6642_v3, %v6643_v45  ;;  %v3101_v37 = vld [vmem:[#allocation2 + $0xb1] sm:$0xff]  ;;  %v6667_v45 = vld [vmem:[#allocation34_spill] sm:$0xff]  ;;  %v6700_v35 = vld [vmem:[#allocation15_spill] sm:$0xff] }
  0x92   : > { %4854 = vmatprep.mubr.msk.bf16.mxu0 %vm280_vm1, %v2827_v34  ;;  %v2830_v34 = vpack.c.bf16 %v6000_v13, %v2807_v60  ;;  %v6664_v8 = vld [vmem:[#allocation32_spill] sm:$0xff]  ;;  %v6666_v3 = vld [vmem:[#allocation33_spill] sm:$0xff]  ;;  %v6702_v11 = vld [vmem:[#allocation18_spill] sm:$0xff] }
  0x98   : > { %4701 = vmatmul.mubr.msk.bf16.gmra.mrb[28].mxu1 %vm280_vm1, %v1008_v19  ;;  %v3091_v19 = vld [vmem:[#allocation2 + $0x61] sm:$0xff] }
  0x99   : > { %4855 = vmatmul.mubr.msk.bf16.gmra.mrb[12].mxu0 %vm280_vm1, %v2828_v47  ;;  %4706 = vmatprep.mubr.msk.bf16.mxu1 %vm280_vm1, %v1549_v30  ;;  %v3088_v30 = vld [vmem:[#allocation2 + $0x49] sm:$0xff] }
  0x9a   : > { %4858 = vmatprep.mubr.msk.bf16.mxu0 %vm280_vm1, %v2829_v41  ;;  %v3115_v41 = vpack.c.bf16 %v3084_v5, %v3083_v38  ;;  %v3117_v12 = vpack.c.bf16 %v3088_v30, %v3087_v23  ;;  %v3092_v47 = vld [vmem:[#allocation2 + $0x69] sm:$0xff]  ;;  %v3103_v23 = vld [vmem:[#allocation2 + $0xc1] sm:$0xff] }
  0x9b   : > { %v3119_v60 = vpack.c.bf16 %v3092_v47, %v3091_v19  ;;  %v3104_v30 = vld [vmem:[#allocation2 + $0xc9] sm:$0xff]  ;;  %v6665_v19 = vpack.c.bf16 %v5796_v22, %v6664_v8  ;;  %v3105_v47 = vld [vmem:[#allocation2 + $0xd1] sm:$0xff] }
  0x9c   : > { %v6685_v8 = vld [vmem:[#allocation47_spill] sm:$0xff] }
  0xa0   : > { %4707 = vmatmul.mubr.msk.bf16.vlgmr.msra.gmra.mrb[0].mxu1 %vm280_vm1, %v6632_v43  ;;  %v3095_v43 = vld [vmem:[#allocation2 + $0x81] sm:$0xff] }
  0xa1   : > { %4739 = vmatpush3.bf16.msra.mxu1 %v1942_v63  ;;  %4859 = vmatmul.mubr.msk.bf16.gmra.mrb[16].mxu0 %vm280_vm1, %v2830_v34  ;;  %v6645_v34 = vld [vmem:[#allocation23_spill] sm:$0xff]  ;;  %v3093_v63 = vld [vmem:[#allocation2 + $0x71] sm:$0xff]  ;;  %v3121_v59 = vpack.c.bf16 %v3096_v18, %v3095_v43 }
  0xa2   : > { %4710 = vmatprep.mubr.msk.bf16.mxu1 %vm280_vm1, %v6633_v44  ;;  %4862 = vmatprep.mubr.msk.bf16.mxu0 %vm280_vm1, %v2831_v33  ;;  %v6647_v57 = vpack.c.bf16 %v6645_v34, %v6646_v16  ;;  %v3094_v33 = vld [vmem:[#allocation2 + $0x79] sm:$0xff]  ;;  %v6669_v34 = vld [vmem:[#allocation36_spill] sm:$0xff] }
  0xa3   : > { %5205 = vmatprep.subr.msk.bf16.mxu1 %vm1108_vm0, %v5219_v31  ;;  %v3120_v44 = vpack.c.bf16 %v3094_v33, %v3093_v63  ;;  %v6648_v31 = vld [vmem:[#allocation26_spill] sm:$0xff]  ;;  %v6670_v16 = vld [vmem:[#allocation37_spill] sm:$0xff]  ;;  %v3112_v33 = vld [vmem:[#allocation2 + $0x109] sm:$0xff]  ;;  %vm3831_vm0 = vcmask 60416  }
  0xa4   : > { %v6671_v22 = vpack.c.bf16 %v6669_v34, %v6670_v16  ;;  %v3111_v63 = vld [vmem:[#allocation2 + $0x101] sm:$0xff]  ;;  %v3378_v18 = vld [vmem:[#allocation2 + $0x2a] sm:$0xff] }
  0xa5   : > { %v6231_v43 = vpack.c.bf16 %v3112_v33, %v3111_v63  ;;  %v3385_v16 = vld [vmem:[#allocation2 + $0x62] sm:$0xff]  ;;  %v3390_v63 = vld [vmem:[#allocation2 + $0x8a] sm:$0xff]  ;;  %v6691_v33 = vld [vmem:[#allocation49_spill] sm:$0xff] }
  0xa8   : > { %4711 = vmatmul.mubr.msk.bf16.gmra.mrb[4].mxu1 %vm280_vm1, %v6634_v17  ;;  %v6651_v17 = vld [vmem:[#allocation35_spill] sm:$0xff] }
  0xa9   : > { %4863 = vmatmul.mubr.msk.bf16.gmra.mrb[20].mxu0 %vm280_vm1, %v2832_v53  ;;  %4714 = vmatprep.mubr.msk.bf16.mxu1 %vm280_vm1, %v6635_v46  ;;  %v6649_v53 = vld [vmem:[#allocation27_spill] sm:$0xff]  ;;  %v6652_v46 = vld [vmem:[#allocation41_spill] sm:$0xff] }
  0xaa   : > { %4866 = vmatprep.mubr.msk.bf16.mxu0 %vm280_vm1, %v2833_v52  ;;  %v6650_v52 = vpack.c.bf16 %v6648_v31, %v6649_v53  ;;  %v1548_v6 = vmul.f32 %v6652_v46, %v6651_v17  ;;  %v6676_v53 = vld [vmem:[#allocation13_spill] sm:$0xff] }
  0xac   : > { %v1564_v38 = vpack.c.bf16 %v1548_v6, %v6656_v61 }
  0xb0   : > { %4715 = vmatmul.mubr.msk.bf16.gmra.mrb[8].mxu1 %vm280_vm1, %v6636_v21  ;;  %v3098_v21 = vld [vmem:[#allocation2 + $0x99] sm:$0xff] }
  0xb1   : > { %4867 = vmatmul.mubr.msk.bf16.gmra.mrb[24].mxu0 %vm280_vm1, %v2834_v36  ;;  %4718 = vmatprep.mubr.msk.bf16.mxu1 %vm280_vm1, %v6637_v14  ;;  %v6654_v36 = vld [vmem:[#allocation29_spill] sm:$0xff]  ;;  %v3099_v14 = vld [vmem:[#allocation2 + $0xa1] sm:$0xff]  ;;  %v6187_v5 = vpack.c.bf16 %v3098_v21, %v3097_v51 }
  0xb2   : > { %4870 = vmatprep.mubr.msk.bf16.mxu0 %vm280_vm1, %v2835_v48  ;;  %v6655_v48 = vpack.c.bf16 %v6653_v25, %v6654_v36  ;;  %v3113_v25 = vld [vmem:[#allocation2 + $0x111] sm:$0xff]  ;;  %v3114_v36 = vld [vmem:[#allocation2 + $0x119] sm:$0xff]  ;;  %v3377_v51 = vld [vmem:[#allocation2 + $0x22] sm:$0xff] }
  0xb3   : > { %v3130_v21 = vpack.c.bf16 %v3114_v36, %v3113_v25 }
  0xb8   : > { %4719 = vmatmul.mubr.msk.bf16.gmra.mrb[12].mxu1 %vm280_vm1, %v6638_v20  ;;  %v6658_v20 = vld [vmem:[#allocation30_spill] sm:$0xff] }
  0xb9   : > { %4871 = vmatmul.mubr.msk.bf16.gmra.mrb[28].mxu0 %vm280_vm1, %v2836_v15  ;;  %4722 = vmatprep.mubr.msk.bf16.mxu1 %vm280_vm1, %v6639_v50  ;;  %v6189_v15 = vpack.c.bf16 %v3100_v28, %v3099_v14  ;;  %v3380_v28 = vld [vmem:[#allocation2 + $0x3a] sm:$0xff] }
  0xba   : > { %4876 = vmatprep.mubr.msk.bf16.mxu0 %vm280_vm1, %v3115_v41  ;;  %v6657_v41 = vld [vmem:[#allocation14_spill] sm:$0xff] }
  0xbb   : > { %v6659_v50 = vpack.c.bf16 %v6657_v41, %v6658_v20  ;;  %v6679_v41 = vld [vmem:[#allocation44_spill] sm:$0xff] }
  0xbc   : > { %v6680_v20 = vpack.c.bf16 %v5918_v10, %v6679_v41  ;;  %v3384_v10 = vld [vmem:[#allocation2 + $0x5a] sm:$0xff]  ;;  %v3393_v41 = vld [vmem:[#allocation2 + $0xa2] sm:$0xff] }
  0xc0   : > { %4723 = vmatmul.mubr.msk.bf16.gmra.mrb[16].mxu1 %vm280_vm1, %v6640_v39  ;;  %v6661_v39 = vld [vmem:[#allocation31_spill] sm:$0xff] }
  0xc1   : > { %4877 = vmatmul.mubr.msk.bf16.vlgmr.msra.gmra.mrb[0].mxu0 %vm280_vm1, %v3116_v0  ;;  %4726 = vmatprep.mubr.msk.bf16.mxu1 %vm280_vm1, %v6641_v4  ;;  %v6200_v0 = vpack.c.bf16 %v3102_v2, %v3101_v37  ;;  %v6683_v37 = vld [vmem:[#allocation4_spill] sm:$0xff] }
  0xc2   : > { %4909 = vmatpush3.bf16.msra.mxu0 %v3508_v7  ;;  %4880 = vmatprep.mubr.msk.bf16.mxu0 %vm280_vm1, %v3117_v12  ;;  %v6202_v12 = vpack.c.bf16 %v3104_v30, %v3103_v23  ;;  %v6660_v7 = vld [vmem:[#allocation17_spill] sm:$0xff]  ;;  %v3412_v2 = vmul.f32 %v6683_v37, %v3380_v28  ;;  %v6699_v28 = vld [vmem:[#allocation11_spill] sm:$0xff]  ;;  %v6701_v37 = vld [vmem:[#allocation16_spill] sm:$0xff] }
  0xc3   : > { %v6662_v4 = vpack.c.bf16 %v6660_v7, %v6661_v39  ;;  %v6684_v23 = vld [vmem:[#allocation5_spill] sm:$0xff]  ;;  %v3381_v7 = vld [vmem:[#allocation2 + $0x42] sm:$0xff] }
  0xc8   : > { %4727 = vmatmul.mubr.msk.bf16.gmra.mrb[20].mxu1 %vm280_vm1, %v6644_v55  ;;  %v6668_v55 = vpack.c.bf16 %v6666_v3, %v6667_v45  ;;  %v3383_v45 = vld [vmem:[#allocation2 + $0x52] sm:$0xff] }
  0xc9   : > { %4881 = vmatmul.mubr.msk.bf16.gmra.mrb[4].mxu0 %vm280_vm1, %v3118_v58  ;;  %4730 = vmatprep.mubr.msk.bf16.mxu1 %vm280_vm1, %v6647_v57  ;;  %v3106_v58 = vld [vmem:[#allocation2 + $0xd9] sm:$0xff]  ;;  %v6672_v57 = vld [vmem:[#allocation12_spill] sm:$0xff] }
  0xca   : > { %4884 = vmatprep.mubr.msk.bf16.mxu0 %vm280_vm1, %v3119_v60  ;;  %v6217_v60 = vpack.c.bf16 %v3106_v58, %v3105_v47  ;;  %v6689_v58 = vld [vmem:[#allocation6_spill] sm:$0xff] }
  0xcb   : > { %v3416_v3 = vmul.f32 %v6689_v58, %v3384_v10  ;;  %v3401_v10 = vld [vmem:[#allocation2 + $0xe2] sm:$0xff]  ;;  %v2166_v58 = vld [vmem:[#allocation2 + $0xf9] sm:$0xff] }
  0xd0   : > { %4731 = vmatmul.mubr.msk.bf16.gmra.mrb[24].mxu1 %vm280_vm1, %v6650_v52  ;;  %v6677_v52 = vld [vmem:[#allocation43_spill] sm:$0xff] }
  0xd1   : > { %4885 = vmatmul.mubr.msk.bf16.gmra.mrb[8].mxu0 %vm280_vm1, %v3120_v44  ;;  %4734 = vmatprep.mubr.msk.bf16.mxu1 %vm280_vm1, %v6655_v48  ;;  %v6673_v44 = vld [vmem:[#allocation39_spill] sm:$0xff]  ;;  %v6678_v6 = vpack.c.bf16 %v5903_v54, %v6677_v52  ;;  %v3410_v48 = vmul.f32 %v5388_v24, %v3378_v18  ;;  %v6681_v54 = vld [vmem:[#allocation46_spill] sm:$0xff]  ;;  %v3379_v24 = vld [vmem:[#allocation2 + $0x32] sm:$0xff]  ;;  %v6692_v18 = vpack.c.bf16 %v6013_v62, %v6691_v33 }
  0xd2   : > { %4888 = vmatprep.mubr.msk.bf16.mxu0 %vm280_vm1, %v3121_v59  ;;  %v6674_v59 = vld [vmem:[#allocation38_spill] sm:$0xff]  ;;  %v3442_v39 = vpack.c.bf16 %v3412_v2, %v3379_v24 }
  0xd3   : > { %v6675_v31 = vpack.c.bf16 %v6673_v44, %v6674_v59  ;;  %v3441_v14 = vpack.c.bf16 %v3410_v48, %v3377_v51  ;;  %v6694_v44 = vld [vmem:[#allocation8_spill] sm:$0xff]  ;;  %v3392_v62 = vld [vmem:[#allocation2 + $0x9a] sm:$0xff]  ;;  %v3397_v24 = vld [vmem:[#allocation2 + $0xc2] sm:$0xff] }
  0xd4   : > { %v3394_v48 = vld [vmem:[#allocation2 + $0xaa] sm:$0xff]  ;;  %v6696_v51 = vld [vmem:[#allocation50_spill] sm:$0xff] }
  0xd8   : > { %4735 = vmatmul.mubr.msk.bf16.gmra.mrb[28].mxu1 %vm280_vm1, %v1564_v38  ;;  %v3382_v38 = vld [vmem:[#allocation2 + $0x4a] sm:$0xff] }
  0xd9   : > { %4889 = vmatmul.mubr.msk.bf16.gmra.mrb[12].mxu0 %vm280_vm1, %v6187_v5  ;;  %4740 = vmatprep.mubr.msk.bf16.mxu1 %vm280_vm1, %v6659_v50  ;;  %v6682_v50 = vpack.c.bf16 %v5949_v42, %v6681_v54  ;;  %v3414_v30 = vmul.f32 %v6684_v23, %v3382_v38  ;;  %v6687_v42 = vld [vmem:[#allocation48_spill] sm:$0xff]  ;;  %v3426_v38 = vmul.f32 %v6699_v28, %v3394_v48 }
  0xda   : > { %4892 = vmatprep.mubr.msk.bf16.mxu0 %vm280_vm1, %v6189_v15  ;;  %v6688_v47 = vpack.c.bf16 %v6000_v13, %v6687_v42  ;;  %v6693_v13 = vpack.c.bf16 %v6040_v32, %v6044_v1  ;;  %v6698_v32 = vld [vmem:[#allocation10_spill] sm:$0xff] }
  0xdb   : > { %v3424_v1 = vmul.f32 %v6698_v32, %v3392_v62  ;;  %v3449_v54 = vpack.c.bf16 %v3426_v38, %v3393_v41 }
  0xe0   : > { %4741 = vmatmul.mubr.msk.bf16.vlgmr.msra.gmra.mrb[0].mxu1 %vm280_vm1, %v6662_v4  ;;  %v3443_v4 = vpack.c.bf16 %v3414_v30, %v3381_v7  ;;  %v3400_v7 = vld [vmem:[#allocation2 + $0xda] sm:$0xff] }
  0xe1   : > { %4943 = vmatpush3.bf16.msra.mxu1 %v6663_v26  ;;  %4893 = vmatmul.mubr.msk.bf16.gmra.mrb[16].mxu0 %vm280_vm1, %v6200_v0  ;;  %v3386_v26 = vld [vmem:[#allocation2 + $0x6a] sm:$0xff]  ;;  %v3432_v29 = vmul.f32 %v6702_v11, %v3400_v7 }
  0xe2   : > { %4744 = vmatprep.mubr.msk.bf16.mxu1 %vm280_vm1, %v6665_v19  ;;  %4896 = vmatprep.mubr.msk.bf16.mxu0 %vm280_vm1, %v6202_v12  ;;  %v6686_v19 = vpack.c.bf16 %v5962_v56, %v6685_v8  ;;  %v3388_v56 = vld [vmem:[#allocation2 + $0x7a] sm:$0xff] }
  0xe3   : > { %v3420_v59 = vmul.f32 %v6694_v44, %v3388_v56  ;;  %v3408_v56 = vld [vmem:[#allocation2 + $0x11a] sm:$0xff] }
  0xe8   : > { %4745 = vmatmul.mubr.msk.bf16.gmra.mrb[4].mxu1 %vm280_vm1, %v6668_v55  ;;  %v6690_v55 = vld [vmem:[#allocation7_spill] sm:$0xff] }
  0xe9   : > { %4897 = vmatmul.mubr.msk.bf16.gmra.mrb[20].mxu0 %vm280_vm1, %v6217_v60  ;;  %4748 = vmatprep.mubr.msk.bf16.mxu1 %vm280_vm1, %v6671_v22  ;;  %v3418_v34 = vmul.f32 %v6690_v55, %v3386_v26  ;;  %v3444_v22 = vpack.c.bf16 %v3416_v3, %v3383_v45  ;;  %v6705_v3 = vld [vmem:[#allocation42_spill] sm:$0xff]  ;;  %v6706_v45 = vld [vmem:[#allocation25_spill] sm:$0xff] }
  0xea   : > { %4900 = vmatprep.mubr.msk.bf16.mxu0 %vm280_vm1, %v6672_v57  ;;  %v3438_v55 = vmul.f32 %v6706_v45, %v6705_v3 }
  0xeb   : > { %v3445_v57 = vpack.c.bf16 %v3418_v34, %v3385_v16 }
  0xf0   : > { %4749 = vmatmul.mubr.msk.bf16.gmra.mrb[8].mxu1 %vm280_vm1, %v6675_v31  ;;  %v3387_v31 = vld [vmem:[#allocation2 + $0x72] sm:$0xff] }
  0xf1   : > { %4901 = vmatmul.mubr.msk.bf16.gmra.mrb[24].mxu0 %vm280_vm1, %v6676_v53  ;;  %4752 = vmatprep.mubr.msk.bf16.mxu1 %vm280_vm1, %v6678_v6  ;;  %v6695_v53 = vld [vmem:[#allocation9_spill] sm:$0xff]  ;;  %v3389_v6 = vld [vmem:[#allocation2 + $0x82] sm:$0xff]  ;;  %v3446_v25 = vpack.c.bf16 %v3420_v59, %v3387_v31 }
  0xf2   : > { %4904 = vmatprep.mubr.msk.bf16.mxu0 %vm280_vm1, %v6231_v43  ;;  %v3422_v52 = vmul.f32 %v6695_v53, %v3390_v63 }
  0xf4   : > { %v3447_v36 = vpack.c.bf16 %v3422_v52, %v3389_v6 }
  0xf8   : > { %4753 = vmatmul.mubr.msk.bf16.gmra.mrb[12].mxu1 %vm280_vm1, %v6680_v20 }
  0xf9   : > { %4905 = vmatmul.mubr.msk.bf16.gmra.mrb[28].mxu0 %vm280_vm1, %v3130_v21  ;;  %4756 = vmatprep.mubr.msk.bf16.mxu1 %vm280_vm1, %v6682_v50  ;;  %v6697_v21 = vpack.c.bf16 %v6050_v40, %v6696_v51  ;;  %v3396_v40 = vld [vmem:[#allocation2 + $0xba] sm:$0xff]  ;;  %v3398_v50 = vld [vmem:[#allocation2 + $0xca] sm:$0xff] }
  0xfa   : > { %4910 = vmatprep.mubr.msk.bf16.mxu0 %vm280_vm1, %v3441_v14  ;;  %v3391_v14 = vld [vmem:[#allocation2 + $0x92] sm:$0xff]  ;;  %v3428_v49 = vmul.f32 %v6700_v35, %v3396_v40  ;;  %v3430_v2 = vmul.f32 %v6701_v37, %v3398_v50 }
  0xfb   : > { %v3448_v20 = vpack.c.bf16 %v3424_v1, %v3391_v14 }
  0xfc   : > { %v3451_v30 = vpack.c.bf16 %v3430_v2, %v3397_v24 }
 0x100   : > { %4757 = vmatmul.mubr.msk.bf16.gmra.mrb[16].mxu1 %vm280_vm1, %v6686_v19  ;;  %v6704_v19 = vld [vmem:[#allocation21_spill] sm:$0xff] }
 0x101   : > { %4911 = vmatmul.mubr.msk.bf16.vlgmr.msra.gmra.mrb[0].mxu0 %vm280_vm1, %v3442_v39  ;;  %4760 = vmatprep.mubr.msk.bf16.mxu1 %vm280_vm1, %v6688_v47  ;;  %v3402_v39 = vld [vmem:[#allocation2 + $0xea] sm:$0xff]  ;;  %v3436_v42 = vmul.f32 %v6704_v19, %v6651_v17  ;;  %v3440_v17 = vmul.f32 %v6652_v46, %v3408_v56 }
 0x102   : > { %4914 = vmatprep.mubr.msk.bf16.mxu0 %vm280_vm1, %v3443_v4  ;;  %v2165_v47 = vld [vmem:[#allocation2 + $0xf1] sm:$0xff] }
 0x103   : > { %v2183_v16 = vpack.c.bf16 %v2166_v58, %v2165_v47 }
 0x108   : > { %4761 = vmatmul.mubr.msk.bf16.gmra.mrb[20].mxu1 %vm280_vm1, %v6692_v18 }
 0x109   : > { %4915 = vmatmul.mubr.msk.bf16.gmra.mrb[4].mxu0 %vm280_vm1, %v3444_v22  ;;  %4764 = vmatprep.mubr.msk.bf16.mxu1 %vm280_vm1, %v6693_v13  ;;  %v6707_v22 = vld [vmem:[#allocation45_spill] sm:$0xff] }
 0x10a   : > { %4918 = vmatprep.mubr.msk.bf16.mxu0 %vm280_vm1, %v3445_v57  ;;  %v3455_v57 = vpack.c.bf16 %v3438_v55, %v6707_v22 }
 0x110   : > { %4765 = vmatmul.mubr.msk.bf16.gmra.mrb[24].mxu1 %vm280_vm1, %v6697_v21 }
 0x111   : > { %4919 = vmatmul.mubr.msk.bf16.gmra.mrb[8].mxu0 %vm280_vm1, %v3446_v25  ;;  %4768 = vmatprep.mubr.msk.bf16.mxu1 %vm280_vm1, %v1889_v9  ;;  %v3395_v9 = vld [vmem:[#allocation2 + $0xb2] sm:$0xff] }
 0x112   : > { %4922 = vmatprep.mubr.msk.bf16.mxu0 %vm280_vm1, %v3447_v36  ;;  %v3450_v23 = vpack.c.bf16 %v3428_v49, %v3395_v9 }
 0x118   : > { %4769 = vmatmul.mubr.msk.bf16.gmra.mrb[28].mxu1 %vm280_vm1, %v1890_v27  ;;  %v3399_v27 = vld [vmem:[#allocation2 + $0xd2] sm:$0xff] }
 0x119   : > { %4923 = vmatmul.mubr.msk.bf16.gmra.mrb[12].mxu0 %vm280_vm1, %v3448_v20  ;;  %4790 = vmatprep.mubr.msk.bf16.mxu1 %vm280_vm1, %v6187_v5  ;;  %v6703_v5 = vld [vmem:[#allocation19_spill] sm:$0xff]  ;;  %v3452_v26 = vpack.c.bf16 %v3432_v29, %v3399_v27 }
 0x11a   : > { %4926 = vmatprep.mubr.msk.bf16.mxu0 %vm280_vm1, %v3449_v54  ;;  %v3434_v4 = vmul.f32 %v6703_v5, %v3402_v39 }
 0x11c   : > { %v3453_v8 = vpack.c.bf16 %v3434_v4, %v3401_v10 }
 0x120   : > { %4791 = vmatmul.mubr.msk.bf16.vlgmr.msra.gmra.mrb[16].mxu1 %vm280_vm1, %v6189_v15  ;;  %v2163_v15 = vld [vmem:[#allocation2 + $0xe1] sm:$0xff] }
 0x121   : > { %4927 = vmatmul.mubr.msk.bf16.gmra.mrb[16].mxu0 %vm280_vm1, %v3450_v23  ;;  %4794 = vmatprep.mubr.msk.bf16.mxu1 %vm280_vm1, %v6200_v0  ;;  %v2164_v0 = vld [vmem:[#allocation2 + $0xe9] sm:$0xff] }
 0x122   : > { %4930 = vmatprep.mubr.msk.bf16.mxu0 %vm280_vm1, %v3451_v30  ;;  %v2182_v34 = vpack.c.bf16 %v2164_v0, %v2163_v15 }
 0x128   : > { %4795 = vmatmul.mubr.msk.bf16.gmra.mrb[20].mxu1 %vm280_vm1, %v6202_v12  ;;  %v3454_v12 = vpack.c.bf16 %v3436_v42, %v6656_v61 }
 0x129   : > { %4931 = vmatmul.mubr.msk.bf16.gmra.mrb[20].mxu0 %vm280_vm1, %v3452_v26  ;;  %4798 = vmatprep.mubr.msk.bf16.mxu1 %vm280_vm1, %v6217_v60  ;;  %v3407_v60 = vld [vmem:[#allocation2 + $0x112] sm:$0xff] }
 0x12a   : > { %4934 = vmatprep.mubr.msk.bf16.mxu0 %vm280_vm1, %v3453_v8  ;;  %v3456_v63 = vpack.c.bf16 %v3440_v17, %v3407_v60 }
 0x130   : > { %4799 = vmatmul.mubr.msk.bf16.gmra.mrb[24].mxu1 %vm280_vm1, %v2182_v34 }
 0x131   : > { %4935 = vmatmul.mubr.msk.bf16.gmra.mrb[24].mxu0 %vm280_vm1, %v3454_v12  ;;  %4802 = vmatprep.mubr.msk.bf16.mxu1 %vm280_vm1, %v2183_v16 }
 0x132   : > { %4938 = vmatprep.mubr.msk.bf16.mxu0 %vm280_vm1, %v3455_v57 }
 0x138   : > { %4803 = vmatmul.mubr.msk.bf16.gmra.mrb[28].mxu1 %vm280_vm1, %v6231_v43 }
 0x139   : > { %4939 = vmatmul.mubr.msk.bf16.gmra.mrb[28].mxu0 %vm280_vm1, %v3456_v63  ;;  %vm3864_vm1 = vcmask 64512  }
 0x1b3   : > { %v4742_v61 = vpop.f32.mrb[0].mxu1 }
 0x1b4   : > { %v1978_v33 = vpop.f32.mrb[1].mxu1 }
 0x1b5   : > { %v4743_v18 = vpop.f32.mrb[2].mxu1 }
 0x1b6   : > { %v1981_v13 = vpop.f32.mrb[3].mxu1 }
 0x1bb   : > { %v4746_v44 = vpop.f32.mrb[4].mxu1 }
 0x1bc   : > { %v1994_v59 = vpop.f32.mrb[5].mxu1 }
 0x1bd   : > { %v4747_v31 = vpop.f32.mrb[6].mxu1 }
 0x1be   : > { %v1997_v53 = vpop.f32.mrb[7].mxu1 }
 0x1c3   : > { %v6332_v52 = vpop.f32.mrb[8].mxu1 }
 0x1c4   : > { %v6334_v46 = vpop.f32.mrb[9].mxu1 }
 0x1c5   : > { %v6336_v6 = vpop.f32.mrb[10].mxu1 }
 0x1c6   : > { %v6338_v25 = vpop.f32.mrb[11].mxu1 }
 0x1cb   : > { %v6340_v43 = vpop.f32.mrb[12].mxu1 }
 0x1cc   : > { %v6342_v36 = vpop.f32.mrb[13].mxu1 }
 0x1cd   : > { %v6344_v62 = vpop.f32.mrb[14].mxu1 }
 0x1ce   : > { %v6346_v48 = vpop.f32.mrb[15].mxu1 }
 0x1d4   : > { %v4912_v51 = vpop.f32.mrb[0].mxu0 }
 0x1d5   : > { %v4944_v21 = vadd.f32 %v4912_v51, %v4742_v61  ;;  %v3544_v32 = vpop.f32.mrb[1].mxu0 }
 0x1d6   : > { %v4945_v1 = vadd.f32 %v3544_v32, %v1978_v33  ;;  %v4913_v14 = vpop.f32.mrb[2].mxu0 }
 0x1d7   : > { %v4374_v28 = vpack.c.bf16 %v4944_v21, %v4944_v21  ;;  %v4946_v38 = vadd.f32 %v4913_v14, %v4743_v18  ;;  %v3547_v41 = vpop.f32.mrb[3].mxu0  ;;  %v3938_v50 = vmul.f32 %v4944_v21, %v4944_v21  ;;  %v3868_v30 = vsel %vm3864_vm1, %v4944_v21, 0.0 }
 0x1d8   : > { %v4372_v20 = vpack.c.bf16 %v4945_v1, %v4945_v1  ;;  %v3936_v54 = vmul.f32 %v4945_v1, %v4945_v1  ;;  %v4947_v40 = vadd.f32 %v3547_v41, %v1981_v13  ;;  %v3865_v49 = vsel %vm3864_vm1, %v4945_v1, 0.0 }
 0x1d9   : > { %3834 = vst.msk [vmem:[%s6353_s19 + $0x8] sm:$0xf] %vm3831_vm0, %v4374_v28  ;;  %v4375_v35 = vpack.c.bf16 %v4946_v38, %v4946_v38  ;;  %v3939_v24 = vmul.f32 %v4946_v38, %v4946_v38  ;;  %v3971_v10 = vsel %vm3864_vm1, %v3938_v50, 0.0  ;;  %v3870_v15 = vsel %vm3864_vm1, %v4946_v38, 0.0 }
 0x1da   : > { %3832 = vst.msk [vmem:[%s6353_s19] sm:$0xf] %vm3831_vm0, %v4372_v20  ;;  %v4373_v9 = vpack.c.bf16 %v4947_v40, %v4947_v40  ;;  %v3866_v37 = vsel %vm3864_vm1, %v4947_v40, 0.0  ;;  %v3937_v2 = vmul.f32 %v4947_v40, %v4947_v40  ;;  %v3968_v7 = vsel %vm3864_vm1, %v3936_v54, 0.0 }
 0x1db   : > { %3835 = vst.msk [vmem:[%s6353_s19 + $0xc] sm:$0xf] %vm3831_vm0, %v4375_v35  ;;  %v3867_v23 = vadd.f32 %v3866_v37, %v3865_v49  ;;  %v3973_v0 = vsel %vm3864_vm1, %v3939_v24, 0.0 }
 0x1dc   : > { %3833 = vst.msk [vmem:[%s6353_s19 + $0x4] sm:$0xf] %vm3831_vm0, %v4373_v9  ;;  %v3969_v39 = vsel %vm3864_vm1, %v3937_v2, 0.0  ;;  %v4916_v11 = vpop.f32.mrb[4].mxu0 }
 0x1dd   : > { %v3869_v29 = vadd.f32 %v3868_v30, %v3867_v23  ;;  %v3970_v27 = vadd.f32 %v3969_v39, %v3968_v7  ;;  %v4948_v5 = vadd.f32 %v4916_v11, %v4746_v44  ;;  %v3560_v4 = vpop.f32.mrb[5].mxu0 }
 0x1de   : > { %v4949_v26 = vadd.f32 %v3560_v4, %v1994_v59  ;;  %v4917_v8 = vpop.f32.mrb[6].mxu0 }
 0x1df   : > { %v3972_v19 = vadd.f32 %v3971_v10, %v3970_v27  ;;  %v4378_v42 = vpack.c.bf16 %v4948_v5, %v4948_v5  ;;  %v3563_v47 = vpop.f32.mrb[7].mxu0  ;;  %v3871_v3 = vadd.f32 %v3870_v15, %v3869_v29  ;;  %v4950_v12 = vadd.f32 %v4917_v8, %v4747_v31 }
 0x1e0   : > { %v4376_v58 = vpack.c.bf16 %v4949_v26, %v4949_v26  ;;  %v3872_v45 = vsel %vm3864_vm1, %v4949_v26, 0.0  ;;  %v3940_v55 = vmul.f32 %v4949_v26, %v4949_v26  ;;  %v4951_v16 = vadd.f32 %v3563_v47, %v1997_v53 }
 0x1e1   : > { %3838 = vst.msk [vmem:[%s6353_s19 + $0x18] sm:$0xf] %vm3831_vm0, %v4378_v42  ;;  %v3974_v34 = vadd.f32 %v3973_v0, %v3972_v19  ;;  %v3873_v22 = vadd.f32 %v3872_v45, %v3871_v3  ;;  %v3942_v56 = vmul.f32 %v4948_v5, %v4948_v5  ;;  %v4379_v60 = vpack.c.bf16 %v4950_v12, %v4950_v12 }
 0x1e2   : > { %3836 = vst.msk [vmem:[%s6353_s19 + $0x10] sm:$0xf] %vm3831_vm0, %v4376_v58  ;;  %v3975_v57 = vsel %vm3864_vm1, %v3940_v55, 0.0  ;;  %v4377_v63 = vpack.c.bf16 %v4951_v16, %v4951_v16  ;;  %v3874_v61 = vsel %vm3864_vm1, %v4951_v16, 0.0  ;;  %v3941_v33 = vmul.f32 %v4951_v16, %v4951_v16 }
 0x1e3   : > { %v3976_v17 = vadd.f32 %v3975_v57, %v3974_v34  ;;  %3839 = vst.msk [vmem:[%s6353_s19 + $0x1c] sm:$0xf] %vm3831_vm0, %v4379_v60  ;;  %v3875_v13 = vadd.f32 %v3874_v61, %v3873_v22  ;;  %v3876_v31 = vsel %vm3864_vm1, %v4948_v5, 0.0  ;;  %v3943_v53 = vmul.f32 %v4950_v12, %v4950_v12 }
 0x1e4   : > { %v4920_v18 = vpop.f32.mrb[8].mxu0  ;;  %3837 = vst.msk [vmem:[%s6353_s19 + $0x14] sm:$0xf] %vm3831_vm0, %v4377_v63  ;;  %v3977_v51 = vsel %vm3864_vm1, %v3941_v33, 0.0  ;;  %v3979_v1 = vsel %vm3864_vm1, %v3942_v56, 0.0 }
 0x1e5   : > { %v4952_v44 = vadd.f32 %v4920_v18, %v6332_v52  ;;  %v3576_v59 = vpop.f32.mrb[9].mxu0  ;;  %v3877_v14 = vadd.f32 %v3876_v31, %v3875_v13  ;;  %v3978_v28 = vadd.f32 %v3977_v51, %v3976_v17  ;;  %v3878_v52 = vsel %vm3864_vm1, %v4950_v12, 0.0 }
 0x1e6   : > { %v4953_v21 = vadd.f32 %v3576_v59, %v6334_v46  ;;  %v4921_v32 = vpop.f32.mrb[10].mxu0  ;;  %v3981_v9 = vsel %vm3864_vm1, %v3943_v53, 0.0 }
 0x1e7   : > { %v4382_v38 = vpack.c.bf16 %v4952_v44, %v4952_v44  ;;  %v3579_v41 = vpop.f32.mrb[11].mxu0  ;;  %v3980_v50 = vadd.f32 %v3979_v1, %v3978_v28  ;;  %v3879_v35 = vadd.f32 %v3878_v52, %v3877_v14  ;;  %v4954_v46 = vadd.f32 %v4921_v32, %v6336_v6 }
 0x1e8   : > { %v4380_v20 = vpack.c.bf16 %v4953_v21, %v4953_v21  ;;  %v3880_v54 = vsel %vm3864_vm1, %v4953_v21, 0.0  ;;  %v3944_v40 = vmul.f32 %v4953_v21, %v4953_v21  ;;  %v4955_v49 = vadd.f32 %v3579_v41, %v6338_v25 }
 0x1e9   : > { %3842 = vst.msk [vmem:[%s6353_s19 + $0x28] sm:$0xf] %vm3831_vm0, %v4382_v38  ;;  %v3946_v2 = vmul.f32 %v4952_v44, %v4952_v44  ;;  %v3881_v24 = vadd.f32 %v3880_v54, %v3879_v35  ;;  %v3982_v23 = vadd.f32 %v3981_v9, %v3980_v50  ;;  %v4383_v30 = vpack.c.bf16 %v4954_v46, %v4954_v46 }
 0x1ea   : > { %3840 = vst.msk [vmem:[%s6353_s19 + $0x20] sm:$0xf] %vm3831_vm0, %v4380_v20  ;;  %v3983_v37 = vsel %vm3864_vm1, %v3944_v40, 0.0  ;;  %v4381_v7 = vpack.c.bf16 %v4955_v49, %v4955_v49  ;;  %v3882_v39 = vsel %vm3864_vm1, %v4955_v49, 0.0  ;;  %v3945_v11 = vmul.f32 %v4955_v49, %v4955_v49 }
 0x1eb   : > { %v3984_v27 = vadd.f32 %v3983_v37, %v3982_v23  ;;  %3843 = vst.msk [vmem:[%s6353_s19 + $0x2c] sm:$0xf] %vm3831_vm0, %v4383_v30  ;;  %v3883_v6 = vadd.f32 %v3882_v39, %v3881_v24  ;;  %v3884_v4 = vsel %vm3864_vm1, %v4952_v44, 0.0  ;;  %v3947_v10 = vmul.f32 %v4954_v46, %v4954_v46 }
 0x1ec   : > { %v4924_v29 = vpop.f32.mrb[12].mxu0  ;;  %3841 = vst.msk [vmem:[%s6353_s19 + $0x24] sm:$0xf] %vm3831_vm0, %v4381_v7  ;;  %v3985_v26 = vsel %vm3864_vm1, %v3945_v11, 0.0  ;;  %v3987_v0 = vsel %vm3864_vm1, %v3946_v2, 0.0 }
 0x1ed   : > { %v4956_v25 = vadd.f32 %v4924_v29, %v6340_v43  ;;  %v3592_v5 = vpop.f32.mrb[13].mxu0  ;;  %v3885_v19 = vadd.f32 %v3884_v4, %v3883_v6  ;;  %v3986_v42 = vadd.f32 %v3985_v26, %v3984_v27  ;;  %v3886_v43 = vsel %vm3864_vm1, %v4954_v46, 0.0 }
 0x1ee   : > { %v4957_v8 = vadd.f32 %v3592_v5, %v6342_v36  ;;  %v4925_v15 = vpop.f32.mrb[14].mxu0  ;;  %v3989_v22 = vsel %vm3864_vm1, %v3947_v10, 0.0 }
 0x1ef   : > { %v4386_v47 = vpack.c.bf16 %v4956_v25, %v4956_v25  ;;  %v3595_v58 = vpop.f32.mrb[15].mxu0  ;;  %v3988_v34 = vadd.f32 %v3987_v0, %v3986_v42  ;;  %v3887_v12 = vadd.f32 %v3886_v43, %v3885_v19  ;;  %v4958_v36 = vadd.f32 %v4925_v15, %v6344_v62 }
 0x1f0   : > { %v4384_v3 = vpack.c.bf16 %v4957_v8, %v4957_v8  ;;  %v3888_v45 = vsel %vm3864_vm1, %v4957_v8, 0.0  ;;  %v3948_v55 = vmul.f32 %v4957_v8, %v4957_v8  ;;  %v4959_v16 = vadd.f32 %v3595_v58, %v6346_v48 }
 0x1f1   : > { %3846 = vst.msk [vmem:[%s6353_s19 + $0x38] sm:$0xf] %vm3831_vm0, %v4386_v47  ;;  %v3950_v56 = vmul.f32 %v4956_v25, %v4956_v25  ;;  %v3889_v17 = vadd.f32 %v3888_v45, %v3887_v12  ;;  %v3990_v60 = vadd.f32 %v3989_v22, %v3988_v34  ;;  %v4387_v63 = vpack.c.bf16 %v4958_v36, %v4958_v36 }
 0x1f2   : > { %3844 = vst.msk [vmem:[%s6353_s19 + $0x30] sm:$0xf] %vm3831_vm0, %v4384_v3  ;;  %v3991_v57 = vsel %vm3864_vm1, %v3948_v55, 0.0  ;;  %v4385_v33 = vpack.c.bf16 %v4959_v16, %v4959_v16  ;;  %v3890_v18 = vsel %vm3864_vm1, %v4959_v16, 0.0  ;;  %v3949_v13 = vmul.f32 %v4959_v16, %v4959_v16 }
 0x1f3   : > { %v4792_v61 = vpop.f32.mrb[16].mxu1  ;;  %v3992_v59 = vadd.f32 %v3991_v57, %v3990_v60  ;;  %3847 = vst.msk [vmem:[%s6353_s19 + $0x3c] sm:$0xf] %vm3831_vm0, %v4387_v63  ;;  %v3891_v48 = vadd.f32 %v3890_v18, %v3889_v17  ;;  %v3892_v21 = vsel %vm3864_vm1, %v4956_v25, 0.0  ;;  %v3951_v32 = vmul.f32 %v4958_v36, %v4958_v36 }
 0x1f4   : > { %v2336_v62 = vpop.f32.mrb[17].mxu1  ;;  %v4928_v44 = vpop.f32.mrb[16].mxu0  ;;  %3845 = vst.msk [vmem:[%s6353_s19 + $0x34] sm:$0xf] %vm3831_vm0, %v4385_v33  ;;  %v3993_v1 = vsel %vm3864_vm1, %v3949_v13, 0.0  ;;  %v3995_v41 = vsel %vm3864_vm1, %v3950_v56, 0.0 }
 0x1f5   : > { %v4960_v31 = vadd.f32 %v4928_v44, %v4792_v61  ;;  %v4793_v53 = vpop.f32.mrb[18].mxu1  ;;  %v3608_v51 = vpop.f32.mrb[17].mxu0  ;;  %v3893_v52 = vadd.f32 %v3892_v21, %v3891_v48  ;;  %v3994_v20 = vadd.f32 %v3993_v1, %v3992_v59  ;;  %v3894_v50 = vsel %vm3864_vm1, %v4958_v36, 0.0 }
 0x1f6   : > { %v4961_v14 = vadd.f32 %v3608_v51, %v2336_v62  ;;  %v2339_v28 = vpop.f32.mrb[19].mxu1  ;;  %v4929_v38 = vpop.f32.mrb[18].mxu0  ;;  %v3997_v23 = vsel %vm3864_vm1, %v3951_v32, 0.0 }
 0x1f7   : > { %v4390_v54 = vpack.c.bf16 %v4960_v31, %v4960_v31  ;;  %v3611_v40 = vpop.f32.mrb[19].mxu0  ;;  %v3996_v9 = vadd.f32 %v3995_v41, %v3994_v20  ;;  %v3895_v37 = vadd.f32 %v3894_v50, %v3893_v52  ;;  %v4962_v2 = vadd.f32 %v4929_v38, %v4793_v53 }
 0x1f8   : > { %v4388_v35 = vpack.c.bf16 %v4961_v14, %v4961_v14  ;;  %v3896_v46 = vsel %vm3864_vm1, %v4961_v14, 0.0  ;;  %v3952_v49 = vmul.f32 %v4961_v14, %v4961_v14  ;;  %v4963_v24 = vadd.f32 %v3611_v40, %v2339_v28 }
 0x1f9   : > { %3850 = vst.msk [vmem:[%s6353_s19 + $0x48] sm:$0xf] %vm3831_vm0, %v4390_v54  ;;  %v3954_v7 = vmul.f32 %v4960_v31, %v4960_v31  ;;  %v3897_v39 = vadd.f32 %v3896_v46, %v3895_v37  ;;  %v3998_v11 = vadd.f32 %v3997_v23, %v3996_v9  ;;  %v4391_v29 = vpack.c.bf16 %v4962_v2, %v4962_v2 }
 0x1fa   : > { %3848 = vst.msk [vmem:[%s6353_s19 + $0x40] sm:$0xf] %vm3831_vm0, %v4388_v35  ;;  %v3999_v30 = vsel %vm3864_vm1, %v3952_v49, 0.0  ;;  %v4389_v6 = vpack.c.bf16 %v4963_v24, %v4963_v24  ;;  %v3898_v25 = vsel %vm3864_vm1, %v4963_v24, 0.0  ;;  %v3953_v5 = vmul.f32 %v4963_v24, %v4963_v24 }
 0x1fb   : > { %v4796_v27 = vpop.f32.mrb[20].mxu1  ;;  %v4000_v26 = vadd.f32 %v3999_v30, %v3998_v11  ;;  %3851 = vst.msk [vmem:[%s6353_s19 + $0x4c] sm:$0xf] %vm3831_vm0, %v4391_v29  ;;  %v3899_v8 = vadd.f32 %v3898_v25, %v3897_v39  ;;  %v3900_v42 = vsel %vm3864_vm1, %v4960_v31, 0.0  ;;  %v3955_v47 = vmul.f32 %v4962_v2, %v4962_v2 }
 0x1fc   : > { %v2352_v4 = vpop.f32.mrb[21].mxu1  ;;  %v4932_v10 = vpop.f32.mrb[20].mxu0  ;;  %3849 = vst.msk [vmem:[%s6353_s19 + $0x44] sm:$0xf] %vm3831_vm0, %v4389_v6  ;;  %v4001_v58 = vsel %vm3864_vm1, %v3953_v5, 0.0  ;;  %v4003_v55 = vsel %vm3864_vm1, %v3954_v7, 0.0 }
 0x1fd   : > { %v4964_v15 = vadd.f32 %v4932_v10, %v4796_v27  ;;  %v4797_v0 = vpop.f32.mrb[22].mxu1  ;;  %v3624_v19 = vpop.f32.mrb[21].mxu0  ;;  %v3901_v34 = vadd.f32 %v3900_v42, %v3899_v8  ;;  %v4002_v12 = vadd.f32 %v4001_v58, %v4000_v26  ;;  %v3902_v22 = vsel %vm3864_vm1, %v4962_v2, 0.0 }
 0x1fe   : > { %v4965_v43 = vadd.f32 %v3624_v19, %v2352_v4  ;;  %v2355_v3 = vpop.f32.mrb[23].mxu1  ;;  %v4933_v45 = vpop.f32.mrb[22].mxu0  ;;  %v4005_v18 = vsel %vm3864_vm1, %v3955_v47, 0.0 }
 0x1ff   : > { %v4394_v36 = vpack.c.bf16 %v4964_v15, %v4964_v15  ;;  %v3627_v16 = vpop.f32.mrb[23].mxu0  ;;  %v4004_v60 = vadd.f32 %v4003_v55, %v4002_v12  ;;  %v3903_v63 = vadd.f32 %v3902_v22, %v3901_v34  ;;  %v4966_v61 = vadd.f32 %v4933_v45, %v4797_v0 }
 0x200   : > { %v4392_v57 = vpack.c.bf16 %v4965_v43, %v4965_v43  ;;  %v3904_v56 = vsel %vm3864_vm1, %v4965_v43, 0.0  ;;  %v3956_v17 = vmul.f32 %v4965_v43, %v4965_v43  ;;  %v4967_v33 = vadd.f32 %v3627_v16, %v2355_v3 }
 0x201   : > { %3854 = vst.msk [vmem:[%s6353_s19 + $0x58] sm:$0xf] %vm3831_vm0, %v4394_v36  ;;  %v3958_v62 = vmul.f32 %v4964_v15, %v4964_v15  ;;  %v3905_v44 = vadd.f32 %v3904_v56, %v3903_v63  ;;  %v4006_v59 = vadd.f32 %v4005_v18, %v4004_v60  ;;  %v4395_v48 = vpack.c.bf16 %v4966_v61, %v4966_v61 }
 0x202   : > { %3852 = vst.msk [vmem:[%s6353_s19 + $0x50] sm:$0xf] %vm3831_vm0, %v4392_v57  ;;  %v4007_v13 = vsel %vm3864_vm1, %v3956_v17, 0.0  ;;  %v4393_v53 = vpack.c.bf16 %v4967_v33, %v4967_v33  ;;  %v3906_v51 = vsel %vm3864_vm1, %v4967_v33, 0.0  ;;  %v3957_v21 = vmul.f32 %v4967_v33, %v4967_v33 }
 0x203   : > { %v4800_v31 = vpop.f32.mrb[24].mxu1  ;;  %v4008_v14 = vadd.f32 %v4007_v13, %v4006_v59  ;;  %3855 = vst.msk [vmem:[%s6353_s19 + $0x5c] sm:$0xf] %vm3831_vm0, %v4395_v48  ;;  %v3907_v28 = vadd.f32 %v3906_v51, %v3905_v44  ;;  %v3908_v20 = vsel %vm3864_vm1, %v4964_v15, 0.0  ;;  %v3959_v54 = vmul.f32 %v4966_v61, %v4966_v61 }
 0x204   : > { %v2368_v32 = vpop.f32.mrb[25].mxu1  ;;  %v4936_v1 = vpop.f32.mrb[24].mxu0  ;;  %3853 = vst.msk [vmem:[%s6353_s19 + $0x54] sm:$0xf] %vm3831_vm0, %v4393_v53  ;;  %v4009_v40 = vsel %vm3864_vm1, %v3957_v21, 0.0  ;;  %v4011_v49 = vsel %vm3864_vm1, %v3958_v62, 0.0 }
 0x205   : > { %v4968_v38 = vadd.f32 %v4936_v1, %v4800_v31  ;;  %v4801_v41 = vpop.f32.mrb[26].mxu1  ;;  %v3640_v52 = vpop.f32.mrb[25].mxu0  ;;  %v3909_v9 = vadd.f32 %v3908_v20, %v3907_v28  ;;  %v4010_v37 = vadd.f32 %v4009_v40, %v4008_v14  ;;  %v3910_v23 = vsel %vm3864_vm1, %v4966_v61, 0.0 }
 0x206   : > { %v4969_v50 = vadd.f32 %v3640_v52, %v2368_v32  ;;  %v2371_v35 = vpop.f32.mrb[27].mxu1  ;;  %v4937_v46 = vpop.f32.mrb[26].mxu0  ;;  %v4013_v25 = vsel %vm3864_vm1, %v3959_v54, 0.0 }
 0x207   : > { %v4398_v2 = vpack.c.bf16 %v4968_v38, %v4968_v38  ;;  %v3643_v24 = vpop.f32.mrb[27].mxu0  ;;  %v4012_v11 = vadd.f32 %v4011_v49, %v4010_v37  ;;  %v3911_v29 = vadd.f32 %v3910_v23, %v3909_v9  ;;  %v4970_v27 = vadd.f32 %v4937_v46, %v4801_v41 }
 0x208   : > { %v4396_v30 = vpack.c.bf16 %v4969_v50, %v4969_v50  ;;  %v3912_v7 = vsel %vm3864_vm1, %v4969_v50, 0.0  ;;  %v3960_v39 = vmul.f32 %v4969_v50, %v4969_v50  ;;  %v4971_v6 = vadd.f32 %v3643_v24, %v2371_v35 }
 0x209   : > { %3858 = vst.msk [vmem:[%s6353_s19 + $0x68] sm:$0xf] %vm3831_vm0, %v4398_v2  ;;  %v3962_v4 = vmul.f32 %v4968_v38, %v4968_v38  ;;  %v3913_v10 = vadd.f32 %v3912_v7, %v3911_v29  ;;  %v4014_v26 = vadd.f32 %v4013_v25, %v4012_v11  ;;  %v4399_v8 = vpack.c.bf16 %v4970_v27, %v4970_v27 }
 0x20a   : > { %3856 = vst.msk [vmem:[%s6353_s19 + $0x60] sm:$0xf] %vm3831_vm0, %v4396_v30  ;;  %v4015_v5 = vsel %vm3864_vm1, %v3960_v39, 0.0  ;;  %v4397_v0 = vpack.c.bf16 %v4971_v6, %v4971_v6  ;;  %v3914_v19 = vsel %vm3864_vm1, %v4971_v6, 0.0  ;;  %v3961_v42 = vmul.f32 %v4971_v6, %v4971_v6 }
 0x20b   : > { %v4804_v15 = vpop.f32.mrb[28].mxu1  ;;  %v4016_v43 = vadd.f32 %v4015_v5, %v4014_v26  ;;  %3859 = vst.msk [vmem:[%s6353_s19 + $0x6c] sm:$0xf] %vm3831_vm0, %v4399_v8  ;;  %v3915_v3 = vadd.f32 %v3914_v19, %v3913_v10  ;;  %v3916_v12 = vsel %vm3864_vm1, %v4968_v38, 0.0  ;;  %v3963_v36 = vmul.f32 %v4970_v27, %v4970_v27 }
 0x20c   : > { %v2384_v47 = vpop.f32.mrb[29].mxu1  ;;  %v4940_v58 = vpop.f32.mrb[28].mxu0  ;;  %3857 = vst.msk [vmem:[%s6353_s19 + $0x64] sm:$0xf] %vm3831_vm0, %v4397_v0  ;;  %v4017_v16 = vsel %vm3864_vm1, %v3961_v42, 0.0  ;;  %v4019_v17 = vsel %vm3864_vm1, %v3962_v4, 0.0 }
 0x20d   : > { %v4972_v45 = vadd.f32 %v4940_v58, %v4804_v15  ;;  %v4805_v55 = vpop.f32.mrb[30].mxu1  ;;  %v3656_v34 = vpop.f32.mrb[29].mxu0  ;;  %v3917_v60 = vadd.f32 %v3916_v12, %v3915_v3  ;;  %v4018_v63 = vadd.f32 %v4017_v16, %v4016_v43  ;;  %v3918_v18 = vsel %vm3864_vm1, %v4970_v27, 0.0 }
 0x20e   : > { %v4973_v22 = vadd.f32 %v3656_v34, %v2384_v47  ;;  %v2387_v57 = vpop.f32.mrb[31].mxu1  ;;  %v4941_v56 = vpop.f32.mrb[30].mxu0  ;;  %v4021_v51 = vsel %vm3864_vm1, %v3963_v36, 0.0 }
 0x20f   : > { %v4402_v61 = vpack.c.bf16 %v4972_v45, %v4972_v45  ;;  %v3659_v33 = vpop.f32.mrb[31].mxu0  ;;  %v4020_v59 = vadd.f32 %v4019_v17, %v4018_v63  ;;  %v3919_v48 = vadd.f32 %v3918_v18, %v3917_v60  ;;  %v4974_v31 = vadd.f32 %v4941_v56, %v4805_v55 }
 0x210   : > { %v4400_v13 = vpack.c.bf16 %v4973_v22, %v4973_v22  ;;  %v3920_v62 = vsel %vm3864_vm1, %v4973_v22, 0.0  ;;  %v3964_v44 = vmul.f32 %v4973_v22, %v4973_v22  ;;  %v4975_v53 = vadd.f32 %v3659_v33, %v2387_v57 }
 0x211   : > { %3862 = vst.msk [vmem:[%s6353_s19 + $0x78] sm:$0xf] %vm3831_vm0, %v4402_v61  ;;  %v3921_v32 = vadd.f32 %v3920_v62, %v3919_v48  ;;  %v4022_v1 = vadd.f32 %v4021_v51, %v4020_v59  ;;  %v4403_v14 = vpack.c.bf16 %v4974_v31, %v4974_v31  ;;  %v3966_v28 = vmul.f32 %v4972_v45, %v4972_v45 }
 0x212   : > { %3860 = vst.msk [vmem:[%s6353_s19 + $0x70] sm:$0xf] %vm3831_vm0, %v4400_v13  ;;  %v4023_v21 = vsel %vm3864_vm1, %v3964_v44, 0.0  ;;  %v4401_v38 = vpack.c.bf16 %v4975_v53, %v4975_v53  ;;  %v3922_v41 = vsel %vm3864_vm1, %v4975_v53, 0.0  ;;  %v3965_v52 = vmul.f32 %v4975_v53, %v4975_v53 }
 0x213   : > { %v4024_v20 = vadd.f32 %v4023_v21, %v4022_v1  ;;  %3863 = vst.msk [vmem:[%s6353_s19 + $0x7c] sm:$0xf] %vm3831_vm0, %v4403_v14  ;;  %v3923_v54 = vadd.f32 %v3922_v41, %v3921_v32  ;;  %v3924_v40 = vsel %vm3864_vm1, %v4972_v45, 0.0  ;;  %v3967_v50 = vmul.f32 %v4974_v31, %v4974_v31 }
 0x214   : > { %3861 = vst.msk [vmem:[%s6353_s19 + $0x74] sm:$0xf] %vm3831_vm0, %v4401_v38  ;;  %v4025_v35 = vsel %vm3864_vm1, %v3965_v52, 0.0  ;;  %v4027_v9 = vsel %vm3864_vm1, %v3966_v28, 0.0  ;;  %v3926_v37 = vsel %vm3864_vm1, %v4974_v31, 0.0 }
 0x215   : > { %v3925_v46 = vadd.f32 %v3924_v40, %v3923_v54  ;;  %v4026_v49 = vadd.f32 %v4025_v35, %v4024_v20  ;;  %v4029_v23 = vsel %vm3864_vm1, %v3967_v50, 0.0 }
 0x217   : > { %v3927_v2 = vadd.f32 %v3926_v37, %v3925_v46  ;;  %v4028_v24 = vadd.f32 %v4027_v9, %v4026_v49 }
 0x219   : > { %v3928_v30 = vrot.slane %v3927_v2, 4  ;;  %v4030_v7 = vadd.f32 %v4029_v23, %v4028_v24 }
 0x21b   : > { %v3929_v39 = vadd.f32 %v3928_v30, %v3927_v2  ;;  %v4031_v11 = vrot.slane %v4030_v7, 4 }
 0x21d   : > { %v3930_v29 = vrot.slane %v3929_v39, 2  ;;  %v4032_v27 = vadd.f32 %v4031_v11, %v4030_v7 }
 0x21f   : > { %v3931_v6 = vadd.f32 %v3930_v29, %v3929_v39  ;;  %v4033_v25 = vrot.slane %v4032_v27, 2 }
 0x221   : > { %v3932_v5 = vrot.slane %v3931_v6, 1  ;;  %v4034_v4 = vadd.f32 %v4033_v25, %v4032_v27 }
 0x223   : > { %v3933_v10 = vadd.f32 %v3932_v5, %v3931_v6  ;;  %v4035_v26 = vrot.slane %v4034_v4, 1 }
 0x225   : > { %3935 = vst.msk [vmem:[%s211_s22] sm:$0x1] %vm3934_vm7, %v3933_v10  ;;  %v4036_v8 = vadd.f32 %v4035_v26, %v4034_v4 }
 0x227   : > { %4037 = vst.msk [vmem:[%s214_s25] sm:$0x1] %vm3934_vm7, %v4036_v8 }
 0x228 PF: > { %s15_s15 = sadd.s32 1, %s5226_s15  }
 0x229   : > { %p12_p4 = scmp.ge.s32.totalorder %s15_s15, 4  }
 0x22b   :  { %14 = sbr.rel (!%p12_p4) target bundleno = 1 (0x1), region = 90 }

// kernel: conv_block.4
= control target key start
LH: loop header
LB: loop body
LE: loop exit
PB: predicated region body
PF: predicated region fallthrough
CT: control target
= control target key end

     0   :  { %s5428_s21 = smov 0   ;;  %s6731_s0 = inlined_call_operand.vmem [shape: bf16[2,256,8], index: 0, kind: input, shape index: {}]   ;;  %s6732_s1 = inlined_call_operand.vmem [shape: f32[1,8], index: 1, kind: input, shape index: {}]   ;;  %s6733_s2 = inlined_call_operand.vmem [shape: f32[1,8], index: 2, kind: input, shape index: {}]   ;;  %s6734_s3 = inlined_call_operand.vmem [shape: bf16[9,8,8], index: 3, kind: input, shape index: {}]   ;;  %s6735_s4 = inlined_call_operand.vmem [shape: bf16[2,256,8], index: 4, kind: output, shape index: {0}]   ;;  %s6736_s5 = inlined_call_operand.vmem [shape: f32[2,1,8], index: 5, kind: output, shape index: {1}]   ;;  %s6737_s6 = inlined_call_operand.vmem [shape: f32[2,1,8], index: 6, kind: output, shape index: {2}]  }
   0x1 LB: > { %s4305_s22 = sadd.s32 4294967295, %s5390_s21   ;;  %p4309_p0 = scmp.ge.s32.totalorder %s5390_s21, 1  ;;  %s5390_s21 = sphi %s5428_s21, %s17_s21  }
   0x2   : > { %p217_p1 = scmp.lt.s32.totalorder %s5390_s21, 3 }
   0x4   : > { %p218_p2 = pnand %p4309_p0, %p217_p1 }
   0x6   : > { %221 = sbr.rel (%p218_p2) target bundleno = 558 (0x22e), region = 36 }
   0xd   : > { %v4348_v0 = vld [vmem:[%s6734_s3 + $0x4] sm:$0xf]  ;;  %vm1272_vm0 = vcmask 1043456   ;;  %v4415_v1 = vld [vmem:[%s6734_s3 + $0x10] sm:$0xf]  ;;  %vm444_vm1 = vcmask 64512   ;;  %v484_v12 = vlaneseq }
   0xe   : > { %5364 = vmatprep.subr.msk.bf16.mxu1 %vm1272_vm0, %v4348_v0  ;;  %5368 = vmatprep.subr.msk.bf16.mxu0 %vm1272_vm0, %v4415_v1  ;;  %v1274_v2 = vsel %vm1272_vm0, %v4348_v0, 0  ;;  %v5446_v3 = vsel %vm1272_vm0, %v4415_v1, 0  ;;  %vm447_vm2 = vcmask 57344   ;;  %p253_p3 = scmp.lt.s32.totalorder %s4305_s22, 1  ;;  %v6753_v4 = vmov 0.0  }
   0xf   : > { %6812 = vst [vmem:[#allocation3_spill] sm:$0xff] %v5446_v3  ;;  %4801 = vmatpush3.bf16.msra.mxu1 %v1274_v2  ;;  %4937 = vmatpush3.bf16.msra.mxu0 %v5446_v3  ;;  %445 = vst.msk [vmem:[#allocation2] sm:$0xff] %vm444_vm1, %v6753_v4  ;;  %v1173_v5 = vld [vmem:[%s6734_s3] sm:$0xf]  ;;  %v5470_v6 = vld [vmem:[%s6734_s3 + $0x14] sm:$0xf] }
  0x10   : > { %446 = vst.msk [vmem:[#allocation2 + $0x8] sm:$0xff] %vm444_vm1, %v6753_v4  ;;  %449 = vst.msk [vmem:[#allocation2 + $0x111] sm:$0xff] %vm444_vm1, %v6753_v4  ;;  %s6974_s22 = smov (!%p253_p3, %s4305_s22), 1  ;;  %5365 = vmatprep.subr.msk.bf16.mxu1 %vm1272_vm0, %v1173_v5  ;;  %5370 = vmatprep.subr.msk.bf16.mxu0 %vm1272_vm0, %v5470_v6  ;;  %v5485_v7 = vld [vmem:[%s6732_s1] ss:$0 sm:$0xff]  ;;  %v5489_v9 = vsel %vm1272_vm0, %v1173_v5, 0 }
  0x11   : > { %448 = vst.msk [vmem:[#allocation2 + $0x10] sm:$0x1] %vm447_vm2, %v6753_v4  ;;  %451 = vst.msk [vmem:[#allocation2 + $0x121] sm:$0x1] %vm447_vm2, %v6753_v4  ;;  %s4534_s7 = sshll.u32 %s6974_s22, 7  ;;  %s268_s13 = scalar_lea.vmem %s6737_s6, %s6974_s22 }
  0x12   : > { %450 = vst.msk [vmem:[#allocation2 + $0x119] sm:$0xff] %vm444_vm1, %v6753_v4  ;;  %s5480_s10 = scalar_lea.vmem %s6731_s0, %s4534_s7  ;;  %v5497_v20 = vld [vmem:[%s6733_s2] ss:$0 sm:$0xff]  ;;  %s6580_s8 = scalar_lea.vmem %s6735_s4, %s4534_s7 }
  0x13   : > { %v4569_v8 = vld [vmem:[%s5480_s10] sm:$0xff]   ;;  %v4632_v10 = vld [vmem:[%s5480_s10 + $0x8] sm:$0xff]   ;;  %v4633_v11 = vld [vmem:[%s5480_s10 + $0x10] sm:$0xff]  }
  0x14   : > { %v4570_v13 = vunpack.c.l.bf16 %v4569_v8  ;;  %v4571_v14 = vunpack.c.h.bf16 %v4569_v8  ;;  %v4574_v15 = vunpack.c.l.bf16 %v4632_v10  ;;  %v4575_v16 = vunpack.c.h.bf16 %v4632_v10  ;;  %v4634_v17 = vld [vmem:[%s5480_s10 + $0x18] sm:$0xff]   ;;  %v4635_v41 = vld [vmem:[%s5480_s10 + $0x20] sm:$0xff]   ;;  %v4636_v42 = vld [vmem:[%s5480_s10 + $0x28] sm:$0xff]  }
  0x15   : > { %v4578_v21 = vunpack.c.l.bf16 %v4633_v11  ;;  %v4579_v22 = vunpack.c.h.bf16 %v4633_v11  ;;  %v4582_v23 = vunpack.c.l.bf16 %v4634_v17  ;;  %v4583_v24 = vunpack.c.h.bf16 %v4634_v17  ;;  %v4637_v47 = vld [vmem:[%s5480_s10 + $0x30] sm:$0xff]   ;;  %v4638_v48 = vld [vmem:[%s5480_s10 + $0x38] sm:$0xff]  }
  0x16   : > { %v341_v26 = vmul.f32 %v4570_v13, %v5485_v7  ;;  %v342_v27 = vmul.f32 %v4571_v14, %v5485_v7  ;;  %v343_v28 = vmul.f32 %v4574_v15, %v5485_v7  ;;  %v344_v29 = vmul.f32 %v4575_v16, %v5485_v7  ;;  %v4639_v15 = vld [vmem:[%s5480_s10 + $0x40] sm:$0xff]  }
  0x17   : > { %v1174_v18 = vld [vmem:[#allocation2 + $0x1] sm:$0xff]  ;;  %v345_v30 = vmul.f32 %v4578_v21, %v5485_v7  ;;  %v346_v31 = vmul.f32 %v4579_v22, %v5485_v7  ;;  %v347_v32 = vmul.f32 %v4582_v23, %v5485_v7  ;;  %v348_v36 = vmul.f32 %v4583_v24, %v5485_v7 }
  0x18   : > { %v1175_v19 = vld [vmem:[#allocation2 + $0x9] sm:$0xff]  ;;  %v380_v33 = vadd.f32 %v5497_v20, %v341_v26  ;;  %v381_v34 = vadd.f32 %v5497_v20, %v342_v27  ;;  %v382_v35 = vadd.f32 %v5497_v20, %v343_v28  ;;  %v383_v37 = vadd.f32 %v5497_v20, %v344_v29 }
  0x19   : > { %v1206_v25 = vpack.c.bf16 %v1175_v19, %v1174_v18  ;;  %v384_v38 = vadd.f32 %v5497_v20, %v345_v30  ;;  %v385_v39 = vadd.f32 %v5497_v20, %v346_v31  ;;  %v386_v40 = vadd.f32 %v5497_v20, %v347_v32 }
  0x1a   : > { %v412_v43 = vmax.f32 %v380_v33, 0.0  ;;  %v413_v44 = vmax.f32 %v381_v34, 0.0  ;;  %v414_v45 = vmax.f32 %v382_v35, 0.0  ;;  %v387_v46 = vadd.f32 %v5497_v20, %v348_v36 }
  0x1b   : > { %4802 = vmatprep.mubr.msk.bf16.mxu1 %vm444_vm1, %v1206_v25  ;;  %v415_v49 = vmax.f32 %v383_v37, 0.0  ;;  %v416_v50 = vmax.f32 %v384_v38, 0.0  ;;  %v417_v51 = vmax.f32 %v385_v39, 0.0  ;;  %v418_v52 = vmax.f32 %v386_v40, 0.0  ;;  %v4640_v25 = vld [vmem:[%s5480_s10 + $0x48] sm:$0xff]  }
  0x1c   : > { %452 = vst.msk [vmem:[#allocation2 + $0x11] sm:$0xff] %vm444_vm1, %v412_v43  ;;  %453 = vst.msk [vmem:[#allocation2 + $0x19] sm:$0xff] %vm444_vm1, %v413_v44  ;;  %v419_v53 = vmax.f32 %v387_v46, 0.0  ;;  %v4586_v54 = vunpack.c.l.bf16 %v4635_v41  ;;  %v4587_v55 = vunpack.c.h.bf16 %v4635_v41  ;;  %v4590_v56 = vunpack.c.l.bf16 %v4636_v42  ;;  %v4641_v44 = vld [vmem:[%s5480_s10 + $0x50] sm:$0xff]   ;;  %v5567_v46 = vld [vmem:[%s6734_s3 + $0x18] sm:$0xf] }
  0x1d   : > { %454 = vst.msk [vmem:[#allocation2 + $0x21] sm:$0xff] %vm444_vm1, %v414_v45  ;;  %455 = vst.msk [vmem:[#allocation2 + $0x29] sm:$0xff] %vm444_vm1, %v415_v49  ;;  %v4591_v57 = vunpack.c.h.bf16 %v4636_v42  ;;  %v4594_v58 = vunpack.c.l.bf16 %v4637_v47  ;;  %v4595_v59 = vunpack.c.h.bf16 %v4637_v47  ;;  %v4598_v60 = vunpack.c.l.bf16 %v4638_v48  ;;  %v5575_v49 = vld [vmem:[%s6734_s3 + $0x8] sm:$0xf] }
  0x1e   : > { %456 = vst.msk [vmem:[#allocation2 + $0x31] sm:$0xff] %vm444_vm1, %v416_v50  ;;  %457 = vst.msk [vmem:[#allocation2 + $0x39] sm:$0xff] %vm444_vm1, %v417_v51  ;;  %v349_v61 = vmul.f32 %v4586_v54, %v5485_v7  ;;  %v350_v62 = vmul.f32 %v4587_v55, %v5485_v7  ;;  %v351_v63 = vmul.f32 %v4590_v56, %v5485_v7  ;;  %v4599_v0 = vunpack.c.h.bf16 %v4638_v48 }
  0x1f   : > { %458 = vst.msk [vmem:[#allocation2 + $0x41] sm:$0xff] %vm444_vm1, %v418_v52  ;;  %459 = vst.msk [vmem:[#allocation2 + $0x49] sm:$0xff] %vm444_vm1, %v419_v53  ;;  %v352_v1 = vmul.f32 %v4591_v57, %v5485_v7  ;;  %v353_v2 = vmul.f32 %v4594_v58, %v5485_v7  ;;  %v354_v5 = vmul.f32 %v4595_v59, %v5485_v7  ;;  %v4602_v32 = vunpack.c.l.bf16 %v4639_v15 }
  0x20   : > { %v355_v8 = vmul.f32 %v4598_v60, %v5485_v7  ;;  %v388_v10 = vadd.f32 %v5497_v20, %v349_v61  ;;  %v389_v11 = vadd.f32 %v5497_v20, %v350_v62  ;;  %v390_v13 = vadd.f32 %v5497_v20, %v351_v63 }
  0x21   : > { %v356_v14 = vmul.f32 %v4599_v0, %v5485_v7  ;;  %v391_v16 = vadd.f32 %v5497_v20, %v352_v1  ;;  %v392_v17 = vadd.f32 %v5497_v20, %v353_v2  ;;  %v393_v18 = vadd.f32 %v5497_v20, %v354_v5 }
  0x22   : > { %v394_v19 = vadd.f32 %v5497_v20, %v355_v8  ;;  %v420_v21 = vmax.f32 %v388_v10, 0.0  ;;  %v421_v22 = vmax.f32 %v389_v11, 0.0  ;;  %v422_v23 = vmax.f32 %v390_v13, 0.0  ;;  %v4642_v8 = vld [vmem:[%s5480_s10 + $0x58] sm:$0xff]   ;;  %v4643_v13 = vld [vmem:[%s5480_s10 + $0x60] sm:$0xff]  }
  0x23   : > { %v395_v24 = vadd.f32 %v5497_v20, %v356_v14  ;;  %v1176_v26 = vld [vmem:[#allocation2 + $0x11] sm:$0xff]  ;;  %v1177_v27 = vld [vmem:[#allocation2 + $0x19] sm:$0xff]  ;;  %v423_v29 = vmax.f32 %v391_v16, 0.0  ;;  %v424_v30 = vmax.f32 %v392_v17, 0.0  ;;  %v425_v31 = vmax.f32 %v393_v18, 0.0 }
  0x24   : > { %v2303_v28 = vld [vmem:[#allocation2 + $0x21] sm:$0xff]  ;;  %v1207_v33 = vpack.c.bf16 %v1177_v27, %v1176_v26  ;;  %v2304_v34 = vld [vmem:[#allocation2 + $0x29] sm:$0xff]  ;;  %460 = vst.msk [vmem:[#allocation2 + $0x51] sm:$0xff] %vm444_vm1, %v420_v21  ;;  %461 = vst.msk [vmem:[#allocation2 + $0x59] sm:$0xff] %vm444_vm1, %v421_v22  ;;  %v426_v37 = vmax.f32 %v394_v19, 0.0  ;;  %v4603_v39 = vunpack.c.h.bf16 %v4639_v15  ;;  %v2726_v41 = vsel %vm1272_vm0, %v5470_v6, 0 }
  0x25   : > { %v1180_v35 = vld [vmem:[#allocation2 + $0x31] sm:$0xff]  ;;  %v1181_v36 = vld [vmem:[#allocation2 + $0x39] sm:$0xff]  ;;  %462 = vst.msk [vmem:[#allocation2 + $0x61] sm:$0xff] %vm444_vm1, %v422_v23  ;;  %v427_v38 = vmax.f32 %v395_v24, 0.0  ;;  %v2334_v40 = vpack.c.bf16 %v2304_v34, %v2303_v28  ;;  %463 = vst.msk [vmem:[#allocation2 + $0x69] sm:$0xff] %vm444_vm1, %v423_v29  ;;  %v357_v43 = vmul.f32 %v4602_v32, %v5485_v7  ;;  %v5562_v45 = vshrl.u32 %v484_v12, 7 }
  0x26   : > { %v1209_v42 = vpack.c.bf16 %v1181_v36, %v1180_v35  ;;  %464 = vst.msk [vmem:[#allocation2 + $0x71] sm:$0xff] %vm444_vm1, %v424_v30  ;;  %465 = vst.msk [vmem:[#allocation2 + $0x79] sm:$0xff] %vm444_vm1, %v425_v31  ;;  %4803 = vmatmul.mubr.msk.bf16.vlgmr.msra.gmra.mrb[0].mxu1 %vm444_vm1, %v1207_v33  ;;  %4938 = vmatprep.mubr.msk.bf16.mxu0 %vm444_vm1, %v1207_v33  ;;  %v358_v6 = vmul.f32 %v4603_v39, %v5485_v7  ;;  %v4606_v48 = vunpack.c.l.bf16 %v4640_v25  ;;  %v2307_v12 = vld [vmem:[#allocation2 + $0x41] sm:$0xff]  ;;  %v2308_v50 = vld [vmem:[#allocation2 + $0x49] sm:$0xff] }
  0x27   : > { %466 = vst.msk [vmem:[#allocation2 + $0x81] sm:$0xff] %vm444_vm1, %v426_v37  ;;  %467 = vst.msk [vmem:[#allocation2 + $0x89] sm:$0xff] %vm444_vm1, %v427_v38  ;;  %4835 = vmatpush3.bf16.msra.mxu1 %v5489_v9  ;;  %4939 = vmatmul.mubr.msk.bf16.vlgmr.msra.gmra.mrb[0].mxu0 %vm444_vm1, %v2334_v40  ;;  %v396_v47 = vadd.f32 %v5497_v20, %v357_v43  ;;  %v4607_v52 = vunpack.c.h.bf16 %v4640_v25  ;;  %v4610_v53 = vunpack.c.l.bf16 %v4641_v44  ;;  %v4611_v55 = vunpack.c.h.bf16 %v4641_v44  ;;  %v4644_v25 = vld [vmem:[%s5480_s10 + $0x68] sm:$0xff]   ;;  %v5620_v43 = vld [vmem:[#allocation2 + $0x1a] sm:$0xff] }
  0x28   : > { %4971 = vmatpush3.bf16.msra.mxu0 %v2726_v41  ;;  %4806 = vmatprep.mubr.msk.bf16.mxu1 %vm444_vm1, %v2334_v40  ;;  %v397_v51 = vadd.f32 %v5497_v20, %v358_v6  ;;  %v359_v54 = vmul.f32 %v4606_v48, %v5485_v7  ;;  %v486_v57 = vadd.s32 8, %v5562_v45  ;;  %v2336_v60 = vpack.c.bf16 %v2308_v50, %v2307_v12  ;;  %v4645_v41 = vld [vmem:[%s5480_s10 + $0x70] sm:$0xff]  }
  0x29   : > { %4942 = vmatprep.mubr.msk.bf16.mxu0 %vm444_vm1, %v1209_v42  ;;  %v428_v9 = vmax.f32 %v396_v47, 0.0  ;;  %5371 = vmatprep.subr.msk.bf16.mxu0 %vm1272_vm0, %v5567_v46  ;;  %v360_v58 = vmul.f32 %v4607_v52, %v5485_v7  ;;  %v361_v59 = vmul.f32 %v4610_v53, %v5485_v7  ;;  %v362_v0 = vmul.f32 %v4611_v55, %v5485_v7 }
  0x2a   : > { %v429_v56 = vmax.f32 %v397_v51, 0.0  ;;  %5366 = vmatprep.subr.msk.bf16.mxu1 %vm1272_vm0, %v5575_v49  ;;  %v398_v63 = vadd.f32 %v5497_v20, %v359_v54  ;;  %v528_v14 = vand.u32 15, %v486_v57  ;;  %v4614_v18 = vunpack.c.l.bf16 %v4642_v8 }
  0x2b   : > { %v1184_v61 = vld [vmem:[#allocation2 + $0x51] sm:$0xff]  ;;  %v1185_v62 = vld [vmem:[#allocation2 + $0x59] sm:$0xff]  ;;  %468 = vst.msk [vmem:[#allocation2 + $0x91] sm:$0xff] %vm444_vm1, %v428_v9  ;;  %v399_v2 = vadd.f32 %v5497_v20, %v360_v58  ;;  %v400_v5 = vadd.f32 %v5497_v20, %v361_v59  ;;  %v401_v11 = vadd.f32 %v5497_v20, %v362_v0  ;;  %v4615_v19 = vunpack.c.h.bf16 %v4642_v8 }
  0x2c   : > { %v1211_v1 = vpack.c.bf16 %v1185_v62, %v1184_v61  ;;  %469 = vst.msk [vmem:[#allocation2 + $0x99] sm:$0xff] %vm444_vm1, %v429_v56  ;;  %v430_v10 = vmax.f32 %v398_v63, 0.0  ;;  %v2311_v21 = vld [vmem:[#allocation2 + $0x61] sm:$0xff]  ;;  %v2312_v22 = vld [vmem:[#allocation2 + $0x69] sm:$0xff]  ;;  %v4618_v23 = vunpack.c.l.bf16 %v4643_v13  ;;  %v4619_v24 = vunpack.c.h.bf16 %v4643_v13  ;;  %v5634_v58 = vld [vmem:[#allocation2 + $0x12] sm:$0xff] }
  0x2d   : > { %v431_v15 = vmax.f32 %v399_v2, 0.0  ;;  %v432_v16 = vmax.f32 %v400_v5, 0.0  ;;  %v433_v17 = vmax.f32 %v401_v11, 0.0  ;;  %v1188_v26 = vld [vmem:[#allocation2 + $0x71] sm:$0xff]  ;;  %v1189_v27 = vld [vmem:[#allocation2 + $0x79] sm:$0xff]  ;;  %v488_v28 = vadd.s32 24, %v5562_v45 }
  0x2e   : > { %4807 = vmatmul.mubr.msk.bf16.gmra.mrb[4].mxu1 %vm444_vm1, %v1209_v42  ;;  %470 = vst.msk [vmem:[#allocation2 + $0xa1] sm:$0xff] %vm444_vm1, %v430_v10  ;;  %v363_v29 = vmul.f32 %v4614_v18, %v5485_v7  ;;  %v364_v30 = vmul.f32 %v4615_v19, %v5485_v7  ;;  %vm998_vm3 = vcmp.lt.s32.totalorder %v528_v14, 15  ;;  %v490_v31 = vadd.s32 40, %v5562_v45  ;;  %v2315_v9 = vld [vmem:[#allocation2 + $0x81] sm:$0xff]  ;;  %v2316_v54 = vld [vmem:[#allocation2 + $0x89] sm:$0xff]  ;;  %6814 = vst [vmem:[#allocation5_spill] sm:$0xff] %v5634_v58 }
  0x2f   : > { %4943 = vmatmul.mubr.msk.bf16.gmra.mrb[4].mxu0 %vm444_vm1, %v2336_v60  ;;  %4810 = vmatprep.mubr.msk.bf16.mxu1 %vm444_vm1, %v2336_v60  ;;  %471 = vst.msk [vmem:[#allocation2 + $0xa9] sm:$0xff] %vm444_vm1, %v431_v15  ;;  %472 = vst.msk [vmem:[#allocation2 + $0xb1] sm:$0xff] %vm444_vm1, %v432_v16  ;;  %v365_v32 = vmul.f32 %v4618_v23, %v5485_v7  ;;  %v366_v33 = vmul.f32 %v4619_v24, %v5485_v7  ;;  %v4622_v37 = vunpack.c.l.bf16 %v4644_v25  ;;  %v5647_v11 = vld [vmem:[#allocation2 + $0x2a] sm:$0xff]  ;;  %v5653_v16 = vld [vmem:[#allocation2 + $0x3a] sm:$0xff] }
  0x30   : > { %4946 = vmatprep.mubr.msk.bf16.mxu0 %vm444_vm1, %v1211_v1  ;;  %473 = vst.msk [vmem:[#allocation2 + $0xb9] sm:$0xff] %vm444_vm1, %v433_v17  ;;  %v2338_v34 = vpack.c.bf16 %v2312_v22, %v2311_v21  ;;  %v402_v35 = vadd.f32 %v5497_v20, %v363_v29  ;;  %v403_v36 = vadd.f32 %v5497_v20, %v364_v30  ;;  %v5618_v42 = vsel %vm998_vm3, 1.0, %v6753_v4  ;;  %v5669_v29 = vld [vmem:[#allocation2 + $0x32] sm:$0xff] }
  0x31   : > { %v1213_v38 = vpack.c.bf16 %v1189_v27, %v1188_v26  ;;  %v404_v39 = vadd.f32 %v5497_v20, %v365_v32  ;;  %v405_v40 = vadd.f32 %v5497_v20, %v366_v33  ;;  %6813 = vst [vmem:[#allocation4_spill] sm:$0xff] %v5618_v42  ;;  %v542_v44 = vand.u32 15, %v488_v28  ;;  %6816 = vst [vmem:[#allocation7_spill] sm:$0xff] %v5647_v11 }
  0x32   : > { %v434_v6 = vmax.f32 %v402_v35, 0.0  ;;  %v435_v47 = vmax.f32 %v403_v36, 0.0  ;;  %v556_v48 = vand.u32 15, %v490_v31  ;;  %v4623_v51 = vunpack.c.h.bf16 %v4644_v25  ;;  %v1192_v22 = vld [vmem:[#allocation2 + $0x91] sm:$0xff]  ;;  %v5664_v25 = vld [vmem:[#allocation2 + $0x22] sm:$0xff] }
  0x33   : > { %v436_v12 = vmax.f32 %v404_v39, 0.0  ;;  %v437_v50 = vmax.f32 %v405_v40, 0.0  ;;  %v367_v52 = vmul.f32 %v4622_v37, %v5485_v7  ;;  %v4626_v53 = vunpack.c.l.bf16 %v4645_v41  ;;  %v1193_v23 = vld [vmem:[#allocation2 + $0x99] sm:$0xff]  ;;  %6818 = vst [vmem:[#allocation9_spill] sm:$0xff] %v5664_v25  ;;  %v5678_v37 = vld [vmem:[#allocation2 + $0x4a] sm:$0xff] }
  0x34   : > { %474 = vst.msk [vmem:[#allocation2 + $0xc1] sm:$0xff] %vm444_vm1, %v434_v6  ;;  %475 = vst.msk [vmem:[#allocation2 + $0xc9] sm:$0xff] %vm444_vm1, %v435_v47  ;;  %v2628_v55 = vmul.f32 %v5618_v42, %v5620_v43  ;;  %v368_v56 = vmul.f32 %v4623_v51, %v5485_v7  ;;  %v4627_v57 = vunpack.c.h.bf16 %v4645_v41  ;;  %vm1000_vm4 = vcmp.lt.s32.totalorder %v542_v44, 15  ;;  %v5685_v40 = vld [vmem:[#allocation2 + $0x5a] sm:$0xff]  ;;  %v5909_v42 = vld [vmem:[%s6734_s3 + $0xc] sm:$0xf] }
  0x35   : > { %476 = vst.msk [vmem:[#allocation2 + $0xd1] sm:$0xff] %vm444_vm1, %v436_v12  ;;  %477 = vst.msk [vmem:[#allocation2 + $0xd9] sm:$0xff] %vm444_vm1, %v437_v50  ;;  %v492_v59 = vadd.s32 56, %v5562_v45  ;;  %v406_v60 = vadd.f32 %v5497_v20, %v367_v52  ;;  %v369_v61 = vmul.f32 %v4626_v53, %v5485_v7  ;;  %vm1002_vm5 = vcmp.lt.s32.totalorder %v556_v48, 15  ;;  %v1194_v26 = vld [vmem:[#allocation2 + $0xa1] sm:$0xff] }
  0x36   : > { %4811 = vmatmul.mubr.msk.bf16.gmra.mrb[8].mxu1 %vm444_vm1, %v1211_v1  ;;  %v494_v62 = vadd.s32 72, %v5562_v45  ;;  %v407_v63 = vadd.f32 %v5497_v20, %v368_v56  ;;  %v370_v0 = vmul.f32 %v4627_v57, %v5485_v7  ;;  %v2340_v1 = vpack.c.bf16 %v2316_v54, %v2315_v9  ;;  %v1195_v27 = vld [vmem:[#allocation2 + $0xa9] sm:$0xff]  ;;  %v1196_v44 = vld [vmem:[#allocation2 + $0xb1] sm:$0xff]  ;;  %v5692_v12 = vld [vmem:[%s6734_s3 + $0x1c] sm:$0xf]  ;;  %6854 = vst [vmem:[#allocation31_spill] sm:$0xff] %v5909_v42 }
  0x37   : > { %4947 = vmatmul.mubr.msk.bf16.gmra.mrb[8].mxu0 %vm444_vm1, %v2338_v34  ;;  %4814 = vmatprep.mubr.msk.bf16.mxu1 %vm444_vm1, %v2338_v34  ;;  %v438_v2 = vmax.f32 %v406_v60, 0.0  ;;  %v408_v5 = vadd.f32 %v5497_v20, %v369_v61  ;;  %v2659_v8 = vpack.c.bf16 %v2628_v55, %v5634_v58  ;;  %v5645_v10 = vsel %vm1000_vm4, 1.0, %v6753_v4  ;;  %v1197_v6 = vld [vmem:[#allocation2 + $0xb9] sm:$0xff]  ;;  %6821 = vst [vmem:[#allocation12_spill] sm:$0xff] %v5692_v12  ;;  %v5699_v50 = vld [vmem:[#allocation2 + $0x42] sm:$0xff] }
  0x38   : > { %4950 = vmatprep.mubr.msk.bf16.mxu0 %vm444_vm1, %v1213_v38  ;;  %6815 = vst [vmem:[#allocation6_spill] sm:$0xff] %v5645_v10  ;;  %v439_v13 = vmax.f32 %v407_v63, 0.0  ;;  %v409_v14 = vadd.f32 %v5497_v20, %v370_v0  ;;  %v5651_v15 = vsel %vm1002_vm5, 1.0, %v6753_v4  ;;  %v570_v17 = vand.u32 15, %v492_v59  ;;  %v5703_v54 = vld [vmem:[#allocation2 + $0x52] sm:$0xff]  ;;  %v5714_v63 = vld [vmem:[#allocation2 + $0x6a] sm:$0xff] }
  0x39   : > { %6817 = vst [vmem:[#allocation8_spill] sm:$0xff] %v5651_v15  ;;  %478 = vst.msk [vmem:[#allocation2 + $0xe1] sm:$0xff] %vm444_vm1, %v438_v2  ;;  %v440_v18 = vmax.f32 %v408_v5, 0.0  ;;  %v584_v19 = vand.u32 15, %v494_v62  ;;  %v2630_v24 = vmul.f32 %v5645_v10, %v5647_v11  ;;  %v2632_v28 = vmul.f32 %v5651_v15, %v5653_v16  ;;  %v4646_v5 = vld [vmem:[%s5480_s10 + $0x78] sm:$0xff]   ;;  %s265_s10 = scalar_lea.vmem %s6736_s5, %s6974_s22 }
  0x3a   : > { %479 = vst.msk [vmem:[#allocation2 + $0xe9] sm:$0xff] %vm444_vm1, %v439_v13  ;;  %v441_v21 = vmax.f32 %v409_v14, 0.0  ;;  %vm1004_vm6 = vcmp.lt.s32.totalorder %v570_v17, 15  ;;  %v496_v30 = vadd.s32 88, %v5562_v45  ;;  %v1215_v31 = vpack.c.bf16 %v1193_v23, %v1192_v22  ;;  %v5738_v22 = vld [vmem:[#allocation2 + $0x62] sm:$0xff]  ;;  %v5895_v11 = vld [vmem:[#allocation2 + $0x38] sm:$0xff] }
  0x3b   : > { %480 = vst.msk [vmem:[#allocation2 + $0xf1] sm:$0xff] %vm444_vm1, %v440_v18  ;;  %vm1006_vm7 = vcmp.lt.s32.totalorder %v584_v19, 15  ;;  %v498_v32 = vadd.s32 104, %v5562_v45  ;;  %v2660_v33 = vpack.c.bf16 %v2630_v24, %v5664_v25  ;;  %v1216_v34 = vpack.c.bf16 %v1195_v27, %v1194_v26  ;;  %v1198_v51 = vld [vmem:[#allocation2 + $0xc1] sm:$0xff]  ;;  %v1199_v52 = vld [vmem:[#allocation2 + $0xc9] sm:$0xff]  ;;  %6851 = vst [vmem:[#allocation28_spill] sm:$0xff] %v5895_v11 }
  0x3c   : > { %481 = vst.msk [vmem:[#allocation2 + $0xf9] sm:$0xff] %vm444_vm1, %v441_v21  ;;  %v2661_v35 = vpack.c.bf16 %v2632_v28, %v5669_v29  ;;  %v5676_v36 = vsel %vm1004_vm6, 1.0, %v6753_v4  ;;  %v5683_v39 = vsel %vm1006_vm7, 1.0, %v6753_v4  ;;  %v598_v41 = vand.u32 15, %v496_v30  ;;  %v1200_v18 = vld [vmem:[#allocation2 + $0xd1] sm:$0xff]  ;;  %v1201_v19 = vld [vmem:[#allocation2 + $0xd9] sm:$0xff] }
  0x3d   : > { %6819 = vst [vmem:[#allocation10_spill] sm:$0xff] %v5676_v36  ;;  %6820 = vst [vmem:[#allocation11_spill] sm:$0xff] %v5683_v39  ;;  %v612_v47 = vand.u32 15, %v498_v32  ;;  %v500_v48 = vadd.s32 120, %v5562_v45  ;;  %v2636_v53 = vmul.f32 %v5683_v39, %v5685_v40  ;;  %v1217_v9 = vpack.c.bf16 %v1197_v6, %v1196_v44  ;;  %v5743_v30 = vld [vmem:[#allocation2 + $0x72] sm:$0xff] }
  0x3e   : > { %4815 = vmatmul.mubr.msk.bf16.gmra.mrb[12].mxu1 %vm444_vm1, %v1213_v38  ;;  %v3052_v38 = vsel %vm1272_vm0, %v5567_v46, 0  ;;  %v2634_v46 = vmul.f32 %v5676_v36, %v5678_v37  ;;  %vm1008_vm8 = vcmp.lt.s32.totalorder %v598_v41, 15  ;;  %v521_v56 = vand.u32 15, %v5562_v45 }
  0x3f   : > { %4951 = vmatmul.mubr.msk.bf16.gmra.mrb[12].mxu0 %vm444_vm1, %v2340_v1  ;;  %4818 = vmatprep.mubr.msk.bf16.mxu1 %vm444_vm1, %v2340_v1  ;;  %vm1010_vm9 = vcmp.lt.s32.totalorder %v612_v47, 15  ;;  %v626_v55 = vand.u32 15, %v500_v48  ;;  %v502_v57 = vadd.s32 136, %v5562_v45  ;;  %v1218_v60 = vpack.c.bf16 %v1199_v52, %v1198_v51  ;;  %v5719_v1 = vld [vmem:[#allocation2 + $0x7a] sm:$0xff] }
  0x40   : > { %4972 = vmatprep.mubr.msk.bf16.mxu0 %vm444_vm1, %v2659_v8  ;;  %v2662_v59 = vpack.c.bf16 %v2634_v46, %v5699_v50  ;;  %v2663_v61 = vpack.c.bf16 %v2636_v53, %v5703_v54  ;;  %v5712_v62 = vsel %vm1008_vm8, 1.0, %v6753_v4  ;;  %v5717_v0 = vsel %vm1010_vm9, 1.0, %v6753_v4  ;;  %v1202_v23 = vld [vmem:[#allocation2 + $0xe1] sm:$0xff] }
  0x41   : > { %6822 = vst [vmem:[#allocation13_spill] sm:$0xff] %v5712_v62  ;;  %6823 = vst [vmem:[#allocation14_spill] sm:$0xff] %v5717_v0  ;;  %v487_v2 = vadd.s32 16, %v5562_v45  ;;  %vm5724_vm10 = vcmp.lt.s32.totalorder %v626_v55, 15  ;;  %vm5728_vm11 = vcmp.gt.s32.totalorder %v521_v56, 0  ;;  %v640_v14 = vand.u32 15, %v502_v57 }
  0x42   : > { %v504_v17 = vadd.s32 152, %v5562_v45  ;;  %v2638_v21 = vmul.f32 %v5712_v62, %v5714_v63  ;;  %v1203_v24 = vld [vmem:[#allocation2 + $0xe9] sm:$0xff]  ;;  %v2640_v26 = vmul.f32 %v5717_v0, %v5719_v1  ;;  %v489_v27 = vadd.s32 32, %v5562_v45  ;;  %v5767_v57 = vld [vmem:[#allocation2 + $0x9a] sm:$0xff] }
  0x43   : > { %v4630_v28 = vunpack.c.l.bf16 %v4646_v5  ;;  %v5753_v32 = vsel %vm5728_vm11, 1.0, %v6753_v4  ;;  %vm1014_vm12 = vcmp.lt.s32.totalorder %v640_v14, 15  ;;  %v506_v44 = vadd.s32 168, %v5562_v45  ;;  %v1094_v55 = vld [vmem:[#allocation2 + $0x8] sm:$0xff]  ;;  %v1204_v14 = vld [vmem:[#allocation2 + $0xf1] sm:$0xff] }
  0x44   : > { %v654_v41 = vand.u32 15, %v504_v17  ;;  %v2664_v6 = vpack.c.bf16 %v2638_v21, %v5738_v22  ;;  %v1220_v47 = vpack.c.bf16 %v1203_v24, %v1202_v23  ;;  %v2665_v46 = vpack.c.bf16 %v2640_v26, %v5743_v30  ;;  %v1205_v17 = vld [vmem:[#allocation2 + $0xf9] sm:$0xff] }
  0x45   : > { %v371_v48 = vmul.f32 %v4630_v28, %v5485_v7  ;;  %v549_v52 = vand.u32 15, %v489_v27  ;;  %v4631_v53 = vunpack.c.h.bf16 %v4646_v5  ;;  %v5765_v56 = vsel %vm1014_vm12, 1.0, %v6753_v4  ;;  %v5797_v28 = vld [vmem:[#allocation2 + $0x92] sm:$0xff] }
  0x46   : > { %4819 = vmatmul.mubr.msk.bf16.gmra.mrb[16].mxu1 %vm444_vm1, %v1215_v31  ;;  %v5748_v31 = vsel %vm5724_vm10, 1.0, %v6753_v4  ;;  %6829 = vst [vmem:[#allocation16_spill] sm:$0xff] %v5765_v56  ;;  %vm5778_vm14 = vcmp.lt.s32.totalorder %v654_v41, 15  ;;  %v668_v8 = vand.u32 15, %v506_v44  ;;  %v2644_v24 = vmul.f32 %v5765_v56, %v5767_v57 }
  0x47   : > { %4973 = vmatmul.mubr.msk.bf16.vlgmr.msra.gmra.mrb[0].mxu0 %vm444_vm1, %v2660_v33  ;;  %4822 = vmatprep.mubr.msk.bf16.mxu1 %vm444_vm1, %v1216_v34  ;;  %6828 = vst [vmem:[#allocation15_spill] sm:$0xff] %v5748_v31  ;;  %v1093_v33 = vld [vmem:[#allocation2] sm:$0xff]  ;;  %v535_v34 = vand.u32 15, %v487_v2  ;;  %v372_v13 = vmul.f32 %v4631_v53, %v5485_v7  ;;  %vm905_vm15 = vcmp.gt.s32.totalorder %v549_v52, 0  ;;  %v510_v41 = vadd.s32 200, %v5562_v45  ;;  %v5830_v2 = vld [vmem:[#allocation2 + $0x18] sm:$0xff] }
  0x48   : > { %5005 = vmatpush3.bf16.msra.mxu0 %v3052_v38  ;;  %4976 = vmatprep.mubr.msk.bf16.mxu0 %vm444_vm1, %v2661_v35  ;;  %v1219_v35 = vpack.c.bf16 %v1201_v19, %v1200_v18  ;;  %v5755_v38 = vld [vmem:[#allocation2 + $0x8a] sm:$0xff]  ;;  %v1125_v51 = vmul.f32 %v5753_v32, %v1093_v33  ;;  %v508_v18 = vadd.s32 184, %v5562_v45  ;;  %v493_v19 = vadd.s32 64, %v5562_v45  ;;  %6838 = vst [vmem:[#allocation21_spill] sm:$0xff] %v5830_v2 }
  0x49   : > { %5372 = vmatprep.subr.msk.bf16.mxu0 %vm1272_vm0, %v5692_v12  ;;  %vm5774_vm13 = vcmp.gt.s32.totalorder %v535_v34, 0  ;;  %v411_v7 = vadd.f32 %v5497_v20, %v372_v13  ;;  %v5802_v33 = vsel %vm5778_vm14, 1.0, %v6753_v4  ;;  %vm1018_vm3 = vcmp.lt.s32.totalorder %v668_v8, 15  ;;  %v5914_v12 = vld [vmem:[#allocation2 + $0x48] sm:$0xff] }
  0x4a   : > { %v1157_v23 = vpack.c.bf16 %v1094_v55, %v1125_v51  ;;  %v5795_v27 = vsel %vm5774_vm13, 1.0, %v6753_v4  ;;  %6834 = vst [vmem:[#allocation17_spill] sm:$0xff] %v5802_v33  ;;  %v577_v51 = vand.u32 15, %v493_v19  ;;  %v495_v52 = vadd.s32 80, %v5562_v45  ;;  %6855 = vst [vmem:[#allocation32_spill] sm:$0xff] %v5914_v12 }
  0x4b   : > { %v443_v44 = vmax.f32 %v411_v7, 0.0  ;;  %v2667_v53 = vpack.c.bf16 %v2644_v24, %v5797_v28  ;;  %v696_v13 = vand.u32 15, %v510_v41  ;;  %v497_v7 = vadd.s32 96, %v5562_v45 }
  0x4c   : > { %vm5844_vm6 = vcmp.gt.s32.totalorder %v577_v51, 0  ;;  %v591_v19 = vand.u32 15, %v495_v52  ;;  %v1780_v41 = vsel %vm1272_vm0, %v5575_v49, 0  ;;  %v5864_v52 = vld [vmem:[#allocation2 + $0x30] sm:$0xff]  ;;  %v501_v3 = vadd.s32 128, %v5562_v45 }
  0x4d   : > { %483 = vst.msk [vmem:[#allocation2 + $0x109] sm:$0xff] %vm444_vm1, %v443_v44  ;;  %v5858_v44 = vld [vmem:[#allocation2 + $0xb2] sm:$0xff]  ;;  %vm1022_vm7 = vcmp.lt.s32.totalorder %v696_v13, 15  ;;  %v5873_v49 = vld [vmem:[#allocation2 + $0xca] sm:$0xff] }
  0x4e   : > { %4823 = vmatmul.mubr.msk.bf16.gmra.mrb[20].mxu1 %vm444_vm1, %v1217_v9  ;;  %v2642_v9 = vmul.f32 %v5748_v31, %v5755_v38  ;;  %vm911_vm8 = vcmp.gt.s32.totalorder %v591_v19, 0  ;;  %v5890_v15 = vsel %vm1022_vm7, 1.0, %v6753_v4 }
  0x4f   : > { %4977 = vmatmul.mubr.msk.bf16.gmra.mrb[4].mxu0 %vm444_vm1, %v2662_v59  ;;  %4826 = vmatprep.mubr.msk.bf16.mxu1 %vm444_vm1, %v1218_v60  ;;  %v491_v59 = vadd.s32 48, %v5562_v45  ;;  %v410_v60 = vadd.f32 %v5497_v20, %v371_v48  ;;  %v5807_v20 = vld [vmem:[#allocation2 + $0x10] sm:$0xff]  ;;  %v5815_v48 = vld [vmem:[#allocation2 + $0x20] sm:$0xff]  ;;  %6850 = vst [vmem:[#allocation27_spill] sm:$0xff] %v5890_v15 }
  0x50   : > { %4980 = vmatprep.mubr.msk.bf16.mxu0 %vm444_vm1, %v2663_v61  ;;  %v5772_v61 = vld [vmem:[#allocation2 + $0x82] sm:$0xff]  ;;  %v1127_v55 = vmul.f32 %v5795_v27, %v5807_v20 }
  0x51   : > { %v442_v21 = vmax.f32 %v410_v60, 0.0  ;;  %v2666_v26 = vpack.c.bf16 %v2642_v9, %v5772_v61  ;;  %v563_v34 = vand.u32 15, %v491_v59  ;;  %v512_v9 = vadd.s32 216, %v5562_v45  ;;  %v5826_v60 = vld [vmem:[#allocation2 + $0xba] sm:$0xff] }
  0x52   : > { %v5824_v59 = vsel %vm1018_vm3, 1.0, %v6753_v4 }
  0x53   : > { %482 = vst.msk [vmem:[#allocation2 + $0x101] sm:$0xff] %vm444_vm1, %v442_v21  ;;  %6837 = vst [vmem:[#allocation20_spill] sm:$0xff] %v5824_v59  ;;  %vm907_vm4 = vcmp.gt.s32.totalorder %v563_v34, 0  ;;  %v5849_v21 = vld [vmem:[#allocation2 + $0x28] sm:$0xff]  ;;  %v2648_v24 = vmul.f32 %v5824_v59, %v5826_v60  ;;  %v1158_v34 = vpack.c.bf16 %v5830_v2, %v1127_v55 }
  0x54   : > { %6843 = vst [vmem:[#allocation22_spill] sm:$0xff] %v5849_v21  ;;  %v5862_v51 = vsel %vm907_vm4, 1.0, %v6753_v4  ;;  %v5921_v2 = vld [vmem:[#allocation2 + $0xea] sm:$0xff] }
  0x55   : > { %6844 = vst [vmem:[#allocation23_spill] sm:$0xff] %v5862_v51  ;;  %v2669_v13 = vpack.c.bf16 %v2648_v24, %v5858_v44  ;;  %v1131_v25 = vmul.f32 %v5862_v51, %v5864_v52  ;;  %v5926_v51 = vmul.f32 %v5645_v10, %v5620_v43  ;;  %v6861_v10 = vmov 0.0   ;;  %v5957_v43 = vld [vmem:[#allocation2 + $0x60] sm:$0xff] }
  0x56   : > { %4827 = vmatmul.mubr.msk.bf16.gmra.mrb[24].mxu1 %vm444_vm1, %v1219_v35  ;;  %v5805_v35 = vpack.c.bf16 %v1205_v17, %v1204_v14  ;;  %v5838_v14 = vld [vmem:[#allocation2 + $0xa2] sm:$0xff] }
  0x57   : > { %4981 = vmatmul.mubr.msk.bf16.gmra.mrb[8].mxu0 %vm444_vm1, %v2664_v6  ;;  %4830 = vmatprep.mubr.msk.bf16.mxu1 %vm444_vm1, %v1220_v47  ;;  %v5810_v6 = vld [vmem:[#allocation2 + $0xaa] sm:$0xff]  ;;  %v5813_v47 = vsel %vm905_vm15, 1.0, %v6753_v4  ;;  %6857 = vst [vmem:[#allocation34_spill] sm:$0xff] %v5926_v51  ;;  %v5966_v51 = vmul.f32 %v5676_v36, %v5653_v16  ;;  %v5981_v16 = vmul.f32 %v5683_v39, %v5678_v37 }
  0x58   : > { %4984 = vmatprep.mubr.msk.bf16.mxu0 %vm444_vm1, %v2665_v46  ;;  %6835 = vst [vmem:[#allocation18_spill] sm:$0xff] %v5805_v35  ;;  %6836 = vst [vmem:[#allocation19_spill] sm:$0xff] %v5813_v47  ;;  %v682_v46 = vand.u32 15, %v508_v18  ;;  %v2646_v5 = vmul.f32 %v5802_v33, %v5810_v6  ;;  %v1129_v8 = vmul.f32 %v5813_v47, %v5815_v48  ;;  %v5892_v18 = vld [vmem:[#allocation2 + $0xda] sm:$0xff]  ;;  %v5998_v37 = vld [vmem:[#allocation2 + $0x68] sm:$0xff] }
  0x59   : > { %v5994_v36 = vmul.f32 %v5712_v62, %v5685_v40  ;;  %6864 = vst [vmem:[#allocation40_spill] sm:$0xff] %v5998_v37  ;;  %v6114_v62 = vmul.f32 %v5795_v27, %v5815_v48 }
  0x5a   : > { %vm5840_vm5 = vcmp.lt.s32.totalorder %v682_v46, 15  ;;  %v2668_v46 = vpack.c.bf16 %v2646_v5, %v5838_v14  ;;  %v5878_v5 = vsel %vm5844_vm6, 1.0, %v6753_v4  ;;  %v5975_v47 = vld [vmem:[#allocation2 + $0xfa] sm:$0xff] }
  0x5b   : > { %v5871_v55 = vsel %vm5840_vm5, 1.0, %v6753_v4  ;;  %6846 = vst [vmem:[#allocation25_spill] sm:$0xff] %v5878_v5  ;;  %6863 = vst [vmem:[#allocation39_spill] sm:$0xff] %v5975_v47 }
  0x5c   : > { %6845 = vst [vmem:[#allocation24_spill] sm:$0xff] %v5871_v55  ;;  %v2650_v19 = vmul.f32 %v5871_v55, %v5873_v49  ;;  %6873 = vst [vmem:[#allocation47_spill] sm:$0xff] %v6114_v62 }
  0x5e   : > { %4831 = vmatmul.mubr.msk.bf16.gmra.mrb[28].mxu1 %vm444_vm1, %v5805_v35  ;;  %v5880_v35 = vld [vmem:[#allocation2 + $0x40] sm:$0xff] }
  0x5f   : > { %4985 = vmatmul.mubr.msk.bf16.gmra.mrb[12].mxu0 %vm444_vm1, %v2666_v26  ;;  %4836 = vmatprep.mubr.msk.bf16.mxu1 %vm444_vm1, %v1157_v23  ;;  %v710_v23 = vand.u32 15, %v512_v9  ;;  %v499_v26 = vadd.s32 112, %v5562_v45  ;;  %v1159_v9 = vpack.c.bf16 %v5849_v21, %v1129_v8  ;;  %6847 = vst [vmem:[#allocation26_spill] sm:$0xff] %v5880_v35  ;;  %v605_v8 = vand.u32 15, %v497_v7  ;;  %v5904_v7 = vld [vmem:[#allocation2 + $0x50] sm:$0xff] }
  0x60   : > { %4988 = vmatprep.mubr.msk.bf16.mxu0 %vm444_vm1, %v2667_v53  ;;  %v514_v53 = vadd.s32 232, %v5562_v45  ;;  %v1133_v24 = vmul.f32 %v5878_v5, %v5880_v35  ;;  %6853 = vst [vmem:[#allocation30_spill] sm:$0xff] %v5904_v7  ;;  %v5938_v35 = vld [vmem:[#allocation2 + $0xd2] sm:$0xff] }
  0x61   : > { %vm5883_vm9 = vcmp.lt.s32.totalorder %v710_v23, 15  ;;  %v619_v17 = vand.u32 15, %v499_v26  ;;  %v5902_v23 = vsel %vm911_vm8, 1.0, %v6753_v4  ;;  %vm913_vm10 = vcmp.gt.s32.totalorder %v605_v8, 0  ;;  %6858 = vst [vmem:[#allocation35_spill] sm:$0xff] %v5938_v35  ;;  %v5946_v8 = vld [vmem:[#allocation2 + $0x58] sm:$0xff] }
  0x62   : > { %6852 = vst [vmem:[#allocation29_spill] sm:$0xff] %v5902_v23  ;;  %v724_v26 = vand.u32 15, %v514_v53  ;;  %v5919_v5 = vsel %vm5883_vm9, 1.0, %v6753_v4  ;;  %v516_v53 = vadd.s32 248, %v5562_v45  ;;  %v5936_v4 = vmul.f32 %v5902_v23, %v5904_v7  ;;  %6859 = vst [vmem:[#allocation36_spill] sm:$0xff] %v5946_v8 }
  0x63   : > { %6856 = vst [vmem:[#allocation33_spill] sm:$0xff] %v5919_v5  ;;  %vm915_vm11 = vcmp.gt.s32.totalorder %v619_v17, 0  ;;  %v5952_v17 = vld [vmem:[#allocation2 + $0xe2] sm:$0xff]  ;;  %v5955_v23 = vsel %vm913_vm10, 1.0, %v6861_v10  ;;  %v503_v7 = vadd.s32 144, %v5562_v45 }
  0x64   : > { %vm1026_vm12 = vcmp.lt.s32.totalorder %v724_v26, 15  ;;  %6860 = vst [vmem:[#allocation37_spill] sm:$0xff] %v5952_v17  ;;  %v5960_v58 = vsel %vm915_vm11, 1.0, %v6861_v10  ;;  %v633_v26 = vand.u32 15, %v501_v3 }
  0x66   : > { %4837 = vmatmul.mubr.msk.bf16.vlgmr.msra.gmra.mrb[0].mxu1 %vm444_vm1, %v1158_v34  ;;  %v5912_v34 = vld [vmem:[#allocation2 + $0xc2] sm:$0xff]  ;;  %vm917_vm14 = vcmp.gt.s32.totalorder %v633_v26, 0 }
  0x67   : > { %4869 = vmatpush3.bf16.msra.mxu1 %v1780_v41  ;;  %4989 = vmatmul.mubr.msk.bf16.gmra.mrb[16].mxu0 %vm444_vm1, %v2668_v46  ;;  %v2652_v41 = vmul.f32 %v5890_v15, %v5892_v18  ;;  %v1160_v46 = vpack.c.bf16 %v5895_v11, %v1131_v25  ;;  %v5950_v25 = vmul.f32 %v5919_v5, %v5921_v2  ;;  %v5973_v11 = vsel %vm1026_vm12, 1.0, %v6861_v10 }
  0x68   : > { %4840 = vmatprep.mubr.msk.bf16.mxu1 %vm444_vm1, %v1159_v9  ;;  %4992 = vmatprep.mubr.msk.bf16.mxu0 %vm444_vm1, %v2669_v13  ;;  %v2670_v9 = vpack.c.bf16 %v2650_v19, %v5912_v34  ;;  %v1161_v13 = vpack.c.bf16 %v5914_v12, %v1133_v24  ;;  %v5962_v19 = vld [vmem:[#allocation2 + $0x70] sm:$0xff]  ;;  %v738_v24 = vand.u32 15, %v516_v53  ;;  %v1162_v12 = vpack.c.bf16 %v5946_v8, %v5936_v4 }
  0x69   : > { %5367 = vmatprep.subr.msk.bf16.mxu1 %vm1272_vm0, %v5909_v42  ;;  %v2671_v42 = vpack.c.bf16 %v2652_v41, %v5938_v35  ;;  %6862 = vst [vmem:[#allocation38_spill] sm:$0xff] %v5973_v11  ;;  %v2672_v41 = vpack.c.bf16 %v5950_v25, %v5952_v17  ;;  %v1137_v4 = vmul.f32 %v5955_v23, %v5957_v43  ;;  %v6881_v17 = vld [vmem:[#allocation32_spill] sm:$0xff] }
  0x6a   : > { %v5990_v3 = vmul.f32 %v5960_v58, %v5962_v19  ;;  %vm1028_vm13 = vcmp.lt.s32.totalorder %v738_v24, 15  ;;  %v6004_v25 = vmul.f32 %v5717_v0, %v5714_v63  ;;  %v6008_v53 = vmul.f32 %v5748_v31, %v5719_v1  ;;  %v6015_v24 = vld [vmem:[#allocation2 + $0xf2] sm:$0xff]  ;;  %v6038_v63 = vld [vmem:[#allocation2 + $0x10a] sm:$0xff] }
  0x6b   : > { %v2656_v40 = vmul.f32 %v5973_v11, %v5975_v47  ;;  %6865 = vst [vmem:[#allocation41_spill] sm:$0xff] %v6015_v24  ;;  %v1163_v26 = vpack.c.bf16 %v5998_v37, %v1137_v4  ;;  %v6036_v31 = vmul.f32 %v5802_v33, %v5767_v57  ;;  %6867 = vst [vmem:[#allocation43_spill] sm:$0xff] %v6038_v63  ;;  %v6041_v1 = vsel %vm917_vm14, 1.0, %v6861_v10  ;;  %v6055_v57 = vld [vmem:[#allocation2 + $0x78] sm:$0xff] }
  0x6c   : > { %v6053_v0 = vmul.f32 %v5871_v55, %v5826_v60  ;;  %v6066_v4 = vmul.f32 %v5890_v15, %v5873_v49  ;;  %v6085_v60 = vmul.f32 %v5973_v11, %v5921_v2  ;;  %v6093_v55 = vld [vmem:[#allocation2 + $0x88] sm:$0xff]  ;;  %v6883_v47 = vld [vmem:[#allocation25_spill] sm:$0xff] }
  0x6d   : > { %v2673_v33 = vpack.c.bf16 %v2656_v40, %v6015_v24  ;;  %v6074_v40 = vmul.f32 %v5919_v5, %v5892_v18  ;;  %v6091_v18 = vld [vmem:[#allocation2 + $0x102] sm:$0xff]  ;;  %v6152_v24 = vmul.f32 %v5955_v23, %v5962_v19 }
  0x6e   : > { %4841 = vmatmul.mubr.msk.bf16.gmra.mrb[4].mxu1 %vm444_vm1, %v1160_v46  ;;  %v505_v46 = vadd.s32 160, %v5562_v45  ;;  %6870 = vst [vmem:[#allocation44_spill] sm:$0xff] %v6085_v60  ;;  %6871 = vst [vmem:[#allocation45_spill] sm:$0xff] %v6091_v18 }
  0x6f   : > { %4993 = vmatmul.mubr.msk.bf16.gmra.mrb[20].mxu0 %vm444_vm1, %v2670_v9  ;;  %4844 = vmatprep.mubr.msk.bf16.mxu1 %vm444_vm1, %v1161_v13  ;;  %v647_v9 = vand.u32 15, %v503_v7  ;;  %v6028_v7 = vsel %vm1028_vm13, 1.0, %v6861_v10  ;;  %v6032_v13 = vmul.f32 %v5753_v32, %v5815_v48  ;;  %v6148_v48 = vld [vmem:[#allocation2 + $0xa0] sm:$0xff] }
  0x70   : > { %4996 = vmatprep.mubr.msk.bf16.mxu0 %vm444_vm1, %v2671_v42  ;;  %v6024_v42 = vmul.f32 %v5765_v56, %v5755_v38  ;;  %6866 = vst [vmem:[#allocation42_spill] sm:$0xff] %v6028_v7  ;;  %v6043_v38 = vld [vmem:[#allocation2 + $0x80] sm:$0xff]  ;;  %v6049_v56 = vmul.f32 %v5824_v59, %v5810_v6  ;;  %v661_v6 = vand.u32 15, %v505_v46  ;;  %v6110_v46 = vmul.f32 %v5753_v32, %v5807_v20  ;;  %v6879_v20 = vld [vmem:[#allocation21_spill] sm:$0xff]  ;;  %v6880_v59 = vld [vmem:[#allocation28_spill] sm:$0xff] }
  0x71   : > { %vm6058_vm15 = vcmp.gt.s32.totalorder %v647_v9, 0  ;;  %v2658_v9 = vmul.f32 %v6028_v7, %v6038_v63  ;;  %v1141_v49 = vmul.f32 %v6041_v1, %v6043_v38  ;;  %v2985_v2 = vpack.c.bf16 %v5849_v21, %v6032_v13  ;;  %v6877_v63 = vld [vmem:[#allocation23_spill] sm:$0xff]  ;;  %v6882_v7 = vld [vmem:[#allocation30_spill] sm:$0xff]  ;;  %6887 = vst [vmem:[#allocation28_spill] sm:$0xff] %v6152_v24 }
  0x72   : > { %v6098_v39 = vsel %vm6058_vm15, 1.0, %v6861_v10  ;;  %6872 = vst [vmem:[#allocation46_spill] sm:$0xff] %v6110_v46  ;;  %vm921_vm3 = vcmp.gt.s32.totalorder %v661_v6, 0  ;;  %v509_v13 = vadd.s32 192, %v5562_v45  ;;  %v6131_v6 = vld [vmem:[#allocation2 + $0x90] sm:$0xff]  ;;  %v6139_v35 = vmul.f32 %v6883_v47, %v6882_v7  ;;  %v6208_v46 = vld [vmem:[#allocation2 + $0xc0] sm:$0xff] }
  0x73   : > { %v1165_v32 = vpack.c.bf16 %v6093_v55, %v1141_v49  ;;  %v6146_v15 = vsel %vm921_vm3, 1.0, %v6861_v10  ;;  %v6156_v60 = vmul.f32 %v5960_v58, %v6043_v38  ;;  %v2955_v21 = vmul.f32 %v5795_v27, %v5864_v52 }
  0x74   : > { %6884 = vst [vmem:[#allocation23_spill] sm:$0xff] %v6139_v35  ;;  %v6179_v62 = vmul.f32 %v6041_v1, %v6131_v6  ;;  %v6183_v27 = vmul.f32 %v6098_v39, %v6148_v48 }
  0x75   : > { %6888 = vst [vmem:[#allocation30_spill] sm:$0xff] %v6156_v60  ;;  %v6891_v60 = vld [vmem:[#allocation12_spill] sm:$0xff] }
  0x76   : > { %4845 = vmatmul.mubr.msk.bf16.gmra.mrb[8].mxu1 %vm444_vm1, %v1162_v12  ;;  %v1164_v12 = vpack.c.bf16 %v6055_v57, %v5990_v3  ;;  %v2674_v3 = vpack.c.bf16 %v2658_v9, %v6091_v18  ;;  %v6885_v9 = vld [vmem:[#allocation29_spill] sm:$0xff]  ;;  %6889 = vst [vmem:[#allocation25_spill] sm:$0xff] %v6179_v62 }
  0x77   : > { %4997 = vmatmul.mubr.msk.bf16.gmra.mrb[24].mxu0 %vm444_vm1, %v2672_v41  ;;  %4848 = vmatprep.mubr.msk.bf16.mxu1 %vm444_vm1, %v1163_v26  ;;  %v507_v26 = vadd.s32 176, %v5562_v45  ;;  %v6874_v41 = vld [vmem:[#allocation19_spill] sm:$0xff]  ;;  %v6143_v49 = vmul.f32 %v6885_v9, %v5957_v43  ;;  %6890 = vst [vmem:[#allocation29_spill] sm:$0xff] %v6183_v27 }
  0x78   : > { %5000 = vmatprep.mubr.msk.bf16.mxu0 %vm444_vm1, %v2673_v33  ;;  %v6119_v11 = vmul.f32 %v6874_v41, %v5864_v52  ;;  %v6876_v33 = vld [vmem:[#allocation26_spill] sm:$0xff]  ;;  %v6186_v52 = vld [vmem:[#allocation2 + $0xa8] sm:$0xff] }
  0x79   : > { %v6123_v5 = vmul.f32 %v6877_v63, %v6876_v33  ;;  %6886 = vst [vmem:[#allocation21_spill] sm:$0xff] %v6143_v49  ;;  %v675_v18 = vand.u32 15, %v507_v26  ;;  %v1143_v26 = vmul.f32 %v6098_v39, %v6131_v6 }
  0x7a   : > { %6875 = vst [vmem:[#allocation19_spill] sm:$0xff] %v6119_v11  ;;  %v6173_v11 = vld [vmem:[#allocation2 + $0x98] sm:$0xff] }
  0x7b   : > { %6878 = vst [vmem:[#allocation26_spill] sm:$0xff] %v6123_v5  ;;  %v689_v5 = vand.u32 15, %v509_v13  ;;  %vm923_vm4 = vcmp.gt.s32.totalorder %v675_v18, 0  ;;  %v513_v13 = vadd.s32 224, %v5562_v45  ;;  %v1166_v24 = vpack.c.bf16 %v6173_v11, %v1143_v26 }
  0x7c   : > { %v6200_v49 = vsel %vm923_vm4, 1.0, %v6861_v10  ;;  %v3346_v26 = vsel %vm1272_vm0, %v6891_v60, 0 }
  0x7d   : > { %vm925_vm5 = vcmp.gt.s32.totalorder %v689_v5, 0  ;;  %v717_v27 = vand.u32 15, %v513_v13  ;;  %v2961_v13 = vmul.f32 %v6883_v47, %v5957_v43 }
  0x7e   : > { %4849 = vmatmul.mubr.msk.bf16.gmra.mrb[12].mxu1 %vm444_vm1, %v1164_v12  ;;  %v1145_v12 = vmul.f32 %v6146_v15, %v6148_v48 }
  0x7f   : > { %5001 = vmatmul.mubr.msk.bf16.gmra.mrb[28].mxu0 %vm444_vm1, %v2674_v3  ;;  %4852 = vmatprep.mubr.msk.bf16.mxu1 %vm444_vm1, %v1165_v32  ;;  %v2957_v3 = vmul.f32 %v6874_v41, %v6876_v33  ;;  %v511_v32 = vadd.s32 208, %v5562_v45  ;;  %v6202_v41 = vld [vmem:[#allocation2 + $0xb0] sm:$0xff]  ;;  %v6206_v33 = vsel %vm925_vm5, 1.0, %v6861_v10  ;;  %vm929_vm7 = vcmp.gt.s32.totalorder %v717_v27, 0 }
  0x80   : > { %5006 = vmatprep.mubr.msk.bf16.mxu0 %vm444_vm1, %v2985_v2  ;;  %v2986_v2 = vpack.c.bf16 %v6880_v59, %v2955_v21  ;;  %v1167_v18 = vpack.c.bf16 %v6186_v52, %v1145_v12  ;;  %v1147_v21 = vmul.f32 %v6200_v49, %v6202_v41  ;;  %v2959_v12 = vmul.f32 %v6877_v63, %v6882_v7  ;;  %v6237_v7 = vld [vmem:[#allocation2 + $0xc8] sm:$0xff] }
  0x81   : > { %v2987_v5 = vpack.c.bf16 %v6881_v17, %v2957_v3  ;;  %v703_v62 = vand.u32 15, %v511_v32  ;;  %v6220_v3 = vld [vmem:[%s6734_s3 + $0x20] sm:$0xf]  ;;  %v6224_v32 = vld [vmem:[#allocation2 + $0xb8] sm:$0xff]  ;;  %v6230_v60 = vmul.f32 %v6146_v15, %v6202_v41  ;;  %v6234_v63 = vmul.f32 %v6200_v49, %v6208_v46 }
  0x82   : > { %v2988_v35 = vpack.c.bf16 %v5946_v8, %v2959_v12  ;;  %v2989_v43 = vpack.c.bf16 %v5998_v37, %v2961_v13  ;;  %v6256_v27 = vsel %vm929_vm7, 1.0, %v6861_v10  ;;  %v1121_v17 = vld [vmem:[#allocation2 + $0xe0] sm:$0xff]  ;;  %v6264_v12 = vld [vmem:[#allocation2 + $0xd8] sm:$0xff]  ;;  %v1123_v37 = vld [vmem:[#allocation2 + $0xf0] sm:$0xff] }
  0x83   : > { %6892 = vst [vmem:[#allocation12_spill] sm:$0xff] %v6230_v60  ;;  %6893 = vst [vmem:[#allocation48_spill] sm:$0xff] %v6234_v63  ;;  %vm927_vm6 = vcmp.gt.s32.totalorder %v703_v62, 0  ;;  %v1650_v8 = vld [vmem:[#allocation2 + $0xa] sm:$0xff] }
  0x84   : > { %v6252_v47 = vsel %vm927_vm6, 1.0, %v6861_v10 }
  0x86   : > { %4853 = vmatmul.mubr.msk.bf16.gmra.mrb[16].mxu1 %vm444_vm1, %v1166_v24  ;;  %v1149_v24 = vmul.f32 %v6206_v33, %v6208_v46 }
  0x87   : > { %5007 = vmatmul.mubr.msk.bf16.vlgmr.msra.gmra.mrb[0].mxu0 %vm444_vm1, %v2986_v2  ;;  %4856 = vmatprep.mubr.msk.bf16.mxu1 %vm444_vm1, %v1167_v18  ;;  %v515_v2 = vadd.s32 240, %v5562_v45  ;;  %v1119_v45 = vld [vmem:[#allocation2 + $0xd0] sm:$0xff] }
  0x88   : > { %5039 = vmatpush3.bf16.msra.mxu0 %v3346_v26  ;;  %5010 = vmatprep.mubr.msk.bf16.mxu0 %vm444_vm1, %v2987_v5  ;;  %v1168_v5 = vpack.c.bf16 %v6224_v32, %v1147_v21  ;;  %v1169_v62 = vpack.c.bf16 %v6237_v7, %v1149_v24  ;;  %v1151_v26 = vmul.f32 %v6252_v47, %v1119_v45 }
  0x89   : > { %5373 = vmatprep.subr.msk.bf16.mxu0 %vm1272_vm0, %v6220_v3  ;;  %v731_v18 = vand.u32 15, %v515_v2  ;;  %v2963_v21 = vmul.f32 %v6885_v9, %v5962_v19  ;;  %v1153_v24 = vmul.f32 %v6256_v27, %v1121_v17  ;;  %v6268_v13 = vmul.f32 %v6206_v33, %v1119_v45  ;;  %v2949_v19 = vld [vmem:[#allocation2 + $0x100] sm:$0xff] }
  0x8a   : > { %v6271_v2 = vmul.f32 %v6252_v47, %v1121_v17 }
  0x8b   : > { %6894 = vst [vmem:[#allocation49_spill] sm:$0xff] %v6268_v13  ;;  %vm931_vm8 = vcmp.gt.s32.totalorder %v731_v18, 0  ;;  %v2990_v63 = vpack.c.bf16 %v6055_v57, %v2963_v21  ;;  %v6896_v21 = vld [vmem:[#allocation4_spill] sm:$0xff] }
  0x8c   : > { %6895 = vst [vmem:[#allocation50_spill] sm:$0xff] %v6271_v2 }
  0x8e   : > { %4857 = vmatmul.mubr.msk.bf16.gmra.mrb[20].mxu1 %vm444_vm1, %v1168_v5  ;;  %v6274_v5 = vld [vmem:[#allocation2 + $0xe8] sm:$0xff] }
  0x8f   : > { %5011 = vmatmul.mubr.msk.bf16.gmra.mrb[4].mxu0 %vm444_vm1, %v2988_v35  ;;  %4860 = vmatprep.mubr.msk.bf16.mxu1 %vm444_vm1, %v1169_v62  ;;  %v2965_v35 = vmul.f32 %v5955_v23, %v6043_v38  ;;  %v1170_v62 = vpack.c.bf16 %v6264_v12, %v1151_v26  ;;  %v1171_v60 = vpack.c.bf16 %v6274_v5, %v1153_v24  ;;  %v6292_v26 = vld [vmem:[#allocation2 + $0xf8] sm:$0xff] }
  0x90   : > { %5014 = vmatprep.mubr.msk.bf16.mxu0 %vm444_vm1, %v2989_v43  ;;  %v4331_v43 = vsel %vm931_vm8, 1.0, %v6861_v10  ;;  %v2967_v38 = vmul.f32 %v5960_v58, %v6131_v6  ;;  %v1682_v24 = vmul.f32 %v6896_v21, %v1650_v8  ;;  %v6296_v10 = vmul.f32 %v6256_v27, %v1123_v37  ;;  %v6303_v6 = vld [vmem:[#allocation2 + $0x108] sm:$0xff] }
  0x91   : > { %v2991_v18 = vpack.c.bf16 %v6093_v55, %v2965_v35  ;;  %v1155_v23 = vmul.f32 %v4331_v43, %v1123_v37  ;;  %v6298_v35 = vmul.f32 %v4331_v43, %v2949_v19  ;;  %v2969_v58 = vmul.f32 %v6041_v1, %v6148_v48  ;;  %v6897_v48 = vld [vmem:[#allocation7_spill] sm:$0xff] }
  0x92   : > { %v2992_v9 = vpack.c.bf16 %v6173_v11, %v2967_v38  ;;  %v2971_v1 = vmul.f32 %v6098_v39, %v6202_v41  ;;  %v2975_v41 = vmul.f32 %v6200_v49, %v1119_v45  ;;  %v2979_v49 = vmul.f32 %v6252_v47, %v1123_v37  ;;  %v2952_v37 = vld [vmem:[#allocation2 + $0x118] sm:$0xff]  ;;  %v3247_v47 = vld [vmem:[#allocation2 + $0x21] sm:$0xff] }
  0x93   : > { %v1172_v8 = vpack.c.bf16 %v6292_v26, %v1155_v23  ;;  %v2993_v13 = vpack.c.bf16 %v6186_v52, %v2969_v58  ;;  %v2973_v23 = vmul.f32 %v6146_v15, %v6208_v46  ;;  %v6900_v58 = vld [vmem:[#allocation9_spill] sm:$0xff]  ;;  %v2977_v15 = vmul.f32 %v6206_v33, %v1121_v17  ;;  %v5383_v46 = vld [vmem:[%s6734_s3 + $0x10] sm:$0xf] }
  0x94   : > { %v2994_v38 = vpack.c.bf16 %v6224_v32, %v2971_v1  ;;  %v6905_v17 = vpack.c.bf16 %v5981_v16, %v5699_v50  ;;  %v2981_v33 = vmul.f32 %v6256_v27, %v2949_v19  ;;  %v2998_v45 = vpack.c.bf16 %v6292_v26, %v2979_v49  ;;  %v3248_v27 = vld [vmem:[#allocation2 + $0x29] sm:$0xff]  ;;  %v3262_v49 = vld [vmem:[#allocation2 + $0x99] sm:$0xff] }
  0x95   : > { %v6907_v50 = vpack.c.bf16 %v6004_v25, %v5738_v22  ;;  %v3249_v22 = vld [vmem:[#allocation2 + $0x31] sm:$0xff]  ;;  %v3250_v25 = vld [vmem:[#allocation2 + $0x39] sm:$0xff] }
  0x96   : > { %4861 = vmatmul.mubr.msk.bf16.gmra.mrb[24].mxu1 %vm444_vm1, %v1170_v62  ;;  %v1649_v62 = vld [vmem:[#allocation2 + $0x2] sm:$0xff]  ;;  %v2999_v1 = vpack.c.bf16 %v6303_v6, %v2981_v33 }
  0x97   : > { %5015 = vmatmul.mubr.msk.bf16.gmra.mrb[8].mxu0 %vm444_vm1, %v2990_v63  ;;  %4864 = vmatprep.mubr.msk.bf16.mxu1 %vm444_vm1, %v1171_v60  ;;  %v1713_v2 = vpack.c.bf16 %v1682_v24, %v1649_v62  ;;  %v6899_v24 = vld [vmem:[#allocation31_spill] sm:$0xff]  ;;  %v6902_v60 = vld [vmem:[#allocation5_spill] sm:$0xff] }
  0x98   : > { %5018 = vmatprep.mubr.msk.bf16.mxu0 %vm444_vm1, %v2991_v18  ;;  %v6898_v18 = vld [vmem:[#allocation8_spill] sm:$0xff]  ;;  %v2106_v62 = vsel %vm1272_vm0, %v6899_v24, 0  ;;  %v3263_v33 = vld [vmem:[#allocation2 + $0xa1] sm:$0xff] }
  0x99   : > { %v1686_v63 = vmul.f32 %v6898_v18, %v6897_v48  ;;  %v3279_v48 = vpack.c.bf16 %v3248_v27, %v3247_v47  ;;  %v3266_v47 = vld [vmem:[#allocation2 + $0xb9] sm:$0xff]  ;;  %v3267_v27 = vld [vmem:[#allocation2 + $0xc1] sm:$0xff] }
  0x9e   : > { %4865 = vmatmul.mubr.msk.bf16.gmra.mrb[28].mxu1 %vm444_vm1, %v1172_v8  ;;  %v6901_v8 = vld [vmem:[#allocation34_spill] sm:$0xff] }
  0x9f   : > { %5019 = vmatmul.mubr.msk.bf16.gmra.mrb[12].mxu0 %vm444_vm1, %v2992_v9  ;;  %4870 = vmatprep.mubr.msk.bf16.mxu1 %vm444_vm1, %v1713_v2  ;;  %v1715_v9 = vpack.c.bf16 %v1686_v63, %v6900_v58  ;;  %v2995_v2 = vpack.c.bf16 %v6237_v7, %v2973_v23  ;;  %v6903_v39 = vpack.c.bf16 %v6901_v8, %v6902_v60  ;;  %v3252_v23 = vld [vmem:[#allocation2 + $0x49] sm:$0xff]  ;;  %v3255_v58 = vld [vmem:[#allocation2 + $0x61] sm:$0xff] }
  0xa0   : > { %5022 = vmatprep.mubr.msk.bf16.mxu0 %vm444_vm1, %v2993_v13  ;;  %v2996_v13 = vpack.c.bf16 %v6264_v12, %v2975_v41  ;;  %v2997_v60 = vpack.c.bf16 %v6274_v5, %v2977_v15  ;;  %v6904_v63 = vpack.c.bf16 %v5966_v51, %v5669_v29  ;;  %v2951_v29 = vld [vmem:[#allocation2 + $0x110] sm:$0xff]  ;;  %v6906_v51 = vpack.c.bf16 %v5994_v36, %v5703_v54  ;;  %v3259_v8 = vld [vmem:[#allocation2 + $0x81] sm:$0xff] }
  0xa1   : > { %v2983_v16 = vmul.f32 %v4331_v43, %v2951_v29  ;;  %v6908_v36 = vpack.c.bf16 %v6008_v53, %v5743_v30  ;;  %v6909_v54 = vpack.c.bf16 %v6024_v42, %v5772_v61  ;;  %v3251_v43 = vld [vmem:[#allocation2 + $0x41] sm:$0xff]  ;;  %v3672_v30 = vsel %vm1272_vm0, %v6220_v3, 0  ;;  %v3253_v42 = vld [vmem:[#allocation2 + $0x51] sm:$0xff] }
  0xa2   : > { %v3281_v24 = vpack.c.bf16 %v3252_v23, %v3251_v43  ;;  %v6910_v53 = vpack.c.bf16 %v6036_v31, %v5797_v28  ;;  %v6911_v61 = vpack.c.bf16 %v6049_v56, %v5838_v14  ;;  %v6912_v31 = vpack.c.bf16 %v6053_v0, %v5858_v44  ;;  %v3257_v28 = vld [vmem:[#allocation2 + $0x71] sm:$0xff]  ;;  %v3258_v14 = vld [vmem:[#allocation2 + $0x79] sm:$0xff]  ;;  %v6916_v44 = vld [vmem:[#allocation39_spill] sm:$0xff] }
  0xa3   : > { %v3000_v19 = vpack.c.bf16 %v2952_v37, %v2983_v16  ;;  %v6913_v56 = vpack.c.bf16 %v6066_v4, %v5912_v34  ;;  %v3284_v41 = vpack.c.bf16 %v3258_v14, %v3257_v28  ;;  %v6918_v34 = vld [vmem:[#allocation44_spill] sm:$0xff]  ;;  %v6919_v4 = vld [vmem:[#allocation37_spill] sm:$0xff]  ;;  %v6927_v43 = vld [vmem:[#allocation3_spill] sm:$0xff] }
  0xa4   : > { %v3265_v37 = vld [vmem:[#allocation2 + $0xb1] sm:$0xff] }
  0xa5   : > { %v3542_v14 = vld [vmem:[#allocation2 + $0x2a] sm:$0xff] }
  0xa6   : > { %4871 = vmatmul.mubr.msk.bf16.vlgmr.msra.gmra.mrb[0].mxu1 %vm444_vm1, %v6903_v39  ;;  %v3260_v39 = vld [vmem:[#allocation2 + $0x89] sm:$0xff] }
  0xa7   : > { %4903 = vmatpush3.bf16.msra.mxu1 %v2106_v62  ;;  %5023 = vmatmul.mubr.msk.bf16.gmra.mrb[16].mxu0 %vm444_vm1, %v2994_v38  ;;  %v3280_v38 = vpack.c.bf16 %v3250_v25, %v3249_v22  ;;  %v3254_v62 = vld [vmem:[#allocation2 + $0x59] sm:$0xff]  ;;  %v3285_v15 = vpack.c.bf16 %v3260_v39, %v3259_v8  ;;  %v6925_v22 = vld [vmem:[#allocation47_spill] sm:$0xff]  ;;  %v6936_v8 = vld [vmem:[#allocation40_spill] sm:$0xff] }
  0xa8   : > { %4874 = vmatprep.mubr.msk.bf16.mxu1 %vm444_vm1, %v1715_v9  ;;  %5026 = vmatprep.mubr.msk.bf16.mxu0 %vm444_vm1, %v2995_v2  ;;  %v3256_v9 = vld [vmem:[#allocation2 + $0x69] sm:$0xff]  ;;  %v3282_v3 = vpack.c.bf16 %v3254_v62, %v3253_v42  ;;  %v6937_v39 = vld [vmem:[#allocation21_spill] sm:$0xff] }
  0xa9   : > { %5369 = vmatprep.subr.msk.bf16.mxu1 %vm1272_vm0, %v5383_v46  ;;  %v3283_v2 = vpack.c.bf16 %v3256_v9, %v3255_v58  ;;  %v6914_v46 = vld [vmem:[#allocation35_spill] sm:$0xff]  ;;  %v6930_v62 = vld [vmem:[#allocation32_spill] sm:$0xff]  ;;  %v6931_v58 = vld [vmem:[#allocation26_spill] sm:$0xff]  ;;  %vm3995_vm0 = vcmask 60416  }
  0xaa   : > { %v6915_v0 = vpack.c.bf16 %v6074_v40, %v6914_v46  ;;  %v6932_v9 = vpack.c.bf16 %v6930_v62, %v6931_v58  ;;  %v6940_v46 = vld [vmem:[#allocation28_spill] sm:$0xff]  ;;  %v3549_v62 = vld [vmem:[#allocation2 + $0x62] sm:$0xff] }
  0xae   : > { %4875 = vmatmul.mubr.msk.bf16.gmra.mrb[4].mxu1 %vm444_vm1, %v6904_v63  ;;  %v6920_v63 = vpack.c.bf16 %v6918_v34, %v6919_v4  ;;  %v3278_v34 = vld [vmem:[#allocation2 + $0x119] sm:$0xff]  ;;  %v3574_v4 = vmul.f32 %v6896_v21, %v3542_v14 }
  0xaf   : > { %5027 = vmatmul.mubr.msk.bf16.gmra.mrb[20].mxu0 %vm444_vm1, %v2996_v13  ;;  %4878 = vmatprep.mubr.msk.bf16.mxu1 %vm444_vm1, %v6905_v17  ;;  %v6917_v13 = vld [vmem:[#allocation42_spill] sm:$0xff]  ;;  %v3261_v17 = vld [vmem:[#allocation2 + $0x91] sm:$0xff] }
  0xb0   : > { %5030 = vmatprep.mubr.msk.bf16.mxu0 %vm444_vm1, %v2997_v60  ;;  %v1712_v60 = vmul.f32 %v6917_v13, %v6916_v44  ;;  %v6411_v29 = vpack.c.bf16 %v3262_v49, %v3261_v17  ;;  %v3543_v21 = vld [vmem:[#allocation2 + $0x32] sm:$0xff] }
  0xb6   : > { %4879 = vmatmul.mubr.msk.bf16.gmra.mrb[8].mxu1 %vm444_vm1, %v6906_v51 }
  0xb7   : > { %5031 = vmatmul.mubr.msk.bf16.gmra.mrb[24].mxu0 %vm444_vm1, %v2998_v45  ;;  %4882 = vmatprep.mubr.msk.bf16.mxu1 %vm444_vm1, %v6907_v50  ;;  %v3264_v45 = vld [vmem:[#allocation2 + $0xa9] sm:$0xff]  ;;  %v6922_v50 = vld [vmem:[#allocation46_spill] sm:$0xff] }
  0xb8   : > { %5034 = vmatprep.mubr.msk.bf16.mxu0 %vm444_vm1, %v2999_v1  ;;  %v6921_v1 = vld [vmem:[#allocation41_spill] sm:$0xff]  ;;  %v6413_v51 = vpack.c.bf16 %v3264_v45, %v3263_v33  ;;  %v6923_v16 = vpack.c.bf16 %v6879_v20, %v6922_v50  ;;  %v6928_v20 = vld [vmem:[#allocation19_spill] sm:$0xff] }
  0xb9   : > { %v1728_v40 = vpack.c.bf16 %v1712_v60, %v6921_v1  ;;  %v6929_v23 = vpack.c.bf16 %v6880_v59, %v6928_v20  ;;  %v6933_v59 = vld [vmem:[#allocation36_spill] sm:$0xff]  ;;  %v3544_v33 = vld [vmem:[#allocation2 + $0x3a] sm:$0xff] }
  0xba   : > { %v3277_v60 = vld [vmem:[#allocation2 + $0x111] sm:$0xff] }
  0xbb   : > { %v3294_v17 = vpack.c.bf16 %v3278_v34, %v3277_v60  ;;  %v3546_v45 = vld [vmem:[#allocation2 + $0x4a] sm:$0xff]  ;;  %v6959_v34 = vld [vmem:[#allocation50_spill] sm:$0xff] }
  0xbc   : > { %v3558_v60 = vld [vmem:[#allocation2 + $0xaa] sm:$0xff] }
  0xbe   : > { %4883 = vmatmul.mubr.msk.bf16.gmra.mrb[12].mxu1 %vm444_vm1, %v6908_v36 }
  0xbf   : > { %5035 = vmatmul.mubr.msk.bf16.gmra.mrb[28].mxu0 %vm444_vm1, %v3000_v19  ;;  %4886 = vmatprep.mubr.msk.bf16.mxu1 %vm444_vm1, %v6909_v54  ;;  %v3268_v19 = vld [vmem:[#allocation2 + $0xc9] sm:$0xff]  ;;  %v6924_v54 = vld [vmem:[#allocation22_spill] sm:$0xff] }
  0xc0   : > { %5040 = vmatprep.mubr.msk.bf16.mxu0 %vm444_vm1, %v3279_v48  ;;  %v6424_v48 = vpack.c.bf16 %v3266_v47, %v3265_v37  ;;  %v6426_v36 = vpack.c.bf16 %v3268_v19, %v3267_v27  ;;  %v6926_v25 = vpack.c.bf16 %v6924_v54, %v6925_v22  ;;  %v6946_v37 = vld [vmem:[#allocation6_spill] sm:$0xff]  ;;  %v3578_v27 = vmul.f32 %v6898_v18, %v3546_v45  ;;  %v3547_v18 = vld [vmem:[#allocation2 + $0x52] sm:$0xff] }
  0xc1   : > { %v3576_v47 = vmul.f32 %v6946_v37, %v3544_v33  ;;  %v3545_v19 = vld [vmem:[#allocation2 + $0x42] sm:$0xff]  ;;  %v6963_v33 = vld [vmem:[#allocation16_spill] sm:$0xff]  ;;  %v6964_v37 = vpack.c.bf16 %v6303_v6, %v6298_v35 }
  0xc2   : > { %v3607_v22 = vpack.c.bf16 %v3578_v27, %v3545_v19  ;;  %v3590_v45 = vmul.f32 %v6963_v33, %v3558_v60  ;;  %v3561_v19 = vld [vmem:[#allocation2 + $0xc2] sm:$0xff]  ;;  %v6967_v35 = vld [vmem:[#allocation24_spill] sm:$0xff] }
  0xc3   : > { %v3606_v54 = vpack.c.bf16 %v3576_v47, %v3543_v21  ;;  %v3559_v47 = vld [vmem:[#allocation2 + $0xb2] sm:$0xff] }
  0xc4   : > { %v6966_v21 = vld [vmem:[#allocation20_spill] sm:$0xff] }
  0xc6   : > { %4887 = vmatmul.mubr.msk.bf16.gmra.mrb[16].mxu1 %vm444_vm1, %v6910_v53  ;;  %v3272_v53 = vld [vmem:[#allocation2 + $0xe9] sm:$0xff] }
  0xc7   : > { %5041 = vmatmul.mubr.msk.bf16.vlgmr.msra.gmra.mrb[0].mxu0 %vm444_vm1, %v3280_v38  ;;  %4890 = vmatprep.mubr.msk.bf16.mxu1 %vm444_vm1, %v6911_v61  ;;  %v3269_v38 = vld [vmem:[#allocation2 + $0xd1] sm:$0xff] }
  0xc8   : > { %5073 = vmatpush3.bf16.msra.mxu0 %v3672_v30  ;;  %5044 = vmatprep.mubr.msk.bf16.mxu0 %vm444_vm1, %v3281_v24  ;;  %v3270_v24 = vld [vmem:[#allocation2 + $0xd9] sm:$0xff]  ;;  %v3271_v30 = vld [vmem:[#allocation2 + $0xe1] sm:$0xff] }
  0xc9   : > { %v6441_v61 = vpack.c.bf16 %v3270_v24, %v3269_v38  ;;  %v6443_v42 = vpack.c.bf16 %v3272_v53, %v3271_v30  ;;  %v6951_v38 = vld [vmem:[#allocation10_spill] sm:$0xff]  ;;  %v6952_v30 = vld [vmem:[#allocation11_spill] sm:$0xff] }
  0xce   : > { %4891 = vmatmul.mubr.msk.bf16.gmra.mrb[20].mxu1 %vm444_vm1, %v6912_v31  ;;  %v3275_v31 = vld [vmem:[#allocation2 + $0x101] sm:$0xff] }
  0xcf   : > { %5045 = vmatmul.mubr.msk.bf16.gmra.mrb[4].mxu0 %vm444_vm1, %v3282_v3  ;;  %4894 = vmatprep.mubr.msk.bf16.mxu1 %vm444_vm1, %v6913_v56  ;;  %v6934_v3 = vld [vmem:[#allocation23_spill] sm:$0xff] }
  0xd0   : > { %5048 = vmatprep.mubr.msk.bf16.mxu0 %vm444_vm1, %v3283_v2  ;;  %v6935_v2 = vpack.c.bf16 %v6933_v59, %v6934_v3  ;;  %v3276_v56 = vld [vmem:[#allocation2 + $0x109] sm:$0xff] }
  0xd1   : > { %v6457_v28 = vpack.c.bf16 %v3276_v56, %v3275_v31  ;;  %v3554_v59 = vld [vmem:[#allocation2 + $0x8a] sm:$0xff]  ;;  %v6957_v56 = vld [vmem:[#allocation13_spill] sm:$0xff] }
  0xd2   : > { %v6953_v3 = vld [vmem:[#allocation48_spill] sm:$0xff] }
  0xd6   : > { %4895 = vmatmul.mubr.msk.bf16.gmra.mrb[24].mxu1 %vm444_vm1, %v6915_v0  ;;  %v6941_v0 = vpack.c.bf16 %v6055_v57, %v6940_v46  ;;  %v6944_v57 = vld [vmem:[#allocation25_spill] sm:$0xff] }
  0xd7   : > { %5049 = vmatmul.mubr.msk.bf16.gmra.mrb[8].mxu0 %vm444_vm1, %v3284_v41  ;;  %4898 = vmatprep.mubr.msk.bf16.mxu1 %vm444_vm1, %v6920_v63  ;;  %v6938_v41 = vpack.c.bf16 %v6936_v8, %v6937_v39  ;;  %v3541_v63 = vld [vmem:[#allocation2 + $0x22] sm:$0xff]  ;;  %v3551_v8 = vld [vmem:[#allocation2 + $0x72] sm:$0xff] }
  0xd8   : > { %5052 = vmatprep.mubr.msk.bf16.mxu0 %vm444_vm1, %v3285_v15  ;;  %v6939_v15 = vld [vmem:[#allocation18_spill] sm:$0xff]  ;;  %v3605_v49 = vpack.c.bf16 %v3574_v4, %v3541_v63  ;;  %v6960_v4 = vpack.c.bf16 %v6274_v5, %v6959_v34  ;;  %v6962_v63 = vld [vmem:[#allocation15_spill] sm:$0xff] }
  0xd9   : > { %v6958_v39 = vld [vmem:[#allocation14_spill] sm:$0xff] }
  0xda   : > { %v3560_v5 = vld [vmem:[#allocation2 + $0xba] sm:$0xff] }
  0xde   : > { %4899 = vmatmul.mubr.msk.bf16.gmra.mrb[28].mxu1 %vm444_vm1, %v1728_v40  ;;  %v6942_v40 = vld [vmem:[#allocation30_spill] sm:$0xff] }
  0xdf   : > { %5053 = vmatmul.mubr.msk.bf16.gmra.mrb[12].mxu0 %vm444_vm1, %v6411_v29  ;;  %4904 = vmatprep.mubr.msk.bf16.mxu1 %vm444_vm1, %v6923_v16  ;;  %v6943_v50 = vpack.c.bf16 %v6093_v55, %v6942_v40  ;;  %v6945_v16 = vpack.c.bf16 %v6173_v11, %v6944_v57  ;;  %v3548_v55 = vld [vmem:[#allocation2 + $0x5a] sm:$0xff]  ;;  %v6949_v11 = vld [vmem:[#allocation12_spill] sm:$0xff]  ;;  %v3557_v40 = vld [vmem:[#allocation2 + $0xa2] sm:$0xff] }
  0xe0   : > { %5056 = vmatprep.mubr.msk.bf16.mxu0 %vm444_vm1, %v6413_v51  ;;  %v3580_v24 = vmul.f32 %v6951_v38, %v3548_v55  ;;  %v3613_v57 = vpack.c.bf16 %v3590_v45, %v3557_v40  ;;  %v3564_v55 = vld [vmem:[#allocation2 + $0xda] sm:$0xff] }
  0xe1   : > { %v3596_v6 = vmul.f32 %v6967_v35, %v3564_v55 }
  0xe2   : > { %v3608_v58 = vpack.c.bf16 %v3580_v24, %v3547_v18  ;;  %v2329_v24 = vld [vmem:[#allocation2 + $0xf1] sm:$0xff]  ;;  %v2330_v18 = vld [vmem:[#allocation2 + $0xf9] sm:$0xff] }
  0xe6   : > { %4905 = vmatmul.mubr.msk.bf16.vlgmr.msra.gmra.mrb[0].mxu1 %vm444_vm1, %v6926_v25  ;;  %v3550_v25 = vld [vmem:[#allocation2 + $0x6a] sm:$0xff] }
  0xe7   : > { %5107 = vmatpush3.bf16.msra.mxu1 %v6927_v43  ;;  %5057 = vmatmul.mubr.msk.bf16.gmra.mrb[16].mxu0 %vm444_vm1, %v6424_v48  ;;  %v6947_v43 = vld [vmem:[#allocation29_spill] sm:$0xff]  ;;  %v3582_v53 = vmul.f32 %v6952_v30, %v3550_v25  ;;  %v3566_v25 = vld [vmem:[#allocation2 + $0xea] sm:$0xff] }
  0xe8   : > { %4908 = vmatprep.mubr.msk.bf16.mxu1 %vm444_vm1, %v6929_v23  ;;  %5060 = vmatprep.mubr.msk.bf16.mxu0 %vm444_vm1, %v6426_v36  ;;  %v6948_v20 = vpack.c.bf16 %v6186_v52, %v6947_v43  ;;  %v6950_v23 = vpack.c.bf16 %v6224_v32, %v6949_v11  ;;  %v3552_v52 = vld [vmem:[#allocation2 + $0x7a] sm:$0xff]  ;;  %v6968_v43 = vld [vmem:[#allocation27_spill] sm:$0xff] }
  0xe9   : > { %v6955_v32 = vld [vmem:[#allocation49_spill] sm:$0xff]  ;;  %v3584_v14 = vmul.f32 %v6957_v56, %v3552_v52  ;;  %v3565_v11 = vld [vmem:[#allocation2 + $0xe2] sm:$0xff] }
  0xea   : > { %v6956_v31 = vpack.c.bf16 %v6264_v12, %v6955_v32  ;;  %v6961_v12 = vpack.c.bf16 %v6292_v26, %v6296_v10  ;;  %v6965_v26 = vld [vmem:[#allocation17_spill] sm:$0xff]  ;;  %v6970_v30 = vld [vmem:[#allocation43_spill] sm:$0xff] }
  0xeb   : > { %v3610_v46 = vpack.c.bf16 %v3584_v14, %v3551_v8  ;;  %v3592_v10 = vmul.f32 %v6965_v26, %v3560_v5  ;;  %v6972_v52 = vld [vmem:[#allocation45_spill] sm:$0xff] }
  0xee   : > { %4909 = vmatmul.mubr.msk.bf16.gmra.mrb[4].mxu1 %vm444_vm1, %v6932_v9  ;;  %v3609_v9 = vpack.c.bf16 %v3582_v53, %v3549_v62  ;;  %v6971_v53 = vld [vmem:[#allocation38_spill] sm:$0xff] }
  0xef   : > { %5061 = vmatmul.mubr.msk.bf16.gmra.mrb[20].mxu0 %vm444_vm1, %v6441_v61  ;;  %4912 = vmatprep.mubr.msk.bf16.mxu1 %vm444_vm1, %v6935_v2  ;;  %v6954_v2 = vpack.c.bf16 %v6237_v7, %v6953_v3  ;;  %v3556_v7 = vld [vmem:[#allocation2 + $0x9a] sm:$0xff]  ;;  %v3602_v62 = vmul.f32 %v6971_v53, %v6970_v30 }
  0xf0   : > { %5064 = vmatprep.mubr.msk.bf16.mxu0 %vm444_vm1, %v6443_v42 }
  0xf6   : > { %4913 = vmatmul.mubr.msk.bf16.gmra.mrb[8].mxu1 %vm444_vm1, %v6938_v41  ;;  %v3586_v41 = vmul.f32 %v6958_v39, %v3554_v59  ;;  %v3572_v59 = vld [vmem:[#allocation2 + $0x11a] sm:$0xff] }
  0xf7   : > { %5065 = vmatmul.mubr.msk.bf16.gmra.mrb[24].mxu0 %vm444_vm1, %v6939_v15  ;;  %4916 = vmatprep.mubr.msk.bf16.mxu1 %vm444_vm1, %v6941_v0  ;;  %v3553_v15 = vld [vmem:[#allocation2 + $0x82] sm:$0xff] }
  0xf8   : > { %5068 = vmatprep.mubr.msk.bf16.mxu0 %vm444_vm1, %v6457_v28  ;;  %v3611_v0 = vpack.c.bf16 %v3586_v41, %v3553_v15 }
  0xfe   : > { %4917 = vmatmul.mubr.msk.bf16.gmra.mrb[12].mxu1 %vm444_vm1, %v6943_v50 }
  0xff   : > { %5069 = vmatmul.mubr.msk.bf16.gmra.mrb[28].mxu0 %vm444_vm1, %v3294_v17  ;;  %4920 = vmatprep.mubr.msk.bf16.mxu1 %vm444_vm1, %v6945_v16  ;;  %v3588_v17 = vmul.f32 %v6962_v63, %v3556_v7  ;;  %v3562_v16 = vld [vmem:[#allocation2 + $0xca] sm:$0xff] }
 0x100   : > { %5074 = vmatprep.mubr.msk.bf16.mxu0 %vm444_vm1, %v3605_v49  ;;  %v3555_v49 = vld [vmem:[#allocation2 + $0x92] sm:$0xff]  ;;  %v3594_v27 = vmul.f32 %v6966_v21, %v3562_v16 }
 0x101   : > { %v3612_v50 = vpack.c.bf16 %v3588_v17, %v3555_v49 }
 0x106   : > { %4921 = vmatmul.mubr.msk.bf16.gmra.mrb[16].mxu1 %vm444_vm1, %v6948_v20  ;;  %v3598_v20 = vmul.f32 %v6968_v43, %v3566_v25 }
 0x107   : > { %5075 = vmatmul.mubr.msk.bf16.vlgmr.msra.gmra.mrb[0].mxu0 %vm444_vm1, %v3606_v54  ;;  %4924 = vmatprep.mubr.msk.bf16.mxu1 %vm444_vm1, %v6950_v23  ;;  %v3614_v54 = vpack.c.bf16 %v3592_v10, %v3559_v47 }
 0x108   : > { %5078 = vmatprep.mubr.msk.bf16.mxu0 %vm444_vm1, %v3607_v22  ;;  %v3615_v22 = vpack.c.bf16 %v3594_v27, %v3561_v19  ;;  %v3617_v38 = vpack.c.bf16 %v3598_v20, %v3565_v11 }
 0x10e   : > { %4925 = vmatmul.mubr.msk.bf16.gmra.mrb[20].mxu1 %vm444_vm1, %v6954_v2 }
 0x10f   : > { %5079 = vmatmul.mubr.msk.bf16.gmra.mrb[4].mxu0 %vm444_vm1, %v3608_v58  ;;  %4928 = vmatprep.mubr.msk.bf16.mxu1 %vm444_vm1, %v6956_v31 }
 0x110   : > { %5082 = vmatprep.mubr.msk.bf16.mxu0 %vm444_vm1, %v3609_v9  ;;  %v2347_v9 = vpack.c.bf16 %v2330_v18, %v2329_v24 }
 0x116   : > { %4929 = vmatmul.mubr.msk.bf16.gmra.mrb[24].mxu1 %vm444_vm1, %v6960_v4 }
 0x117   : > { %5083 = vmatmul.mubr.msk.bf16.gmra.mrb[8].mxu0 %vm444_vm1, %v3610_v46  ;;  %4932 = vmatprep.mubr.msk.bf16.mxu1 %vm444_vm1, %v6961_v12 }
 0x118   : > { %5086 = vmatprep.mubr.msk.bf16.mxu0 %vm444_vm1, %v3611_v0 }
 0x11e   : > { %4933 = vmatmul.mubr.msk.bf16.gmra.mrb[28].mxu1 %vm444_vm1, %v6964_v37 }
 0x11f   : > { %5087 = vmatmul.mubr.msk.bf16.gmra.mrb[12].mxu0 %vm444_vm1, %v3612_v50  ;;  %4954 = vmatprep.mubr.msk.bf16.mxu1 %vm444_vm1, %v6411_v29  ;;  %v3563_v29 = vld [vmem:[#allocation2 + $0xd2] sm:$0xff] }
 0x120   : > { %5090 = vmatprep.mubr.msk.bf16.mxu0 %vm444_vm1, %v3613_v57  ;;  %v3616_v23 = vpack.c.bf16 %v3596_v6, %v3563_v29 }
 0x126   : > { %4955 = vmatmul.mubr.msk.bf16.vlgmr.msra.gmra.mrb[16].mxu1 %vm444_vm1, %v6413_v51  ;;  %v6969_v51 = vld [vmem:[#allocation33_spill] sm:$0xff] }
 0x127   : > { %5091 = vmatmul.mubr.msk.bf16.gmra.mrb[16].mxu0 %vm444_vm1, %v3614_v54  ;;  %4958 = vmatprep.mubr.msk.bf16.mxu1 %vm444_vm1, %v6424_v48  ;;  %v3600_v48 = vmul.f32 %v6969_v51, %v6916_v44  ;;  %v3604_v44 = vmul.f32 %v6917_v13, %v3572_v59 }
 0x128   : > { %5094 = vmatprep.mubr.msk.bf16.mxu0 %vm444_vm1, %v3615_v22 }
 0x129   : > { %v3618_v58 = vpack.c.bf16 %v3600_v48, %v6921_v1 }
 0x12e   : > { %4959 = vmatmul.mubr.msk.bf16.gmra.mrb[20].mxu1 %vm444_vm1, %v6426_v36  ;;  %v3619_v36 = vpack.c.bf16 %v3602_v62, %v6972_v52 }
 0x12f   : > { %5095 = vmatmul.mubr.msk.bf16.gmra.mrb[20].mxu0 %vm444_vm1, %v3616_v23  ;;  %4962 = vmatprep.mubr.msk.bf16.mxu1 %vm444_vm1, %v6441_v61  ;;  %v3571_v61 = vld [vmem:[#allocation2 + $0x112] sm:$0xff] }
 0x130   : > { %5098 = vmatprep.mubr.msk.bf16.mxu0 %vm444_vm1, %v3617_v38  ;;  %v3620_v3 = vpack.c.bf16 %v3604_v44, %v3571_v61 }
 0x136   : > { %4963 = vmatmul.mubr.msk.bf16.gmra.mrb[24].mxu1 %vm444_vm1, %v6443_v42 }
 0x137   : > { %5099 = vmatmul.mubr.msk.bf16.gmra.mrb[24].mxu0 %vm444_vm1, %v3618_v58  ;;  %4966 = vmatprep.mubr.msk.bf16.mxu1 %vm444_vm1, %v2347_v9 }
 0x138   : > { %5102 = vmatprep.mubr.msk.bf16.mxu0 %vm444_vm1, %v3619_v36 }
 0x13e   : > { %4967 = vmatmul.mubr.msk.bf16.gmra.mrb[28].mxu1 %vm444_vm1, %v6457_v28 }
 0x13f   : > { %5103 = vmatmul.mubr.msk.bf16.gmra.mrb[28].mxu0 %vm444_vm1, %v3620_v3 }
 0x1b9   : > { %v4906_v1 = vpop.f32.mrb[0].mxu1 }
 0x1ba   : > { %v2142_v2 = vpop.f32.mrb[1].mxu1 }
 0x1bb   : > { %v4907_v32 = vpop.f32.mrb[2].mxu1 }
 0x1bc   : > { %v2145_v31 = vpop.f32.mrb[3].mxu1 }
 0x1c1   : > { %v4910_v42 = vpop.f32.mrb[4].mxu1 }
 0x1c2   : > { %v2158_v56 = vpop.f32.mrb[5].mxu1 }
 0x1c3   : > { %v4911_v14 = vpop.f32.mrb[6].mxu1 }
 0x1c4   : > { %v2161_v8 = vpop.f32.mrb[7].mxu1 }
 0x1c9   : > { %v6559_v39 = vpop.f32.mrb[8].mxu1 }
 0x1ca   : > { %v6561_v13 = vpop.f32.mrb[9].mxu1 }
 0x1cb   : > { %v6563_v41 = vpop.f32.mrb[10].mxu1 }
 0x1cc   : > { %v6565_v15 = vpop.f32.mrb[11].mxu1 }
 0x1d1   : > { %v6567_v28 = vpop.f32.mrb[12].mxu1 }
 0x1d2   : > { %v6569_v46 = vpop.f32.mrb[13].mxu1 }
 0x1d3   : > { %v6571_v0 = vpop.f32.mrb[14].mxu1 }
 0x1d4   : > { %v6573_v7 = vpop.f32.mrb[15].mxu1 }
 0x1da   : > { %v5076_v60 = vpop.f32.mrb[0].mxu0 }
 0x1db   : > { %v5108_v34 = vadd.f32 %v5076_v60, %v4906_v1  ;;  %v3708_v4 = vpop.f32.mrb[1].mxu0 }
 0x1dc   : > { %v5109_v12 = vadd.f32 %v3708_v4, %v2142_v2  ;;  %v5077_v63 = vpop.f32.mrb[2].mxu0 }
 0x1dd   : > { %v4538_v17 = vpack.c.bf16 %v5108_v34, %v5108_v34  ;;  %v5110_v49 = vadd.f32 %v5077_v63, %v4907_v32  ;;  %v3711_v33 = vpop.f32.mrb[3].mxu0  ;;  %v4100_v57 = vmul.f32 %v5108_v34, %v5108_v34  ;;  %v4031_v27 = vsel %vm444_vm1, %v5108_v34, 0.0 }
 0x1de   : > { %v4536_v45 = vpack.c.bf16 %v5109_v12, %v5109_v12  ;;  %v4098_v40 = vmul.f32 %v5109_v12, %v5109_v12  ;;  %v5111_v50 = vadd.f32 %v3711_v33, %v2145_v31  ;;  %v4028_v16 = vsel %vm444_vm1, %v5109_v12, 0.0 }
 0x1df   : > { %3998 = vst.msk [vmem:[%s6580_s8 + $0x8] sm:$0xf] %vm3995_vm0, %v4538_v17  ;;  %v4539_v5 = vpack.c.bf16 %v5110_v49, %v5110_v49  ;;  %v4101_v47 = vmul.f32 %v5110_v49, %v5110_v49  ;;  %v4133_v29 = vsel %vm444_vm1, %v4100_v57, 0.0  ;;  %v4033_v11 = vsel %vm444_vm1, %v5110_v49, 0.0 }
 0x1e0   : > { %3996 = vst.msk [vmem:[%s6580_s8] sm:$0xf] %vm3995_vm0, %v4536_v45  ;;  %v4537_v37 = vpack.c.bf16 %v5111_v50, %v5111_v50  ;;  %v4029_v26 = vsel %vm444_vm1, %v5111_v50, 0.0  ;;  %v4099_v10 = vmul.f32 %v5111_v50, %v5111_v50  ;;  %v4130_v19 = vsel %vm444_vm1, %v4098_v40, 0.0 }
 0x1e1   : > { %3999 = vst.msk [vmem:[%s6580_s8 + $0xc] sm:$0xf] %vm3995_vm0, %v4539_v5  ;;  %v4030_v21 = vadd.f32 %v4029_v26, %v4028_v16  ;;  %v4135_v23 = vsel %vm444_vm1, %v4101_v47, 0.0 }
 0x1e2   : > { %3997 = vst.msk [vmem:[%s6580_s8 + $0x4] sm:$0xf] %vm3995_vm0, %v4537_v37  ;;  %v4131_v54 = vsel %vm444_vm1, %v4099_v10, 0.0  ;;  %v5080_v22 = vpop.f32.mrb[4].mxu0 }
 0x1e3   : > { %v4032_v55 = vadd.f32 %v4031_v27, %v4030_v21  ;;  %v4132_v25 = vadd.f32 %v4131_v54, %v4130_v19  ;;  %v5112_v35 = vadd.f32 %v5080_v22, %v4910_v42  ;;  %v3724_v6 = vpop.f32.mrb[5].mxu0 }
 0x1e4   : > { %v5113_v43 = vadd.f32 %v3724_v6, %v2158_v56  ;;  %v5081_v20 = vpop.f32.mrb[6].mxu0 }
 0x1e5   : > { %v4134_v38 = vadd.f32 %v4133_v29, %v4132_v25  ;;  %v4542_v51 = vpack.c.bf16 %v5112_v35, %v5112_v35  ;;  %v3727_v48 = vpop.f32.mrb[7].mxu0  ;;  %v4034_v18 = vadd.f32 %v4033_v11, %v4032_v55  ;;  %v5114_v58 = vadd.f32 %v5081_v20, %v4911_v14 }
 0x1e6   : > { %v4540_v24 = vpack.c.bf16 %v5113_v43, %v5113_v43  ;;  %v4035_v30 = vsel %vm444_vm1, %v5113_v43, 0.0  ;;  %v4102_v53 = vmul.f32 %v5113_v43, %v5113_v43  ;;  %v5115_v9 = vadd.f32 %v3727_v48, %v2161_v8 }
 0x1e7   : > { %4002 = vst.msk [vmem:[%s6580_s8 + $0x18] sm:$0xf] %vm3995_vm0, %v4542_v51  ;;  %v4136_v62 = vadd.f32 %v4135_v23, %v4134_v38  ;;  %v4036_v52 = vadd.f32 %v4035_v30, %v4034_v18  ;;  %v4104_v59 = vmul.f32 %v5112_v35, %v5112_v35  ;;  %v4543_v61 = vpack.c.bf16 %v5114_v58, %v5114_v58 }
 0x1e8   : > { %4000 = vst.msk [vmem:[%s6580_s8 + $0x10] sm:$0xf] %vm3995_vm0, %v4540_v24  ;;  %v4137_v36 = vsel %vm444_vm1, %v4102_v53, 0.0  ;;  %v4541_v3 = vpack.c.bf16 %v5115_v9, %v5115_v9  ;;  %v4037_v1 = vsel %vm444_vm1, %v5115_v9, 0.0  ;;  %v4103_v2 = vmul.f32 %v5115_v9, %v5115_v9 }
 0x1e9   : > { %v4138_v44 = vadd.f32 %v4137_v36, %v4136_v62  ;;  %4003 = vst.msk [vmem:[%s6580_s8 + $0x1c] sm:$0xf] %vm3995_vm0, %v4543_v61  ;;  %v4038_v31 = vadd.f32 %v4037_v1, %v4036_v52  ;;  %v4039_v14 = vsel %vm444_vm1, %v5112_v35, 0.0  ;;  %v4105_v8 = vmul.f32 %v5114_v58, %v5114_v58 }
 0x1ea   : > { %v5084_v32 = vpop.f32.mrb[8].mxu0  ;;  %4001 = vst.msk [vmem:[%s6580_s8 + $0x14] sm:$0xf] %vm3995_vm0, %v4541_v3  ;;  %v4139_v60 = vsel %vm444_vm1, %v4103_v2, 0.0  ;;  %v4141_v12 = vsel %vm444_vm1, %v4104_v59, 0.0 }
 0x1eb   : > { %v5116_v42 = vadd.f32 %v5084_v32, %v6559_v39  ;;  %v3740_v56 = vpop.f32.mrb[9].mxu0  ;;  %v4040_v63 = vadd.f32 %v4039_v14, %v4038_v31  ;;  %v4140_v17 = vadd.f32 %v4139_v60, %v4138_v44  ;;  %v4041_v39 = vsel %vm444_vm1, %v5114_v58, 0.0 }
 0x1ec   : > { %v5117_v34 = vadd.f32 %v3740_v56, %v6561_v13  ;;  %v5085_v4 = vpop.f32.mrb[10].mxu0  ;;  %v4143_v37 = vsel %vm444_vm1, %v4105_v8, 0.0 }
 0x1ed   : > { %v4546_v49 = vpack.c.bf16 %v5116_v42, %v5116_v42  ;;  %v3743_v33 = vpop.f32.mrb[11].mxu0  ;;  %v4142_v57 = vadd.f32 %v4141_v12, %v4140_v17  ;;  %v4042_v5 = vadd.f32 %v4041_v39, %v4040_v63  ;;  %v5118_v13 = vadd.f32 %v5085_v4, %v6563_v41 }
 0x1ee   : > { %v4544_v45 = vpack.c.bf16 %v5117_v34, %v5117_v34  ;;  %v4043_v40 = vsel %vm444_vm1, %v5117_v34, 0.0  ;;  %v4106_v50 = vmul.f32 %v5117_v34, %v5117_v34  ;;  %v5119_v16 = vadd.f32 %v3743_v33, %v6565_v15 }
 0x1ef   : > { %4006 = vst.msk [vmem:[%s6580_s8 + $0x28] sm:$0xf] %vm3995_vm0, %v4546_v49  ;;  %v4108_v10 = vmul.f32 %v5116_v42, %v5116_v42  ;;  %v4044_v47 = vadd.f32 %v4043_v40, %v4042_v5  ;;  %v4144_v21 = vadd.f32 %v4143_v37, %v4142_v57  ;;  %v4547_v27 = vpack.c.bf16 %v5118_v13, %v5118_v13 }
 0x1f0   : > { %4004 = vst.msk [vmem:[%s6580_s8 + $0x20] sm:$0xf] %vm3995_vm0, %v4544_v45  ;;  %v4145_v26 = vsel %vm444_vm1, %v4106_v50, 0.0  ;;  %v4545_v19 = vpack.c.bf16 %v5119_v16, %v5119_v16  ;;  %v4045_v54 = vsel %vm444_vm1, %v5119_v16, 0.0  ;;  %v4107_v22 = vmul.f32 %v5119_v16, %v5119_v16 }
 0x1f1   : > { %v4146_v25 = vadd.f32 %v4145_v26, %v4144_v21  ;;  %4007 = vst.msk [vmem:[%s6580_s8 + $0x2c] sm:$0xf] %vm3995_vm0, %v4547_v27  ;;  %v4046_v41 = vadd.f32 %v4045_v54, %v4044_v47  ;;  %v4047_v6 = vsel %vm444_vm1, %v5116_v42, 0.0  ;;  %v4109_v29 = vmul.f32 %v5118_v13, %v5118_v13 }
 0x1f2   : > { %v5088_v55 = vpop.f32.mrb[12].mxu0  ;;  %4005 = vst.msk [vmem:[%s6580_s8 + $0x24] sm:$0xf] %vm3995_vm0, %v4545_v19  ;;  %v4147_v43 = vsel %vm444_vm1, %v4107_v22, 0.0  ;;  %v4149_v23 = vsel %vm444_vm1, %v4108_v10, 0.0 }
 0x1f3   : > { %v5120_v15 = vadd.f32 %v5088_v55, %v6567_v28  ;;  %v3756_v35 = vpop.f32.mrb[13].mxu0  ;;  %v4048_v38 = vadd.f32 %v4047_v6, %v4046_v41  ;;  %v4148_v51 = vadd.f32 %v4147_v43, %v4146_v25  ;;  %v4049_v28 = vsel %vm444_vm1, %v5118_v13, 0.0 }
 0x1f4   : > { %v5121_v20 = vadd.f32 %v3756_v35, %v6569_v46  ;;  %v5089_v11 = vpop.f32.mrb[14].mxu0  ;;  %v4151_v52 = vsel %vm444_vm1, %v4109_v29, 0.0 }
 0x1f5   : > { %v4550_v48 = vpack.c.bf16 %v5120_v15, %v5120_v15  ;;  %v3759_v24 = vpop.f32.mrb[15].mxu0  ;;  %v4150_v62 = vadd.f32 %v4149_v23, %v4148_v51  ;;  %v4050_v58 = vadd.f32 %v4049_v28, %v4048_v38  ;;  %v5122_v46 = vadd.f32 %v5089_v11, %v6571_v0 }
 0x1f6   : > { %v4548_v18 = vpack.c.bf16 %v5121_v20, %v5121_v20  ;;  %v4051_v30 = vsel %vm444_vm1, %v5121_v20, 0.0  ;;  %v4110_v53 = vmul.f32 %v5121_v20, %v5121_v20  ;;  %v5123_v9 = vadd.f32 %v3759_v24, %v6573_v7 }
 0x1f7   : > { %4010 = vst.msk [vmem:[%s6580_s8 + $0x38] sm:$0xf] %vm3995_vm0, %v4550_v48  ;;  %v4112_v59 = vmul.f32 %v5120_v15, %v5120_v15  ;;  %v4052_v44 = vadd.f32 %v4051_v30, %v4050_v58  ;;  %v4152_v61 = vadd.f32 %v4151_v52, %v4150_v62  ;;  %v4551_v3 = vpack.c.bf16 %v5122_v46, %v5122_v46 }
 0x1f8   : > { %4008 = vst.msk [vmem:[%s6580_s8 + $0x30] sm:$0xf] %vm3995_vm0, %v4548_v18  ;;  %v4153_v36 = vsel %vm444_vm1, %v4110_v53, 0.0  ;;  %v4549_v2 = vpack.c.bf16 %v5123_v9, %v5123_v9  ;;  %v4053_v32 = vsel %vm444_vm1, %v5123_v9, 0.0  ;;  %v4111_v31 = vmul.f32 %v5123_v9, %v5123_v9 }
 0x1f9   : > { %v4956_v1 = vpop.f32.mrb[16].mxu1  ;;  %v4154_v56 = vadd.f32 %v4153_v36, %v4152_v61  ;;  %4011 = vst.msk [vmem:[%s6580_s8 + $0x3c] sm:$0xf] %vm3995_vm0, %v4551_v3  ;;  %v4054_v7 = vadd.f32 %v4053_v32, %v4052_v44  ;;  %v4055_v34 = vsel %vm444_vm1, %v5120_v15, 0.0  ;;  %v4113_v4 = vmul.f32 %v5122_v46, %v5122_v46 }
 0x1fa   : > { %v2500_v0 = vpop.f32.mrb[17].mxu1  ;;  %v5092_v42 = vpop.f32.mrb[16].mxu0  ;;  %4009 = vst.msk [vmem:[%s6580_s8 + $0x34] sm:$0xf] %vm3995_vm0, %v4549_v2  ;;  %v4155_v12 = vsel %vm444_vm1, %v4111_v31, 0.0  ;;  %v4157_v33 = vsel %vm444_vm1, %v4112_v59, 0.0 }
 0x1fb   : > { %v5124_v14 = vadd.f32 %v5092_v42, %v4956_v1  ;;  %v4957_v8 = vpop.f32.mrb[18].mxu1  ;;  %v3772_v60 = vpop.f32.mrb[17].mxu0  ;;  %v4056_v39 = vadd.f32 %v4055_v34, %v4054_v7  ;;  %v4156_v45 = vadd.f32 %v4155_v12, %v4154_v56  ;;  %v4057_v57 = vsel %vm444_vm1, %v5122_v46, 0.0 }
 0x1fc   : > { %v5125_v63 = vadd.f32 %v3772_v60, %v2500_v0  ;;  %v2503_v17 = vpop.f32.mrb[19].mxu1  ;;  %v5093_v49 = vpop.f32.mrb[18].mxu0  ;;  %v4159_v21 = vsel %vm444_vm1, %v4113_v4, 0.0 }
 0x1fd   : > { %v4554_v40 = vpack.c.bf16 %v5124_v14, %v5124_v14  ;;  %v3775_v50 = vpop.f32.mrb[19].mxu0  ;;  %v4158_v37 = vadd.f32 %v4157_v33, %v4156_v45  ;;  %v4058_v26 = vadd.f32 %v4057_v57, %v4056_v39  ;;  %v5126_v10 = vadd.f32 %v5093_v49, %v4957_v8 }
 0x1fe   : > { %v4552_v5 = vpack.c.bf16 %v5125_v63, %v5125_v63  ;;  %v4059_v13 = vsel %vm444_vm1, %v5125_v63, 0.0  ;;  %v4114_v16 = vmul.f32 %v5125_v63, %v5125_v63  ;;  %v5127_v47 = vadd.f32 %v3775_v50, %v2503_v17 }
 0x1ff   : > { %4014 = vst.msk [vmem:[%s6580_s8 + $0x48] sm:$0xf] %vm3995_vm0, %v4554_v40  ;;  %v4116_v19 = vmul.f32 %v5124_v14, %v5124_v14  ;;  %v4060_v54 = vadd.f32 %v4059_v13, %v4058_v26  ;;  %v4160_v22 = vadd.f32 %v4159_v21, %v4158_v37  ;;  %v4555_v55 = vpack.c.bf16 %v5126_v10, %v5126_v10 }
 0x200   : > { %4012 = vst.msk [vmem:[%s6580_s8 + $0x40] sm:$0xf] %vm3995_vm0, %v4552_v5  ;;  %v4161_v27 = vsel %vm444_vm1, %v4114_v16, 0.0  ;;  %v4553_v41 = vpack.c.bf16 %v5127_v47, %v5127_v47  ;;  %v4061_v15 = vsel %vm444_vm1, %v5127_v47, 0.0  ;;  %v4115_v35 = vmul.f32 %v5127_v47, %v5127_v47 }
 0x201   : > { %v4960_v25 = vpop.f32.mrb[20].mxu1  ;;  %v4162_v43 = vadd.f32 %v4161_v27, %v4160_v22  ;;  %4015 = vst.msk [vmem:[%s6580_s8 + $0x4c] sm:$0xf] %vm3995_vm0, %v4555_v55  ;;  %v4062_v20 = vadd.f32 %v4061_v15, %v4060_v54  ;;  %v4063_v51 = vsel %vm444_vm1, %v5124_v14, 0.0  ;;  %v4117_v48 = vmul.f32 %v5126_v10, %v5126_v10 }
 0x202   : > { %v2516_v6 = vpop.f32.mrb[21].mxu1  ;;  %v5096_v29 = vpop.f32.mrb[20].mxu0  ;;  %4013 = vst.msk [vmem:[%s6580_s8 + $0x44] sm:$0xf] %vm3995_vm0, %v4553_v41  ;;  %v4163_v24 = vsel %vm444_vm1, %v4115_v35, 0.0  ;;  %v4165_v53 = vsel %vm444_vm1, %v4116_v19, 0.0 }
 0x203   : > { %v5128_v11 = vadd.f32 %v5096_v29, %v4960_v25  ;;  %v4961_v23 = vpop.f32.mrb[22].mxu1  ;;  %v3788_v38 = vpop.f32.mrb[21].mxu0  ;;  %v4064_v62 = vadd.f32 %v4063_v51, %v4062_v20  ;;  %v4164_v58 = vadd.f32 %v4163_v24, %v4162_v43  ;;  %v4065_v52 = vsel %vm444_vm1, %v5126_v10, 0.0 }
 0x204   : > { %v5129_v28 = vadd.f32 %v3788_v38, %v2516_v6  ;;  %v2519_v18 = vpop.f32.mrb[23].mxu1  ;;  %v5097_v30 = vpop.f32.mrb[22].mxu0  ;;  %v4167_v32 = vsel %vm444_vm1, %v4117_v48, 0.0 }
 0x205   : > { %v4558_v46 = vpack.c.bf16 %v5128_v11, %v5128_v11  ;;  %v3791_v9 = vpop.f32.mrb[23].mxu0  ;;  %v4166_v61 = vadd.f32 %v4165_v53, %v4164_v58  ;;  %v4066_v3 = vadd.f32 %v4065_v52, %v4064_v62  ;;  %v5130_v1 = vadd.f32 %v5097_v30, %v4961_v23 }
 0x206   : > { %v4556_v36 = vpack.c.bf16 %v5129_v28, %v5129_v28  ;;  %v4067_v59 = vsel %vm444_vm1, %v5129_v28, 0.0  ;;  %v4118_v44 = vmul.f32 %v5129_v28, %v5129_v28  ;;  %v5131_v2 = vadd.f32 %v3791_v9, %v2519_v18 }
 0x207   : > { %4018 = vst.msk [vmem:[%s6580_s8 + $0x58] sm:$0xf] %vm3995_vm0, %v4558_v46  ;;  %v4120_v0 = vmul.f32 %v5128_v11, %v5128_v11  ;;  %v4068_v42 = vadd.f32 %v4067_v59, %v4066_v3  ;;  %v4168_v56 = vadd.f32 %v4167_v32, %v4166_v61  ;;  %v4559_v7 = vpack.c.bf16 %v5130_v1, %v5130_v1 }
 0x208   : > { %4016 = vst.msk [vmem:[%s6580_s8 + $0x50] sm:$0xf] %vm3995_vm0, %v4556_v36  ;;  %v4169_v31 = vsel %vm444_vm1, %v4118_v44, 0.0  ;;  %v4557_v8 = vpack.c.bf16 %v5131_v2, %v5131_v2  ;;  %v4069_v60 = vsel %vm444_vm1, %v5131_v2, 0.0  ;;  %v4119_v34 = vmul.f32 %v5131_v2, %v5131_v2 }
 0x209   : > { %v4964_v14 = vpop.f32.mrb[24].mxu1  ;;  %v4170_v63 = vadd.f32 %v4169_v31, %v4168_v56  ;;  %4019 = vst.msk [vmem:[%s6580_s8 + $0x5c] sm:$0xf] %vm3995_vm0, %v4559_v7  ;;  %v4070_v17 = vadd.f32 %v4069_v60, %v4068_v42  ;;  %v4071_v45 = vsel %vm444_vm1, %v5128_v11, 0.0  ;;  %v4121_v40 = vmul.f32 %v5130_v1, %v5130_v1 }
 0x20a   : > { %v2532_v4 = vpop.f32.mrb[25].mxu1  ;;  %v5100_v12 = vpop.f32.mrb[24].mxu0  ;;  %4017 = vst.msk [vmem:[%s6580_s8 + $0x54] sm:$0xf] %vm3995_vm0, %v4557_v8  ;;  %v4171_v50 = vsel %vm444_vm1, %v4119_v34, 0.0  ;;  %v4173_v16 = vsel %vm444_vm1, %v4120_v0, 0.0 }
 0x20b   : > { %v5132_v49 = vadd.f32 %v5100_v12, %v4964_v14  ;;  %v4965_v33 = vpop.f32.mrb[26].mxu1  ;;  %v3804_v39 = vpop.f32.mrb[25].mxu0  ;;  %v4072_v37 = vadd.f32 %v4071_v45, %v4070_v17  ;;  %v4172_v26 = vadd.f32 %v4171_v50, %v4170_v63  ;;  %v4073_v21 = vsel %vm444_vm1, %v5130_v1, 0.0 }
 0x20c   : > { %v5133_v57 = vadd.f32 %v3804_v39, %v2532_v4  ;;  %v2535_v5 = vpop.f32.mrb[27].mxu1  ;;  %v5101_v13 = vpop.f32.mrb[26].mxu0  ;;  %v4175_v15 = vsel %vm444_vm1, %v4121_v40, 0.0 }
 0x20d   : > { %v4562_v10 = vpack.c.bf16 %v5132_v49, %v5132_v49  ;;  %v3807_v47 = vpop.f32.mrb[27].mxu0  ;;  %v4174_v22 = vadd.f32 %v4173_v16, %v4172_v26  ;;  %v4074_v55 = vadd.f32 %v4073_v21, %v4072_v37  ;;  %v5134_v25 = vadd.f32 %v5101_v13, %v4965_v33 }
 0x20e   : > { %v4560_v27 = vpack.c.bf16 %v5133_v57, %v5133_v57  ;;  %v4075_v19 = vsel %vm444_vm1, %v5133_v57, 0.0  ;;  %v4122_v54 = vmul.f32 %v5133_v57, %v5133_v57  ;;  %v5135_v41 = vadd.f32 %v3807_v47, %v2535_v5 }
 0x20f   : > { %4022 = vst.msk [vmem:[%s6580_s8 + $0x68] sm:$0xf] %vm3995_vm0, %v4562_v10  ;;  %v4124_v6 = vmul.f32 %v5132_v49, %v5132_v49  ;;  %v4076_v29 = vadd.f32 %v4075_v19, %v4074_v55  ;;  %v4176_v43 = vadd.f32 %v4175_v15, %v4174_v22  ;;  %v4563_v20 = vpack.c.bf16 %v5134_v25, %v5134_v25 }
 0x210   : > { %4020 = vst.msk [vmem:[%s6580_s8 + $0x60] sm:$0xf] %vm3995_vm0, %v4560_v27  ;;  %v4177_v35 = vsel %vm444_vm1, %v4122_v54, 0.0  ;;  %v4561_v23 = vpack.c.bf16 %v5135_v41, %v5135_v41  ;;  %v4077_v38 = vsel %vm444_vm1, %v5135_v41, 0.0  ;;  %v4123_v51 = vmul.f32 %v5135_v41, %v5135_v41 }
 0x211   : > { %v4968_v11 = vpop.f32.mrb[28].mxu1  ;;  %v4178_v28 = vadd.f32 %v4177_v35, %v4176_v43  ;;  %4023 = vst.msk [vmem:[%s6580_s8 + $0x6c] sm:$0xf] %vm3995_vm0, %v4563_v20  ;;  %v4078_v18 = vadd.f32 %v4077_v38, %v4076_v29  ;;  %v4079_v58 = vsel %vm444_vm1, %v5132_v49, 0.0  ;;  %v4125_v46 = vmul.f32 %v5134_v25, %v5134_v25 }
 0x212   : > { %v2548_v48 = vpop.f32.mrb[29].mxu1  ;;  %v5104_v24 = vpop.f32.mrb[28].mxu0  ;;  %4021 = vst.msk [vmem:[%s6580_s8 + $0x64] sm:$0xf] %vm3995_vm0, %v4561_v23  ;;  %v4179_v9 = vsel %vm444_vm1, %v4123_v51, 0.0  ;;  %v4181_v44 = vsel %vm444_vm1, %v4124_v6, 0.0 }
 0x213   : > { %v5136_v30 = vadd.f32 %v5104_v24, %v4968_v11  ;;  %v4969_v53 = vpop.f32.mrb[30].mxu1  ;;  %v3820_v62 = vpop.f32.mrb[29].mxu0  ;;  %v4080_v61 = vadd.f32 %v4079_v58, %v4078_v18  ;;  %v4180_v3 = vadd.f32 %v4179_v9, %v4178_v28  ;;  %v4081_v32 = vsel %vm444_vm1, %v5134_v25, 0.0 }
 0x214   : > { %v5137_v52 = vadd.f32 %v3820_v62, %v2548_v48  ;;  %v2551_v36 = vpop.f32.mrb[31].mxu1  ;;  %v5105_v59 = vpop.f32.mrb[30].mxu0  ;;  %v4183_v60 = vsel %vm444_vm1, %v4125_v46, 0.0 }
 0x215   : > { %v4566_v1 = vpack.c.bf16 %v5136_v30, %v5136_v30  ;;  %v3823_v2 = vpop.f32.mrb[31].mxu0  ;;  %v4182_v56 = vadd.f32 %v4181_v44, %v4180_v3  ;;  %v4082_v7 = vadd.f32 %v4081_v32, %v4080_v61  ;;  %v5138_v14 = vadd.f32 %v5105_v59, %v4969_v53 }
 0x216   : > { %v4564_v31 = vpack.c.bf16 %v5137_v52, %v5137_v52  ;;  %v4083_v0 = vsel %vm444_vm1, %v5137_v52, 0.0  ;;  %v4126_v42 = vmul.f32 %v5137_v52, %v5137_v52  ;;  %v5139_v8 = vadd.f32 %v3823_v2, %v2551_v36 }
 0x217   : > { %4026 = vst.msk [vmem:[%s6580_s8 + $0x78] sm:$0xf] %vm3995_vm0, %v4566_v1  ;;  %v4084_v4 = vadd.f32 %v4083_v0, %v4082_v7  ;;  %v4184_v12 = vadd.f32 %v4183_v60, %v4182_v56  ;;  %v4567_v63 = vpack.c.bf16 %v5138_v14, %v5138_v14  ;;  %v4128_v17 = vmul.f32 %v5136_v30, %v5136_v30 }
 0x218   : > { %4024 = vst.msk [vmem:[%s6580_s8 + $0x70] sm:$0xf] %vm3995_vm0, %v4564_v31  ;;  %v4185_v34 = vsel %vm444_vm1, %v4126_v42, 0.0  ;;  %v4565_v49 = vpack.c.bf16 %v5139_v8, %v5139_v8  ;;  %v4085_v33 = vsel %vm444_vm1, %v5139_v8, 0.0  ;;  %v4127_v39 = vmul.f32 %v5139_v8, %v5139_v8 }
 0x219   : > { %v4186_v45 = vadd.f32 %v4185_v34, %v4184_v12  ;;  %4027 = vst.msk [vmem:[%s6580_s8 + $0x7c] sm:$0xf] %vm3995_vm0, %v4567_v63  ;;  %v4086_v40 = vadd.f32 %v4085_v33, %v4084_v4  ;;  %v4087_v50 = vsel %vm444_vm1, %v5136_v30, 0.0  ;;  %v4129_v57 = vmul.f32 %v5138_v14, %v5138_v14 }
 0x21a   : > { %4025 = vst.msk [vmem:[%s6580_s8 + $0x74] sm:$0xf] %vm3995_vm0, %v4565_v49  ;;  %v4187_v5 = vsel %vm444_vm1, %v4127_v39, 0.0  ;;  %v4189_v37 = vsel %vm444_vm1, %v4128_v17, 0.0  ;;  %v4089_v26 = vsel %vm444_vm1, %v5138_v14, 0.0 }
 0x21b   : > { %v4088_v13 = vadd.f32 %v4087_v50, %v4086_v40  ;;  %v4188_v16 = vadd.f32 %v4187_v5, %v4186_v45  ;;  %v4191_v21 = vsel %vm444_vm1, %v4129_v57, 0.0 }
 0x21d   : > { %v4090_v10 = vadd.f32 %v4089_v26, %v4088_v13  ;;  %v4190_v47 = vadd.f32 %v4189_v37, %v4188_v16 }
 0x21f   : > { %v4091_v27 = vrot.slane %v4090_v10, 4  ;;  %v4192_v19 = vadd.f32 %v4191_v21, %v4190_v47 }
 0x221   : > { %v4092_v54 = vadd.f32 %v4091_v27, %v4090_v10  ;;  %v4193_v22 = vrot.slane %v4192_v19, 4 }
 0x223   : > { %v4093_v55 = vrot.slane %v4092_v54, 2  ;;  %v4194_v25 = vadd.f32 %v4193_v22, %v4192_v19 }
 0x225   : > { %v4094_v41 = vadd.f32 %v4093_v55, %v4092_v54  ;;  %v4195_v15 = vrot.slane %v4194_v25, 2 }
 0x227   : > { %v4095_v35 = vrot.slane %v4094_v41, 1  ;;  %v4196_v6 = vadd.f32 %v4195_v15, %v4194_v25 }
 0x229   : > { %v4096_v29 = vadd.f32 %v4095_v35, %v4094_v41  ;;  %v4197_v43 = vrot.slane %v4196_v6, 1 }
 0x22b   : > { %4097 = vst.msk [vmem:[%s265_s10] sm:$0x1] %vm447_vm2, %v4096_v29  ;;  %v4198_v20 = vadd.f32 %v4197_v43, %v4196_v6 }
 0x22d   : > { %4199 = vst.msk [vmem:[%s268_s13] sm:$0x1] %vm447_vm2, %v4198_v20 }
 0x22e PF: > { %s17_s21 = sadd.s32 1, %s5390_s21  }
 0x22f   : > { %p14_p4 = scmp.ge.s32.totalorder %s17_s21, 4  }
 0x231   :  { %16 = sbr.rel (!%p14_p4) target bundleno = 1 (0x1), region = 98 }

</bundles_post_ra>
